<compile_context>
chip_gen: v5e
topology: v5e:2x2
jax: 0.10.0
libtpu: 0.0.40
codegen_flags: <defaults>
</compile_context>

<pallas_src>
import math
import functools

import jax
import jax.numpy as jnp
from jax.experimental import pallas as pl
from jax.experimental.pallas import tpu as pltpu


# ---------------------------------------------------------------------------
# In-kernel helpers (trace into the Pallas body)
# ---------------------------------------------------------------------------
def _erf_approx(x):
    # Abramowitz & Stegun 7.1.26 rational approximation (max abs err ~1.5e-7).
    # Only exp/mul/add/where -> lowers cleanly in Mosaic; exp runs on the EUP.
    a1, a2, a3, a4, a5 = 0.254829592, -0.284496736, 1.421413741, -1.453152027, 1.061405429
    p = 0.3275911
    sign = jnp.where(x >= 0.0, 1.0, -1.0).astype(x.dtype)
    ax = jnp.abs(x)
    t = 1.0 / (1.0 + p * ax)
    poly = ((((a5 * t + a4) * t + a3) * t + a2) * t + a1) * t
    return sign * (1.0 - poly * jnp.exp(-ax * ax))


def _gelu_exact(x):
    # nn.GELU() default ('none') == exact erf-based GELU.
    return 0.5 * x * (1.0 + _erf_approx(x * (1.0 / math.sqrt(2.0))))


def _layer_norm(x, gamma, beta, eps=1e-5):
    mean = jnp.mean(x, axis=-1, keepdims=True)
    var = jnp.mean((x - mean) ** 2, axis=-1, keepdims=True)
    return (x - mean) * jax.lax.rsqrt(var + eps) * gamma + beta


# ---------------------------------------------------------------------------
# Fused Pallas kernel: projection + all transformer blocks + prediction head
# ---------------------------------------------------------------------------
def _unet_transformer_kernel(
    img_ref, tq_ref,
    proj_w_ref, proj_b_ref,
    wq_ref, wk_ref, wv_ref, wo_ref, bo_ref,
    ln1_g_ref, ln1_b_ref,
    w1_ref, b1_ref, w2_ref, b2_ref,
    ln2_g_ref, ln2_b_ref,
    pred_w_ref, pred_b_ref,
    out_ref,
    x_sc,
    *, num_heads, head_dim,
):
    layer = pl.program_id(1)
    num_layers = pl.num_programs(1)

    # ---- first layer step: build the (S, E) sequence in VMEM ------------------
    # (fuses the text_query_projector; removes a standalone pallas_call + HBM trip)
    @pl.when(layer == 0)
    def _init():
        tq_proj = (
            jnp.dot(tq_ref[...], proj_w_ref[...], preferred_element_type=jnp.float32)
            + proj_b_ref[...]
        )                                                     # (1, E)
        x_sc[...] = jnp.concatenate([tq_proj, img_ref[...]], axis=0)   # (S, E)

    x = x_sc[...]                                             # (S, E) float32

    # ---- self-attention: heads batched (no per-head loop, no lane concat) -----
    # q/k/v are produced directly as (num_heads, S, head_dim) via leading-batch
    # einsums against per-head-stacked weights (split host-side, lane-aligned).
    xh = jnp.broadcast_to(x, (num_heads,) + x.shape)          # (H, S, E)
    q = jnp.einsum("hse,hed->hsd", xh, wq_ref[...], preferred_element_type=jnp.float32)
    k = jnp.einsum("hse,hed->hsd", xh, wk_ref[...], preferred_element_type=jnp.float32)
    v = jnp.einsum("hse,hed->hsd", xh, wv_ref[...], preferred_element_type=jnp.float32)

    scale = 1.0 / math.sqrt(head_dim)
    s = jnp.einsum("hqd,hkd->hqk", q, k, preferred_element_type=jnp.float32) * scale
    s = s - jnp.max(s, axis=-1, keepdims=True)
    p = jnp.exp(s)
    # EUP approximate reciprocal: runs in the EUP slot, off the VALU critical path.
    p = p * pl.reciprocal(jnp.sum(p, axis=-1, keepdims=True), approx=True)
    o = jnp.einsum("hqk,hkd->hqd", p, v, preferred_element_type=jnp.float32)   # (H, S, d)

    # out-projection applied per head ((H, d, E) weight) then reduced over heads:
    # avoids the (H, S, d) -> (S, E) cross-lane re-concatenation entirely.
    attn = jnp.einsum("hqd,hde->hqe", o, wo_ref[...], preferred_element_type=jnp.float32)
    attn = jnp.sum(attn, axis=0) + bo_ref[...]                # (S, E)

    h1 = _layer_norm(x + attn, ln1_g_ref[...], ln1_b_ref[...])

    # ---- FFN: Linear -> GELU -> Linear -----------------------------------------
    f = jnp.dot(h1, w1_ref[...], preferred_element_type=jnp.float32) + b1_ref[...]
    f = _gelu_exact(f)
    f = jnp.dot(f, w2_ref[...], preferred_element_type=jnp.float32) + b2_ref[...]

    x_new = _layer_norm(h1 + f, ln2_g_ref[...], ln2_b_ref[...])
    x_sc[...] = x_new                                         # carry to next layer step

    # ---- last layer step: fused prediction head --------------------------------
    @pl.when(layer == num_layers - 1)
    def _final():
        pred = (
            jnp.dot(x_new[0:1, :], pred_w_ref[...], preferred_element_type=jnp.float32)
            + pred_b_ref[...]
        )                                                     # (1, Tq)
        out_ref[0] = pred


# ---------------------------------------------------------------------------
# Wrapper (JAX glue: layout plumbing + pallas_call)
# ---------------------------------------------------------------------------
def unet_transformer_forward(image_features, text_query, params, num_heads):
    B, C, H, W = image_features.shape
    E = C
    HW = H * W
    S = HW + 1
    head_dim = E // num_heads
    Tq = text_query.shape[-1]
    L = params["wq"].shape[0]

    # --- plain-JAX layout plumbing (matches view/cat/transpose in the module) ---
    img_seq = image_features.reshape(B, C, HW).transpose(0, 2, 1)          # (B, HW, E)
    tq3 = text_query[:, None, :]                                           # (B, 1, Tq)
    # pre-split attention weights per head so the kernel never slices lanes:
    wq_h = params["wq"].reshape(L, E, num_heads, head_dim).transpose(0, 2, 1, 3)  # (L,H,E,d)
    wk_h = params["wk"].reshape(L, E, num_heads, head_dim).transpose(0, 2, 1, 3)
    wv_h = params["wv"].reshape(L, E, num_heads, head_dim).transpose(0, 2, 1, 3)
    wo_h = params["wo"].reshape(L, num_heads, head_dim, E)                        # (L,H,d,E)

    kernel = functools.partial(
        _unet_transformer_kernel, num_heads=num_heads, head_dim=head_dim
    )

    def const_spec(shape):            # batch/layer-invariant operand (DMA'd once)
        nd = len(shape)
        return pl.BlockSpec(tuple(shape), lambda b, l, nd=nd: (0,) * nd)

    def layer_spec(shape):            # per-layer stacked operand, leading dim squeezed
        nd = len(shape)
        return pl.BlockSpec(
            (None,) + tuple(shape[1:]), lambda b, l, nd=nd: (l,) + (0,) * (nd - 1)
        )

    in_specs = [
        pl.BlockSpec((None, HW, E), lambda b, l: (b, 0, 0)),     # image sequence
        pl.BlockSpec((None, 1, Tq), lambda b, l: (b, 0, 0)),     # text query
        const_spec(params["proj_w"].shape),
        const_spec(params["proj_b"].shape),
        layer_spec(wq_h.shape),
        layer_spec(wk_h.shape),
        layer_spec(wv_h.shape),
        layer_spec(wo_h.shape),
        layer_spec(params["bo"].shape),
        layer_spec(params["ln1_g"].shape),
        layer_spec(params["ln1_b"].shape),
        layer_spec(params["w1"].shape),
        layer_spec(params["b1"].shape),
        layer_spec(params["w2"].shape),
        layer_spec(params["b2"].shape),
        layer_spec(params["ln2_g"].shape),
        layer_spec(params["ln2_b"].shape),
        const_spec(params["pred_w"].shape),
        const_spec(params["pred_b"].shape),
    ]

    out = pl.pallas_call(
        kernel,
        out_shape=jax.ShapeDtypeStruct((B, 1, Tq), jnp.float32),
        grid=(B, L),
        in_specs=in_specs,
        out_specs=pl.BlockSpec((1, 1, Tq), lambda b, l: (b, 0, 0)),
        scratch_shapes=[pltpu.VMEM((S, E), jnp.float32)],   # sequence resident across layers
        compiler_params=pltpu.CompilerParams(
            dimension_semantics=("parallel", "arbitrary"),  # batch across cores, layer carried
        ),
    )(
        img_seq, tq3,
        params["proj_w"], params["proj_b"],
        wq_h, wk_h, wv_h, wo_h, params["bo"],
        params["ln1_g"], params["ln1_b"],
        params["w1"], params["b1"], params["w2"], params["b2"],
        params["ln2_g"], params["ln2_b"],
        params["pred_w"], params["pred_b"],
    )
    # TODO(synk): for production-scale shapes (S~1025, E=1280, 64 heads) add
    # flash-style sequence tiling + explicit vmem_limit_bytes to fit v7x's 64 MiB VMEM.
    return out[:, 0, :]


# ---------------------------------------------------------------------------
# Parameter init (deterministic, synthetic; weights stored transposed, stacked per layer)
# ---------------------------------------------------------------------------
def init_params(key, num_blocks, embed_dim, num_heads, ff_dim, text_query_dim):
    L, E, Fd, Tq = num_blocks, embed_dim, ff_dim, text_query_dim
    ks = jax.random.split(key, 13)
    n = lambda k, shp: 0.02 * jax.random.normal(k, shp, jnp.float32)
    return dict(
        proj_w=n(ks[0], (Tq, E)), proj_b=n(ks[1], (1, E)),
        pred_w=n(ks[2], (E, Tq)), pred_b=n(ks[3], (1, Tq)),
        wq=n(ks[4], (L, E, E)), wk=n(ks[5], (L, E, E)), wv=n(ks[6], (L, E, E)),
        wo=n(ks[7], (L, E, E)), bo=n(ks[8], (L, 1, E)),
        ln1_g=jnp.ones((L, 1, E), jnp.float32), ln1_b=jnp.zeros((L, 1, E), jnp.float32),
        w1=n(ks[9], (L, E, Fd)), b1=n(ks[10], (L, 1, Fd)),
        w2=n(ks[11], (L, Fd, E)), b2=n(ks[12], (L, 1, E)),
        ln2_g=jnp.ones((L, 1, E), jnp.float32), ln2_b=jnp.zeros((L, 1, E), jnp.float32),
    )


# ---------------------------------------------------------------------------
# Pure-JAX reference (for correctness check)
# ---------------------------------------------------------------------------
def _ln_ref(x, g, b, eps=1e-5):
    m = jnp.mean(x, -1, keepdims=True)
    v = jnp.mean((x - m) ** 2, -1, keepdims=True)
    return (x - m) / jnp.sqrt(v + eps) * g + b


def reference_forward(image_features, text_query, params, num_heads):
    B, C, H, W = image_features.shape
    E = C
    dh = E // num_heads
    img_seq = image_features.reshape(B, C, H * W).transpose(0, 2, 1)
    tq = text_query @ params["proj_w"] + params["proj_b"]
    x = jnp.concatenate([tq[:, None, :], img_seq], axis=1)
    for i in range(params["wq"].shape[0]):
        q = x @ params["wq"][i]
        k = x @ params["wk"][i]
        v = x @ params["wv"][i]
        split = lambda t: t.reshape(B, -1, num_heads, dh).transpose(0, 2, 1, 3)
        qh, kh, vh = split(q), split(k), split(v)
        s = jnp.einsum("bhqd,bhkd->bhqk", qh, kh) / math.sqrt(dh)
        p = jax.nn.softmax(s, axis=-1)
        o = jnp.einsum("bhqk,bhkd->bhqd", p, vh).transpose(0, 2, 1, 3).reshape(B, -1, E)
        o = o @ params["wo"][i] + params["bo"][i]
        x = _ln_ref(x + o, params["ln1_g"][i], params["ln1_b"][i])
        f = x @ params["w1"][i] + params["b1"][i]
        f = 0.5 * f * (1.0 + jax.lax.erf(f / jnp.sqrt(2.0)))
        f = f @ params["w2"][i] + params["b2"][i]
        x = _ln_ref(x + f, params["ln2_g"][i], params["ln2_b"][i])
    return x[:, 0] @ params["pred_w"] + params["pred_b"]


if __name__ == "__main__":
    # Small shapes consistent with the module, chosen lane-dense for TPU:
    # embed_dim % 128 == 0, head_dim == 128, sequence length 1 + H*W == 16.
    B, embed_dim, num_heads, ff_dim, text_query_dim, num_blocks = 2, 256, 2, 512, 128, 2
    H, W = 5, 3

    key = jax.random.PRNGKey(0)
    k_img, k_txt, k_par = jax.random.split(key, 3)
    image_features = jax.random.normal(k_img, (B, embed_dim, H, W), jnp.float32)
    text_query = jax.random.normal(k_txt, (B, text_query_dim), jnp.float32)
    params = init_params(k_par, num_blocks, embed_dim, num_heads, ff_dim, text_query_dim)

    out = unet_transformer_forward(image_features, text_query, params, num_heads)
    out = jax.block_until_ready(out)
    assert out.shape == (B, text_query_dim)

    ref = reference_forward(image_features, text_query, params, num_heads)
    err = float(jnp.max(jnp.abs(out - ref)))
    if not (err < 2e-3):
        raise AssertionError(f"Pallas output does not match JAX reference (max abs err {err:.2e})")

    print("KERNEL_OK")
</pallas_src>

<mosaic_0001>
module attributes {stable_mosaic.version = 11 : i64} {
  func.func @_unet_transformer_kernel(%arg0: i32, %arg1: i32, %arg2: memref<1x15x256xf32, #tpu.memory_space<vmem>>, %arg3: memref<1x1x128xf32, #tpu.memory_space<vmem>>, %arg4: memref<128x256xf32, #tpu.memory_space<vmem>>, %arg5: memref<1x256xf32, #tpu.memory_space<vmem>>, %arg6: memref<1x2x256x128xf32, #tpu.memory_space<vmem>>, %arg7: memref<1x2x256x128xf32, #tpu.memory_space<vmem>>, %arg8: memref<1x2x256x128xf32, #tpu.memory_space<vmem>>, %arg9: memref<1x2x128x256xf32, #tpu.memory_space<vmem>>, %arg10: memref<1x1x256xf32, #tpu.memory_space<vmem>>, %arg11: memref<1x1x256xf32, #tpu.memory_space<vmem>>, %arg12: memref<1x1x256xf32, #tpu.memory_space<vmem>>, %arg13: memref<1x256x512xf32, #tpu.memory_space<vmem>>, %arg14: memref<1x1x512xf32, #tpu.memory_space<vmem>>, %arg15: memref<1x512x256xf32, #tpu.memory_space<vmem>>, %arg16: memref<1x1x256xf32, #tpu.memory_space<vmem>>, %arg17: memref<1x1x256xf32, #tpu.memory_space<vmem>>, %arg18: memref<1x1x256xf32, #tpu.memory_space<vmem>>, %arg19: memref<256x128xf32, #tpu.memory_space<vmem>>, %arg20: memref<1x128xf32, #tpu.memory_space<vmem>>, %arg21: memref<1x1x128xf32, #tpu.memory_space<vmem>>, %arg22: memref<16x256xf32, #tpu.memory_space<vmem>>) attributes {dimension_semantics = [#tpu.dimension_semantics<parallel>, #tpu.dimension_semantics<arbitrary>], iteration_bounds = array<i64: 2, 2>, scalar_prefetch = 0 : i64, scratch_operands = 1 : i64, tpu.core_type = #tpu.core_type<tc>, window_params = [{transform_indices = @transform_0, window_bounds = array<i64: 1, 15, 256>}, {transform_indices = @transform_1, window_bounds = array<i64: 1, 1, 128>}, {pipeline_mode = #tpu.pipeline_mode<synchronous>, transform_indices = @transform_2, window_bounds = array<i64: 128, 256>}, {pipeline_mode = #tpu.pipeline_mode<synchronous>, transform_indices = @transform_3, window_bounds = array<i64: 1, 256>}, {transform_indices = @transform_4, window_bounds = array<i64: 1, 2, 256, 128>}, {transform_indices = @transform_5, window_bounds = array<i64: 1, 2, 256, 128>}, {transform_indices = @transform_6, window_bounds = array<i64: 1, 2, 256, 128>}, {transform_indices = @transform_7, window_bounds = array<i64: 1, 2, 128, 256>}, {transform_indices = @transform_8, window_bounds = array<i64: 1, 1, 256>}, {transform_indices = @transform_9, window_bounds = array<i64: 1, 1, 256>}, {transform_indices = @transform_10, window_bounds = array<i64: 1, 1, 256>}, {transform_indices = @transform_11, window_bounds = array<i64: 1, 256, 512>}, {transform_indices = @transform_12, window_bounds = array<i64: 1, 1, 512>}, {transform_indices = @transform_13, window_bounds = array<i64: 1, 512, 256>}, {transform_indices = @transform_14, window_bounds = array<i64: 1, 1, 256>}, {transform_indices = @transform_15, window_bounds = array<i64: 1, 1, 256>}, {transform_indices = @transform_16, window_bounds = array<i64: 1, 1, 256>}, {pipeline_mode = #tpu.pipeline_mode<synchronous>, transform_indices = @transform_17, window_bounds = array<i64: 256, 128>}, {pipeline_mode = #tpu.pipeline_mode<synchronous>, transform_indices = @transform_18, window_bounds = array<i64: 1, 128>}, {transform_indices = @transform_19, window_bounds = array<i64: 1, 1, 128>}]} {
    %c0_i32 = arith.constant 0 : i32
    %0 = arith.cmpi eq, %arg1, %c0_i32 : i32
    %1 = arith.extui %0 : i1 to i32
    %c0_i32_0 = arith.constant 0 : i32
    %2 = arith.cmpi ne, %1, %c0_i32_0 : i32
    scf.if %2 {
      %c0_85 = arith.constant 0 : index
      %c0_86 = arith.constant 0 : index
      %c0_87 = arith.constant 0 : index
      %150 = vector.load %arg3[%c0_85, %c0_86, %c0_87] : memref<1x1x128xf32, #tpu.memory_space<vmem>>, vector<1x1x128xf32>
      %151 = vector.shape_cast %150 : vector<1x1x128xf32> to vector<1x128xf32>
      %c0_88 = arith.constant 0 : index
      %c0_89 = arith.constant 0 : index
      %152 = vector.load %arg4[%c0_88, %c0_89] : memref<128x256xf32, #tpu.memory_space<vmem>>, vector<128x256xf32>
      %cst_90 = arith.constant dense<0.000000e+00> : vector<1x256xf32>
      %153 = tpu.matmul %151, %152, %cst_90 {dimension_numbers = #tpu.dot_dimension_numbers<[1], [0], [0], [1], [0, 0, 1, 1], [], []>} : vector<1x128xf32>, vector<128x256xf32>, vector<1x256xf32> -> vector<1x256xf32>
      %c0_91 = arith.constant 0 : index
      %c0_92 = arith.constant 0 : index
      %154 = vector.load %arg5[%c0_91, %c0_92] : memref<1x256xf32, #tpu.memory_space<vmem>>, vector<1x256xf32>
      %155 = arith.addf %153, %154 : vector<1x256xf32>
      %c0_93 = arith.constant 0 : index
      %c0_94 = arith.constant 0 : index
      %c0_95 = arith.constant 0 : index
      %156 = vector.load %arg2[%c0_93, %c0_94, %c0_95] : memref<1x15x256xf32, #tpu.memory_space<vmem>>, vector<1x15x256xf32>
      %157 = vector.shape_cast %156 : vector<1x15x256xf32> to vector<15x256xf32>
      %158 = tpu.concatenate %155, %157 in 0 : vector<1x256xf32>, vector<15x256xf32> -> vector<16x256xf32>
      %c0_96 = arith.constant 0 : index
      %c0_97 = arith.constant 0 : index
      %159 = vector.load %arg22[%c0_96, %c0_97] : memref<16x256xf32, #tpu.memory_space<vmem>>, vector<16x256xf32>
      tpu.vector_store %arg22[%c0_96, %c0_97], %158 {strides = array<i32>} : memref<16x256xf32, #tpu.memory_space<vmem>>, vector<16x256xf32>,
    } else {
    }
    %c0 = arith.constant 0 : index
    %c0_1 = arith.constant 0 : index
    %3 = vector.load %arg22[%c0, %c0_1] : memref<16x256xf32, #tpu.memory_space<vmem>>, vector<16x256xf32>
    %4 = vector.shape_cast %3 : vector<16x256xf32> to vector<1x16x256xf32>
    %5 = vector.broadcast %4 : vector<1x16x256xf32> to vector<2x16x256xf32>
    %c0_2 = arith.constant 0 : index
    %c0_3 = arith.constant 0 : index
    %c0_4 = arith.constant 0 : index
    %c0_5 = arith.constant 0 : index
    %6 = vector.load %arg6[%c0_2, %c0_3, %c0_4, %c0_5] : memref<1x2x256x128xf32, #tpu.memory_space<vmem>>, vector<1x2x256x128xf32>
    %7 = vector.shape_cast %6 : vector<1x2x256x128xf32> to vector<2x256x128xf32>
    "tpu.trace_start"() <{level = 10 : i32, message = "hse,hed->hsd"}> : () -> ()
    %cst = arith.constant dense<0.000000e+00> : vector<2x16x128xf32>
    %8 = tpu.matmul %5, %7, %cst {dimension_numbers = #tpu.dot_dimension_numbers<[2], [1], [1], [2], [0, 0, 0, 1, 1, 2], [0], [0]>} : vector<2x16x256xf32>, vector<2x256x128xf32>, vector<2x16x128xf32> -> vector<2x16x128xf32>
    "tpu.trace_stop"() : () -> ()
    %c0_6 = arith.constant 0 : index
    %c0_7 = arith.constant 0 : index
    %c0_8 = arith.constant 0 : index
    %c0_9 = arith.constant 0 : index
    %9 = vector.load %arg7[%c0_6, %c0_7, %c0_8, %c0_9] : memref<1x2x256x128xf32, #tpu.memory_space<vmem>>, vector<1x2x256x128xf32>
    %10 = vector.shape_cast %9 : vector<1x2x256x128xf32> to vector<2x256x128xf32>
    "tpu.trace_start"() <{level = 10 : i32, message = "hse,hed->hsd"}> : () -> ()
    %cst_10 = arith.constant dense<0.000000e+00> : vector<2x16x128xf32>
    %11 = tpu.matmul %5, %10, %cst_10 {dimension_numbers = #tpu.dot_dimension_numbers<[2], [1], [1], [2], [0, 0, 0, 1, 1, 2], [0], [0]>} : vector<2x16x256xf32>, vector<2x256x128xf32>, vector<2x16x128xf32> -> vector<2x16x128xf32>
    "tpu.trace_stop"() : () -> ()
    %c0_11 = arith.constant 0 : index
    %c0_12 = arith.constant 0 : index
    %c0_13 = arith.constant 0 : index
    %c0_14 = arith.constant 0 : index
    %12 = vector.load %arg8[%c0_11, %c0_12, %c0_13, %c0_14] : memref<1x2x256x128xf32, #tpu.memory_space<vmem>>, vector<1x2x256x128xf32>
    %13 = vector.shape_cast %12 : vector<1x2x256x128xf32> to vector<2x256x128xf32>
    "tpu.trace_start"() <{level = 10 : i32, message = "hse,hed->hsd"}> : () -> ()
    %cst_15 = arith.constant dense<0.000000e+00> : vector<2x16x128xf32>
    %14 = tpu.matmul %5, %13, %cst_15 {dimension_numbers = #tpu.dot_dimension_numbers<[2], [1], [1], [2], [0, 0, 0, 1, 1, 2], [0], [0]>} : vector<2x16x256xf32>, vector<2x256x128xf32>, vector<2x16x128xf32> -> vector<2x16x128xf32>
    "tpu.trace_stop"() : () -> ()
    "tpu.trace_start"() <{level = 10 : i32, message = "hqd,hkd->hqk"}> : () -> ()
    %cst_16 = arith.constant dense<0.000000e+00> : vector<2x16x16xf32>
    %15 = tpu.matmul %8, %11, %cst_16 {dimension_numbers = #tpu.dot_dimension_numbers<[2], [2], [1], [1], [0, 0, 0, 1, 1, 1], [0], [0]>} : vector<2x16x128xf32>, vector<2x16x128xf32>, vector<2x16x16xf32> -> vector<2x16x16xf32>
    "tpu.trace_stop"() : () -> ()
    %cst_17 = arith.constant 0.0883883461 : f32
    %16 = vector.broadcast %cst_17 : f32 to vector<2x16x16xf32>
    %17 = arith.mulf %15, %16 : vector<2x16x16xf32>
    %cst_18 = arith.constant dense<0xFF800000> : vector<2x16xf32>
    %18 = vector.multi_reduction <maximumf>, %17, %cst_18 [2] : vector<2x16x16xf32> to vector<2x16xf32>
    %19 = vector.shape_cast %18 : vector<2x16xf32> to vector<2x16x1xf32>
    %20 = vector.broadcast %19 : vector<2x16x1xf32> to vector<2x16x16xf32>
    %21 = arith.subf %17, %20 : vector<2x16x16xf32>
    %22 = math.exp %21 : vector<2x16x16xf32>
    %cst_19 = arith.constant dense<0.000000e+00> : vector<2x16xf32>
    %23 = vector.multi_reduction <add>, %22, %cst_19 [2] : vector<2x16x16xf32> to vector<2x16xf32>
    %24 = vector.shape_cast %23 : vector<2x16xf32> to vector<2x16x1xf32>
    %25 = tpu.reciprocal %24 {approx = true} : vector<2x16x1xf32> -> vector<2x16x1xf32>
    %26 = vector.broadcast %25 : vector<2x16x1xf32> to vector<2x16x16xf32>
    %27 = arith.mulf %22, %26 : vector<2x16x16xf32>
    "tpu.trace_start"() <{level = 10 : i32, message = "hqk,hkd->hqd"}> : () -> ()
    %cst_20 = arith.constant dense<0.000000e+00> : vector<2x16x128xf32>
    %28 = tpu.matmul %27, %14, %cst_20 {dimension_numbers = #tpu.dot_dimension_numbers<[2], [1], [1], [2], [0, 0, 0, 1, 1, 2], [0], [0]>} : vector<2x16x16xf32>, vector<2x16x128xf32>, vector<2x16x128xf32> -> vector<2x16x128xf32>
    "tpu.trace_stop"() : () -> ()
    %c0_21 = arith.constant 0 : index
    %c0_22 = arith.constant 0 : index
    %c0_23 = arith.constant 0 : index
    %c0_24 = arith.constant 0 : index
    %29 = vector.load %arg9[%c0_21, %c0_22, %c0_23, %c0_24] : memref<1x2x128x256xf32, #tpu.memory_space<vmem>>, vector<1x2x128x256xf32>
    %30 = vector.shape_cast %29 : vector<1x2x128x256xf32> to vector<2x128x256xf32>
    "tpu.trace_start"() <{level = 10 : i32, message = "hqd,hde->hqe"}> : () -> ()
    %cst_25 = arith.constant dense<0.000000e+00> : vector<2x16x256xf32>
    %31 = tpu.matmul %28, %30, %cst_25 {dimension_numbers = #tpu.dot_dimension_numbers<[2], [1], [1], [2], [0, 0, 0, 1, 1, 2], [0], [0]>} : vector<2x16x128xf32>, vector<2x128x256xf32>, vector<2x16x256xf32> -> vector<2x16x256xf32>
    "tpu.trace_stop"() : () -> ()
    %cst_26 = arith.constant dense<0.000000e+00> : vector<16x256xf32>
    %32 = vector.multi_reduction <add>, %31, %cst_26 [0] : vector<2x16x256xf32> to vector<16x256xf32>
    %c0_27 = arith.constant 0 : index
    %c0_28 = arith.constant 0 : index
    %c0_29 = arith.constant 0 : index
    %33 = vector.load %arg10[%c0_27, %c0_28, %c0_29] : memref<1x1x256xf32, #tpu.memory_space<vmem>>, vector<1x1x256xf32>
    %34 = vector.shape_cast %33 : vector<1x1x256xf32> to vector<1x256xf32>
    %35 = vector.broadcast %34 : vector<1x256xf32> to vector<16x256xf32>
    %36 = arith.addf %32, %35 : vector<16x256xf32>
    %37 = arith.addf %3, %36 : vector<16x256xf32>
    %c0_30 = arith.constant 0 : index
    %c0_31 = arith.constant 0 : index
    %c0_32 = arith.constant 0 : index
    %38 = vector.load %arg11[%c0_30, %c0_31, %c0_32] : memref<1x1x256xf32, #tpu.memory_space<vmem>>, vector<1x1x256xf32>
    %39 = vector.shape_cast %38 : vector<1x1x256xf32> to vector<1x256xf32>
    %c0_33 = arith.constant 0 : index
    %c0_34 = arith.constant 0 : index
    %c0_35 = arith.constant 0 : index
    %40 = vector.load %arg12[%c0_33, %c0_34, %c0_35] : memref<1x1x256xf32, #tpu.memory_space<vmem>>, vector<1x1x256xf32>
    %41 = vector.shape_cast %40 : vector<1x1x256xf32> to vector<1x256xf32>
    %cst_36 = arith.constant dense<0.000000e+00> : vector<16xf32>
    %42 = vector.multi_reduction <add>, %37, %cst_36 [1] : vector<16x256xf32> to vector<16xf32>
    %43 = vector.shape_cast %42 : vector<16xf32> to vector<16x1xf32>
    %cst_37 = arith.constant 2.560000e+02 : f32
    %44 = vector.broadcast %cst_37 : f32 to vector<16x1xf32>
    %45 = arith.divf %43, %44 : vector<16x1xf32>
    %46 = vector.broadcast %45 : vector<16x1xf32> to vector<16x256xf32>
    %47 = arith.subf %37, %46 : vector<16x256xf32>
    %48 = arith.mulf %47, %47 : vector<16x256xf32>
    %cst_38 = arith.constant dense<0.000000e+00> : vector<16xf32>
    %49 = vector.multi_reduction <add>, %48, %cst_38 [1] : vector<16x256xf32> to vector<16xf32>
    %50 = vector.shape_cast %49 : vector<16xf32> to vector<16x1xf32>
    %cst_39 = arith.constant 2.560000e+02 : f32
    %51 = vector.broadcast %cst_39 : f32 to vector<16x1xf32>
    %52 = arith.divf %50, %51 : vector<16x1xf32>
    %53 = vector.broadcast %45 : vector<16x1xf32> to vector<16x256xf32>
    %54 = arith.subf %37, %53 : vector<16x256xf32>
    %cst_40 = arith.constant 9.99999974E-6 : f32
    %55 = vector.broadcast %cst_40 : f32 to vector<16x1xf32>
    %56 = arith.addf %52, %55 : vector<16x1xf32>
    %57 = math.rsqrt %56 : vector<16x1xf32>
    %58 = vector.broadcast %57 : vector<16x1xf32> to vector<16x256xf32>
    %59 = arith.mulf %54, %58 : vector<16x256xf32>
    %60 = vector.broadcast %39 : vector<1x256xf32> to vector<16x256xf32>
    %61 = arith.mulf %59, %60 : vector<16x256xf32>
    %62 = vector.broadcast %41 : vector<1x256xf32> to vector<16x256xf32>
    %63 = arith.addf %61, %62 : vector<16x256xf32>
    %c0_41 = arith.constant 0 : index
    %c0_42 = arith.constant 0 : index
    %c0_43 = arith.constant 0 : index
    %64 = vector.load %arg13[%c0_41, %c0_42, %c0_43] : memref<1x256x512xf32, #tpu.memory_space<vmem>>, vector<1x256x512xf32>
    %65 = vector.shape_cast %64 : vector<1x256x512xf32> to vector<256x512xf32>
    %cst_44 = arith.constant dense<0.000000e+00> : vector<16x512xf32>
    %66 = tpu.matmul %63, %65, %cst_44 {dimension_numbers = #tpu.dot_dimension_numbers<[1], [0], [0], [1], [0, 0, 1, 1], [], []>} : vector<16x256xf32>, vector<256x512xf32>, vector<16x512xf32> -> vector<16x512xf32>
    %c0_45 = arith.constant 0 : index
    %c0_46 = arith.constant 0 : index
    %c0_47 = arith.constant 0 : index
    %67 = vector.load %arg14[%c0_45, %c0_46, %c0_47] : memref<1x1x512xf32, #tpu.memory_space<vmem>>, vector<1x1x512xf32>
    %68 = vector.shape_cast %67 : vector<1x1x512xf32> to vector<1x512xf32>
    %69 = vector.broadcast %68 : vector<1x512xf32> to vector<16x512xf32>
    %70 = arith.addf %66, %69 : vector<16x512xf32>
    %cst_48 = arith.constant 5.000000e-01 : f32
    %71 = vector.broadcast %cst_48 : f32 to vector<16x512xf32>
    %72 = arith.mulf %71, %70 : vector<16x512xf32>
    %cst_49 = arith.constant 0.707106769 : f32
    %73 = vector.broadcast %cst_49 : f32 to vector<16x512xf32>
    %74 = arith.mulf %70, %73 : vector<16x512xf32>
    %cst_50 = arith.constant 0.000000e+00 : f32
    %75 = vector.broadcast %cst_50 : f32 to vector<16x512xf32>
    %76 = arith.cmpf oge, %74, %75 : vector<16x512xf32>
    %cst_51 = arith.constant 1.000000e+00 : f32
    %cst_52 = arith.constant -1.000000e+00 : f32
    %77 = vector.broadcast %cst_51 : f32 to vector<16x512xf32>
    %78 = vector.broadcast %cst_52 : f32 to vector<16x512xf32>
    %79 = arith.select %76, %77, %78 : vector<16x512xi1>, vector<16x512xf32>
    %80 = math.absf %74 : vector<16x512xf32>
    %cst_53 = arith.constant 0.327591091 : f32
    %81 = vector.broadcast %cst_53 : f32 to vector<16x512xf32>
    %82 = arith.mulf %81, %80 : vector<16x512xf32>
    %cst_54 = arith.constant 1.000000e+00 : f32
    %83 = vector.broadcast %cst_54 : f32 to vector<16x512xf32>
    %84 = arith.addf %83, %82 : vector<16x512xf32>
    %cst_55 = arith.constant 1.000000e+00 : f32
    %85 = vector.broadcast %cst_55 : f32 to vector<16x512xf32>
    %86 = arith.divf %85, %84 : vector<16x512xf32>
    %cst_56 = arith.constant 1.06140542 : f32
    %87 = vector.broadcast %cst_56 : f32 to vector<16x512xf32>
    %88 = arith.mulf %87, %86 : vector<16x512xf32>
    %cst_57 = arith.constant -1.45315206 : f32
    %89 = vector.broadcast %cst_57 : f32 to vector<16x512xf32>
    %90 = arith.addf %88, %89 : vector<16x512xf32>
    %91 = arith.mulf %90, %86 : vector<16x512xf32>
    %cst_58 = arith.constant 1.42141378 : f32
    %92 = vector.broadcast %cst_58 : f32 to vector<16x512xf32>
    %93 = arith.addf %91, %92 : vector<16x512xf32>
    %94 = arith.mulf %93, %86 : vector<16x512xf32>
    %cst_59 = arith.constant -0.284496725 : f32
    %95 = vector.broadcast %cst_59 : f32 to vector<16x512xf32>
    %96 = arith.addf %94, %95 : vector<16x512xf32>
    %97 = arith.mulf %96, %86 : vector<16x512xf32>
    %cst_60 = arith.constant 0.254829586 : f32
    %98 = vector.broadcast %cst_60 : f32 to vector<16x512xf32>
    %99 = arith.addf %97, %98 : vector<16x512xf32>
    %100 = arith.mulf %99, %86 : vector<16x512xf32>
    %cst_61 = arith.constant 0.000000e+00 : f32
    %101 = vector.broadcast %cst_61 : f32 to vector<16x512xf32>
    %102 = arith.subf %101, %80 : vector<16x512xf32>
    %103 = arith.mulf %102, %80 : vector<16x512xf32>
    %104 = math.exp %103 : vector<16x512xf32>
    %105 = arith.mulf %100, %104 : vector<16x512xf32>
    %cst_62 = arith.constant 1.000000e+00 : f32
    %106 = vector.broadcast %cst_62 : f32 to vector<16x512xf32>
    %107 = arith.subf %106, %105 : vector<16x512xf32>
    %108 = arith.mulf %79, %107 : vector<16x512xf32>
    %cst_63 = arith.constant 1.000000e+00 : f32
    %109 = vector.broadcast %cst_63 : f32 to vector<16x512xf32>
    %110 = arith.addf %109, %108 : vector<16x512xf32>
    %111 = arith.mulf %72, %110 : vector<16x512xf32>
    %c0_64 = arith.constant 0 : index
    %c0_65 = arith.constant 0 : index
    %c0_66 = arith.constant 0 : index
    %112 = vector.load %arg15[%c0_64, %c0_65, %c0_66] : memref<1x512x256xf32, #tpu.memory_space<vmem>>, vector<1x512x256xf32>
    %113 = vector.shape_cast %112 : vector<1x512x256xf32> to vector<512x256xf32>
    %cst_67 = arith.constant dense<0.000000e+00> : vector<16x256xf32>
    %114 = tpu.matmul %111, %113, %cst_67 {dimension_numbers = #tpu.dot_dimension_numbers<[1], [0], [0], [1], [0, 0, 1, 1], [], []>} : vector<16x512xf32>, vector<512x256xf32>, vector<16x256xf32> -> vector<16x256xf32>
    %c0_68 = arith.constant 0 : index
    %c0_69 = arith.constant 0 : index
    %c0_70 = arith.constant 0 : index
    %115 = vector.load %arg16[%c0_68, %c0_69, %c0_70] : memref<1x1x256xf32, #tpu.memory_space<vmem>>, vector<1x1x256xf32>
    %116 = vector.shape_cast %115 : vector<1x1x256xf32> to vector<1x256xf32>
    %117 = vector.broadcast %116 : vector<1x256xf32> to vector<16x256xf32>
    %118 = arith.addf %114, %117 : vector<16x256xf32>
    %119 = arith.addf %63, %118 : vector<16x256xf32>
    %c0_71 = arith.constant 0 : index
    %c0_72 = arith.constant 0 : index
    %c0_73 = arith.constant 0 : index
    %120 = vector.load %arg17[%c0_71, %c0_72, %c0_73] : memref<1x1x256xf32, #tpu.memory_space<vmem>>, vector<1x1x256xf32>
    %121 = vector.shape_cast %120 : vector<1x1x256xf32> to vector<1x256xf32>
    %c0_74 = arith.constant 0 : index
    %c0_75 = arith.constant 0 : index
    %c0_76 = arith.constant 0 : index
    %122 = vector.load %arg18[%c0_74, %c0_75, %c0_76] : memref<1x1x256xf32, #tpu.memory_space<vmem>>, vector<1x1x256xf32>
    %123 = vector.shape_cast %122 : vector<1x1x256xf32> to vector<1x256xf32>
    %cst_77 = arith.constant dense<0.000000e+00> : vector<16xf32>
    %124 = vector.multi_reduction <add>, %119, %cst_77 [1] : vector<16x256xf32> to vector<16xf32>
    %125 = vector.shape_cast %124 : vector<16xf32> to vector<16x1xf32>
    %cst_78 = arith.constant 2.560000e+02 : f32
    %126 = vector.broadcast %cst_78 : f32 to vector<16x1xf32>
    %127 = arith.divf %125, %126 : vector<16x1xf32>
    %128 = vector.broadcast %127 : vector<16x1xf32> to vector<16x256xf32>
    %129 = arith.subf %119, %128 : vector<16x256xf32>
    %130 = arith.mulf %129, %129 : vector<16x256xf32>
    %cst_79 = arith.constant dense<0.000000e+00> : vector<16xf32>
    %131 = vector.multi_reduction <add>, %130, %cst_79 [1] : vector<16x256xf32> to vector<16xf32>
    %132 = vector.shape_cast %131 : vector<16xf32> to vector<16x1xf32>
    %cst_80 = arith.constant 2.560000e+02 : f32
    %133 = vector.broadcast %cst_80 : f32 to vector<16x1xf32>
    %134 = arith.divf %132, %133 : vector<16x1xf32>
    %135 = vector.broadcast %127 : vector<16x1xf32> to vector<16x256xf32>
    %136 = arith.subf %119, %135 : vector<16x256xf32>
    %cst_81 = arith.constant 9.99999974E-6 : f32
    %137 = vector.broadcast %cst_81 : f32 to vector<16x1xf32>
    %138 = arith.addf %134, %137 : vector<16x1xf32>
    %139 = math.rsqrt %138 : vector<16x1xf32>
    %140 = vector.broadcast %139 : vector<16x1xf32> to vector<16x256xf32>
    %141 = arith.mulf %136, %140 : vector<16x256xf32>
    %142 = vector.broadcast %121 : vector<1x256xf32> to vector<16x256xf32>
    %143 = arith.mulf %141, %142 : vector<16x256xf32>
    %144 = vector.broadcast %123 : vector<1x256xf32> to vector<16x256xf32>
    %145 = arith.addf %143, %144 : vector<16x256xf32>
    %c0_82 = arith.constant 0 : index
    %c0_83 = arith.constant 0 : index
    %146 = vector.load %arg22[%c0_82, %c0_83] : memref<16x256xf32, #tpu.memory_space<vmem>>, vector<16x256xf32>
    tpu.vector_store %arg22[%c0_82, %c0_83], %145 {strides = array<i32>} : memref<16x256xf32, #tpu.memory_space<vmem>>, vector<16x256xf32>,
    %c1_i32 = arith.constant 1 : i32
    %147 = arith.cmpi eq, %arg1, %c1_i32 : i32
    %148 = arith.extui %147 : i1 to i32
    %c0_i32_84 = arith.constant 0 : i32
    %149 = arith.cmpi ne, %148, %c0_i32_84 : i32
    scf.if %149 {
      %150 = vector.extract_strided_slice %145 {offsets = [0, 0], sizes = [1, 256], strides = [1, 1]} : vector<16x256xf32> to vector<1x256xf32>
      %c0_85 = arith.constant 0 : index
      %c0_86 = arith.constant 0 : index
      %151 = vector.load %arg19[%c0_85, %c0_86] : memref<256x128xf32, #tpu.memory_space<vmem>>, vector<256x128xf32>
      %cst_87 = arith.constant dense<0.000000e+00> : vector<1x128xf32>
      %152 = tpu.matmul %150, %151, %cst_87 {dimension_numbers = #tpu.dot_dimension_numbers<[1], [0], [0], [1], [0, 0, 1, 1], [], []>} : vector<1x256xf32>, vector<256x128xf32>, vector<1x128xf32> -> vector<1x128xf32>
      %c0_88 = arith.constant 0 : index
      %c0_89 = arith.constant 0 : index
      %153 = vector.load %arg20[%c0_88, %c0_89] : memref<1x128xf32, #tpu.memory_space<vmem>>, vector<1x128xf32>
      %154 = arith.addf %152, %153 : vector<1x128xf32>
      %c0_90 = arith.constant 0 : index
      %c0_91 = arith.constant 0 : index
      %c0_92 = arith.constant 0 : index
      %155 = vector.load %arg21[%c0_90, %c0_91, %c0_92] : memref<1x1x128xf32, #tpu.memory_space<vmem>>, vector<1x1x128xf32>
      %156 = vector.shape_cast %155 : vector<1x1x128xf32> to vector<1x128xf32>
      %157 = vector.shape_cast %154 : vector<1x128xf32> to vector<1x1x128xf32>
      tpu.vector_store %arg21[%c0_90, %c0_91, %c0_92], %157 {strides = array<i32>} : memref<1x1x128xf32, #tpu.memory_space<vmem>>, vector<1x1x128xf32>,
    } else {
    }
    return
  }
  func.func @transform_0(%arg0: i32, %arg1: i32) -> (i32, i32, i32) {
    %c0_i32 = arith.constant 0 : i32
    %c0_i32_0 = arith.constant 0 : i32
    %c0_i32_1 = arith.constant 0 : i32
    return %arg0, %c0_i32, %c0_i32_0 : i32, i32, i32
  }
  func.func @transform_1(%arg0: i32, %arg1: i32) -> (i32, i32, i32) {
    %c0_i32 = arith.constant 0 : i32
    %c0_i32_0 = arith.constant 0 : i32
    %c0_i32_1 = arith.constant 0 : i32
    return %arg0, %c0_i32, %c0_i32_0 : i32, i32, i32
  }
  func.func @transform_2(%arg0: i32, %arg1: i32) -> (i32, i32) {
    %c0_i32 = arith.constant 0 : i32
    %c0_i32_0 = arith.constant 0 : i32
    %c0_i32_1 = arith.constant 0 : i32
    return %c0_i32, %c0_i32_0 : i32, i32
  }
  func.func @transform_3(%arg0: i32, %arg1: i32) -> (i32, i32) {
    %c0_i32 = arith.constant 0 : i32
    %c0_i32_0 = arith.constant 0 : i32
    %c0_i32_1 = arith.constant 0 : i32
    return %c0_i32, %c0_i32_0 : i32, i32
  }
  func.func @transform_4(%arg0: i32, %arg1: i32) -> (i32, i32, i32, i32) {
    %c0_i32 = arith.constant 0 : i32
    %c0_i32_0 = arith.constant 0 : i32
    %c0_i32_1 = arith.constant 0 : i32
    %c0_i32_2 = arith.constant 0 : i32
    return %arg1, %c0_i32, %c0_i32_0, %c0_i32_1 : i32, i32, i32, i32
  }
  func.func @transform_5(%arg0: i32, %arg1: i32) -> (i32, i32, i32, i32) {
    %c0_i32 = arith.constant 0 : i32
    %c0_i32_0 = arith.constant 0 : i32
    %c0_i32_1 = arith.constant 0 : i32
    %c0_i32_2 = arith.constant 0 : i32
    return %arg1, %c0_i32, %c0_i32_0, %c0_i32_1 : i32, i32, i32, i32
  }
  func.func @transform_6(%arg0: i32, %arg1: i32) -> (i32, i32, i32, i32) {
    %c0_i32 = arith.constant 0 : i32
    %c0_i32_0 = arith.constant 0 : i32
    %c0_i32_1 = arith.constant 0 : i32
    %c0_i32_2 = arith.constant 0 : i32
    return %arg1, %c0_i32, %c0_i32_0, %c0_i32_1 : i32, i32, i32, i32
  }
  func.func @transform_7(%arg0: i32, %arg1: i32) -> (i32, i32, i32, i32) {
    %c0_i32 = arith.constant 0 : i32
    %c0_i32_0 = arith.constant 0 : i32
    %c0_i32_1 = arith.constant 0 : i32
    %c0_i32_2 = arith.constant 0 : i32
    return %arg1, %c0_i32, %c0_i32_0, %c0_i32_1 : i32, i32, i32, i32
  }
  func.func @transform_8(%arg0: i32, %arg1: i32) -> (i32, i32, i32) {
    %c0_i32 = arith.constant 0 : i32
    %c0_i32_0 = arith.constant 0 : i32
    %c0_i32_1 = arith.constant 0 : i32
    return %arg1, %c0_i32, %c0_i32_0 : i32, i32, i32
  }
  func.func @transform_9(%arg0: i32, %arg1: i32) -> (i32, i32, i32) {
    %c0_i32 = arith.constant 0 : i32
    %c0_i32_0 = arith.constant 0 : i32
    %c0_i32_1 = arith.constant 0 : i32
    return %arg1, %c0_i32, %c0_i32_0 : i32, i32, i32
  }
  func.func @transform_10(%arg0: i32, %arg1: i32) -> (i32, i32, i32) {
    %c0_i32 = arith.constant 0 : i32
    %c0_i32_0 = arith.constant 0 : i32
    %c0_i32_1 = arith.constant 0 : i32
    return %arg1, %c0_i32, %c0_i32_0 : i32, i32, i32
  }
  func.func @transform_11(%arg0: i32, %arg1: i32) -> (i32, i32, i32) {
    %c0_i32 = arith.constant 0 : i32
    %c0_i32_0 = arith.constant 0 : i32
    %c0_i32_1 = arith.constant 0 : i32
    return %arg1, %c0_i32, %c0_i32_0 : i32, i32, i32
  }
  func.func @transform_12(%arg0: i32, %arg1: i32) -> (i32, i32, i32) {
    %c0_i32 = arith.constant 0 : i32
    %c0_i32_0 = arith.constant 0 : i32
    %c0_i32_1 = arith.constant 0 : i32
    return %arg1, %c0_i32, %c0_i32_0 : i32, i32, i32
  }
  func.func @transform_13(%arg0: i32, %arg1: i32) -> (i32, i32, i32) {
    %c0_i32 = arith.constant 0 : i32
    %c0_i32_0 = arith.constant 0 : i32
    %c0_i32_1 = arith.constant 0 : i32
    return %arg1, %c0_i32, %c0_i32_0 : i32, i32, i32
  }
  func.func @transform_14(%arg0: i32, %arg1: i32) -> (i32, i32, i32) {
    %c0_i32 = arith.constant 0 : i32
    %c0_i32_0 = arith.constant 0 : i32
    %c0_i32_1 = arith.constant 0 : i32
    return %arg1, %c0_i32, %c0_i32_0 : i32, i32, i32
  }
  func.func @transform_15(%arg0: i32, %arg1: i32) -> (i32, i32, i32) {
    %c0_i32 = arith.constant 0 : i32
    %c0_i32_0 = arith.constant 0 : i32
    %c0_i32_1 = arith.constant 0 : i32
    return %arg1, %c0_i32, %c0_i32_0 : i32, i32, i32
  }
  func.func @transform_16(%arg0: i32, %arg1: i32) -> (i32, i32, i32) {
    %c0_i32 = arith.constant 0 : i32
    %c0_i32_0 = arith.constant 0 : i32
    %c0_i32_1 = arith.constant 0 : i32
    return %arg1, %c0_i32, %c0_i32_0 : i32, i32, i32
  }
  func.func @transform_17(%arg0: i32, %arg1: i32) -> (i32, i32) {
    %c0_i32 = arith.constant 0 : i32
    %c0_i32_0 = arith.constant 0 : i32
    %c0_i32_1 = arith.constant 0 : i32
    return %c0_i32, %c0_i32_0 : i32, i32
  }
  func.func @transform_18(%arg0: i32, %arg1: i32) -> (i32, i32) {
    %c0_i32 = arith.constant 0 : i32
    %c0_i32_0 = arith.constant 0 : i32
    %c0_i32_1 = arith.constant 0 : i32
    return %c0_i32, %c0_i32_0 : i32, i32
  }
  func.func @transform_19(%arg0: i32, %arg1: i32) -> (i32, i32, i32) {
    %c0_i32 = arith.constant 0 : i32
    %c0_i32_0 = arith.constant 0 : i32
    %c0_i32_1 = arith.constant 0 : i32
    return %arg0, %c0_i32, %c0_i32_0 : i32, i32, i32
  }
}

</mosaic_0001>

<bundles_post_ra>
// kernel: tpu_custom_call.1
= control target key start
LH: loop header
LB: loop body
LE: loop exit
PB: predicated region body
PF: predicated region fallthrough
CT: control target
= control target key end

     0   :  { %s5730_s0 = inlined_call_operand.vmem [shape: f32[2,15,256], index: 0, kind: input, shape index: {}]   ;;  %s5731_s1 = inlined_call_operand.vmem [shape: f32[2,1,128], index: 1, kind: input, shape index: {}]   ;;  %s5732_s2 = inlined_call_operand.hbm [shape: f32[128,256], index: 2, kind: input, shape index: {}]   ;;  %s5733_s3 = inlined_call_operand.vmem [shape: f32[1,256], index: 3, kind: input, shape index: {}]   ;;  %s5734_s4 = inlined_call_operand.hbm [shape: f32[2,2,256,128], index: 4, kind: input, shape index: {}]   ;;  %s5735_s5 = inlined_call_operand.hbm [shape: f32[2,2,256,128], index: 5, kind: input, shape index: {}]   ;;  %s5736_s6 = inlined_call_operand.hbm [shape: f32[2,2,256,128], index: 6, kind: input, shape index: {}]   ;;  %s5737_s7 = inlined_call_operand.hbm [shape: f32[2,2,128,256], index: 7, kind: input, shape index: {}]   ;;  %s5738_s8 = inlined_call_operand.vmem [shape: f32[2,1,256], index: 8, kind: input, shape index: {}]   ;;  %s5739_s9 = inlined_call_operand.vmem [shape: f32[2,1,256], index: 9, kind: input, shape index: {}]   ;;  %s5740_s10 = inlined_call_operand.vmem [shape: f32[2,1,256], index: 10, kind: input, shape index: {}]   ;;  %s5741_s11 = inlined_call_operand.hbm [shape: f32[2,256,512], index: 11, kind: input, shape index: {}]   ;;  %s5742_s12 = inlined_call_operand.vmem [shape: f32[2,1,512], index: 12, kind: input, shape index: {}]   ;;  %s5743_s13 = inlined_call_operand.hbm [shape: f32[2,512,256], index: 13, kind: input, shape index: {}]   ;;  %s5744_s14 = inlined_call_operand.vmem [shape: f32[2,1,256], index: 14, kind: input, shape index: {}]   ;;  %s5745_s15 = inlined_call_operand.vmem [shape: f32[2,1,256], index: 15, kind: input, shape index: {}]   ;;  %s5746_s16 = inlined_call_operand.vmem [shape: f32[2,1,256], index: 16, kind: input, shape index: {}]   ;;  %s5747_s17 = inlined_call_operand.hbm [shape: f32[256,128], index: 17, kind: input, shape index: {}]   ;;  %s5748_s18 = inlined_call_operand.vmem [shape: f32[1,128], index: 18, kind: input, shape index: {}]   ;;  %s5749_s19 = inlined_call_operand.hbm [shape: f32[2,1,128], index: 19, kind: output, shape index: {}]  }
   0x1   :  { %5776 = sst [smem:[#allocation42_spill]] %s5730_s0 }
   0x2   :  { %5777 = sst [smem:[#allocation43_spill]] %s5731_s1 }
   0x3   :  { %5778 = sst [smem:[#allocation44_spill]] %s5732_s2 }
   0x4   :  { %5779 = sst [smem:[#allocation45_spill]] %s5733_s3 }
   0x5   :  { %5780 = sst [smem:[#allocation46_spill]] %s5734_s4 }
   0x6   :  { %5781 = sst [smem:[#allocation47_spill]] %s5735_s5 }
   0x7   :  { %5782 = sst [smem:[#allocation48_spill]] %s5736_s6 }
   0x8   :  { %5783 = sst [smem:[#allocation49_spill]] %s5737_s7 }
   0x9   :  { %5784 = sst [smem:[#allocation50_spill]] %s5738_s8 }
   0xa   :  { %5785 = sst [smem:[#allocation51_spill]] %s5739_s9 }
   0xb   :  { %5786 = sst [smem:[#allocation52_spill]] %s5740_s10 }
   0xc   :  { %5787 = sst [smem:[#allocation53_spill]] %s5741_s11 }
   0xd   :  { %5788 = sst [smem:[#allocation54_spill]] %s5742_s12 }
   0xe   :  { %5789 = sst [smem:[#allocation55_spill]] %s5743_s13 }
   0xf   :  { %5790 = sst [smem:[#allocation56_spill]] %s5744_s14 }
  0x10   :  { %5791 = sst [smem:[#allocation57_spill]] %s5745_s15 }
  0x11   :  { %5792 = sst [smem:[#allocation58_spill]] %s5746_s16 }
  0x12   :  { %5793 = sst [smem:[#allocation59_spill]] %s5747_s17 }
  0x13   :  { %5794 = sst [smem:[#allocation60_spill]] %s5748_s18 }
  0x14   :  { %5795 = sst [smem:[#allocation61_spill]] %s5749_s19 }
  0x15   :  { %24 = vsyncpa [#allocation4], 0 }
  0x16   :  { %25 = vsyncpa [#allocation7], 0 }
  0x17   :  { %27 = vsyncpa [#allocation7 + $0x1], 0 }
  0x18   :  { %28 = vsyncpa [#allocation10], 0 }
  0x19   :  { %30 = vsyncpa [#allocation10 + $0x1], 0 }
  0x1a   :  { %31 = vsyncpa [#allocation13], 0 }
  0x1b   :  { %33 = vsyncpa [#allocation13 + $0x1], 0 }
  0x1c   :  { %34 = vsyncpa [#allocation16], 0 }
  0x1d   :  { %35 = vsyncpa [#allocation5], 0 }
  0x1e   :  { %37 = vsyncpa [#allocation5 + $0x1], 0  ;;  %s4206_s0 = smov 0   ;;  %s4208_s30 = smov 0  }
  0x1f   :  { %s4210_s20 = smov 0   ;;  %s4212_s21 = smov 0  }
  0x20   :  { %s4214_s1 = smov 0   ;;  %s4216_s22 = smov 0  }
  0x21   :  { %s4218_s2 = smov 0   ;;  %s4220_s23 = smov 0  }
  0x22   :  { %s4222_s24 = smov 0   ;;  %s4224_s25 = smov 0  }
  0x23   :  { %s4226_s3 = smov 0  }
  0x24 LB: > { %5796 = sst [smem:[#allocation24_spill]] %s4054_s0  ;;  %s52_s26 = sadd.s32 1, %s4086_s24  ;;  %s4094_s3 = sphi %s4226_s3, %s43_s3   ;;  %s4090_s25 = sphi %s4224_s25, %s5903_s25   ;;  %s4086_s24 = sphi %s4222_s24, %s5902_s24   ;;  %s4082_s23 = sphi %s4220_s23, %s5901_s23   ;;  %s4078_s2 = sphi %s4218_s2, %s5900_s2   ;;  %s4074_s22 = sphi %s4216_s22, %s5899_s22   ;;  %s4070_s1 = sphi %s4214_s1, %s5898_s1   ;;  %s4066_s21 = sphi %s4212_s21, %s5906_s21   ;;  %s4062_s20 = sphi %s4210_s20, %s5896_s20   ;;  %s4058_s30 = sphi %s4208_s30, %s5905_s30   ;;  %s4054_s0 = sphi %s4206_s0, %s5904_s0  }
  0x25   : > { %5797 = sst [smem:[#allocation25_spill]] %s4062_s20  ;;  %s55_s27 = sadd.s32 1, %s4090_s25 }
  0x26   : > { %5798 = sst [smem:[#allocation26_spill]] %s4070_s1  ;;  %p53_p0 = scmp.ge.s32.totalorder %s52_s26, 2 }
  0x27   : > { %5799 = sst [smem:[#allocation27_spill]] %s4074_s22  ;;  %s156_s28 = sadd.s32 1, %s4074_s22 }
  0x28   : > { %5800 = sst [smem:[#allocation28_spill]] %s4078_s2  ;;  %p163_p1 = scmp.ne.s32.totalorder %s4074_s22, %s4070_s1 }
  0x29   : > { %5801 = sst [smem:[#allocation29_spill]] %s4082_s23  ;;  %p164_p2 = scmp.eq.s32.totalorder %s4094_s3, 0 }
  0x2a   : > { %5802 = sst [smem:[#allocation30_spill]] %s4086_s24  ;;  %s5908_s26 = smov (%p53_p0, %s52_s26), 0 }
  0x2b   : > { %5803 = sst [smem:[#allocation31_spill]] %s4090_s25  ;;  %s5910_s27 = smov (!%p53_p0, %s55_s27), %s4090_s25 }
  0x2c   : > { %5804 = sst [smem:[#allocation32_spill]] %s4094_s3  ;;  %s153_s29 = ssub.s32 %s4086_s24, %s5908_s26 }
  0x2d   : > { %5805 = sst [smem:[#allocation33_spill]] %s5908_s26  ;;  %p4272_p3 = por %p164_p2, %p163_p1 }
  0x2e   : > { %p57_p4 = scmp.ge.s32.totalorder %s5910_s27, 2  ;;  %p154_p5 = scmp.eq.s32.totalorder %s153_s29, 0 }
  0x2f   : > { %p3556_p7 = scmp.lt.s32.totalorder %s4094_s3, 4  ;;  %s4289_s14 = sand.u32 1, %s4094_s3  }
  0x30   : > { %s5912_s27 = smov (%p57_p4, %s5910_s27), 0  ;;  %s623_s26 = sand.u32 1, %s4074_s22  }
  0x31   : > { %5807 = sst [smem:[#allocation34_spill]] %s5912_s27  ;;  %s533_s16 = ssub.s32 %s4090_s25, %s5912_s27 }
  0x32   : > { %s4279_s18 = scalar_select %p154_p5, %s4074_s22, %s156_s28  }
  0x33   : > { %p4283_p6 = scmp.eq.s32.totalorder %s533_s16, 0  ;;  %s4292_s12 = sshll.u32 %s623_s26, 9 }
  0x34   : > { %5808 = sst [smem:[#allocation35_spill]] %s4279_s18  ;;  %s4295_s29 = sshll.u32 %s4086_s24, 9 }
  0x35   : > { %s5810_s4 = sld [smem:[#allocation46_spill]]  ;;  %s625_s27 = scalar_lea.vmem [#allocation6], %s4292_s12 }
  0x36   : > { %s633_s25 = sshll.u32 %s625_s27, 4  ;;  %p4304_p8 = pnand %p3556_p7, %p4272_p3  ;;  %s634_s25 = int_to_ptr.vmem [resolvable:$true] %s633_s25 }
  0x37   : > { %s5812_s6 = sld [smem:[#allocation48_spill]]  ;;  %s5757_s28 = scalar_lea.sflag [#allocation7], %s4289_s14 }
  0x38   : > { %s5762_s2 = smov 8   ;;  %s669_s27 = scalar_lea.vmem [#allocation9], %s4292_s12 }
  0x39   : > { %s5758_s8 = scalar_lea.sflag [#allocation10], %s4289_s14  ;;  %s3463_s9 = sshll.u32 %s623_s26, 10 }
  0x3a   : > { %s5813_s11 = sld [smem:[#allocation53_spill]]  ;;  %s4099_s26 = smov 32  }
  0x3b   : > { %s630_s16 = scalar_lea.hbm %s5810_s4, %s4295_s29  ;;  %s5759_s4 = smov 128  }
  0x3c   : > { %s631_s10 = sshll.u32 %s630_s16, 4  ;;  %s677_s16 = sshll.u32 %s669_s27, 4  ;;  %s632_s10 = int_to_ptr.hbm [resolvable:$true] %s631_s10  ;;  %s678_s16 = int_to_ptr.vmem [resolvable:$true] %s677_s16 }
  0x3d   : > { %s674_s18 = scalar_lea.hbm %s5812_s6, %s4295_s29  ;;  %s3499_s6 = sshll.u32 %s4086_s24, 10 }
  0x3e   : > { %3534 = dma.hbm_to_vmem [thread:$0]  (!%p4304_p8), %s632_s10, 8192, %s634_s25, %s5757_s28, %s5759_s4, %s5759_s4, %s5762_s2  }
  0x3f   : > { %s675_s19 = sshll.u32 %s674_s18, 4  ;;  %s734_s25 = scalar_lea.vmem [#allocation12], %s3463_s9  ;;  %s676_s19 = int_to_ptr.hbm [resolvable:$true] %s675_s19 }
  0x40   : > { %3540 = dma.hbm_to_vmem [thread:$0]  (!%p4304_p8), %s676_s19, 8192, %s678_s16, %s5758_s8, %s5759_s4, %s5759_s4, %s5762_s2  }
  0x41   : > { %s739_s10 = scalar_lea.hbm %s5813_s11, %s3499_s6  ;;  %s742_s18 = sshll.u32 %s734_s25, 4  ;;  %s743_s18 = int_to_ptr.vmem [resolvable:$true] %s742_s18 }
  0x42   : > { %s740_s27 = sshll.u32 %s739_s10, 4  ;;  %s5761_s28 = scalar_lea.sflag [#allocation13], %s4289_s14  ;;  %s741_s27 = int_to_ptr.hbm [resolvable:$true] %s740_s27 }
  0x43   : > { %s4098_s19 = smov 512   ;;  %s5814_s13 = sld [smem:[#allocation55_spill]] }
  0x44   : > { %3546 = dma.hbm_to_vmem [thread:$0]  (!%p4304_p8), %s741_s27, 16384, %s743_s18, %s5761_s28, %s4098_s19, %s4098_s19, %s4099_s26  }
  0x45   : > { %s763_s10 = scalar_lea.vmem [#allocation14], %s3463_s9  ;;  %s4347_s4 = sadd.s32 4294967295, %s4094_s3  }
  0x46   : > { %s4341_s25 = sshll.u32 %s763_s10, 4  ;;  %s3446_s18 = sadd.s32 4294967294, %s4094_s3  }
  0x47   : > { %5815 = sst [smem:[#allocation36_spill]] %s4341_s25  ;;  %p169_p9 = scmp.ne.s32.totalorder %s4070_s1, %s4066_s21 }
  0x48   : > { %p170_p10 = scmp.eq.s32.totalorder %s4347_s4, 0  ;;  %s536_s27 = sadd.s32 1, %s4062_s20 }
  0x49   : > { %s768_s16 = scalar_lea.hbm %s5814_s13, %s3499_s6  ;;  %p546_p12 = scmp.ne.s32.totalorder %s4062_s20, %s4058_s30 }
  0x4a   : > { %s769_s8 = sshll.u32 %s768_s16, 4  ;;  %p4361_p11 = por %p170_p10, %p169_p9  ;;  %s4344_s8 = int_to_ptr.hbm [resolvable:$true] %s769_s8 }
  0x4b   : > { %s4357_s6 = scalar_select %p4283_p6, %s4062_s20, %s536_s27  }
  0x4c   : > { %p547_p13 = scmp.eq.s32.totalorder %s4347_s4, 3  ;;  %p552_p0 = scmp.ne.s32.totalorder %s4058_s30, %s4054_s0 }
  0x4d   : > { %5816 = sst [smem:[#allocation37_spill]] %s4357_s6  ;;  %p553_p1 = scmp.eq.s32.totalorder %s3446_s18, 3 }
  0x4e   : > { %p3447_p2 = scmp.ge.s32.totalorder %s4094_s3, 1  ;;  %p4371_p3 = por %p547_p13, %p546_p12 }
  0x4f   : > { %p560_p4 = scmp.lt.s32.totalorder %s4094_s3, 5  ;;  %p4376_p5 = por %p553_p1, %p552_p0 }
  0x50   : > { %s5818_s19 = scalar_select %p4371_p3, 1, 0 }
  0x51   : > { %s5820_s15 = scalar_select %p4376_p5, 1, 0 }
  0x52   : > { %5819 = sst [smem:[#allocation38_spill]] %s5818_s19  ;;  %p4380_p6 = pnand %p3447_p2, %p560_p4 }
  0x53   : > { %5821 = sst [smem:[#allocation39_spill]] %s5820_s15  ;;  %s4100_s10 = smov [#allocation3]  }
  0x54   : > { %s5823_s23 = sld [smem:[#allocation44_spill]]  ;;  %p3524_p7 = pneg %p4380_p6 }
  0x55   : > { %s573_s18 = sshll.u32 %s4100_s10, 4  ;;  %s5824_s17 = sld [smem:[#allocation59_spill]]  ;;  %s574_s18 = int_to_ptr.vmem [resolvable:$true] %s573_s18 }
  0x56   : > { %p3525_p9 = pnand %p3524_p7, %p170_p10  ;;  %s4101_s26 = smov 256  }
  0x57   : > { %s4102_s7 = smov 16   ;;  %s5825_s5 = sld [smem:[#allocation47_spill]] }
  0x58   : > { %s5826_s28 = sld [smem:[#allocation36_spill]]  ;;  %s5827_s13 = smov 8  }
  0x59   : > { %s647_s6 = scalar_lea.vmem [#allocation8], %s4292_s12  ;;  %s5830_s10 = sld [smem:[#allocation49_spill]] }
  0x5a   : > { %s571_s16 = sshll.u32 %s5823_s23, 4  ;;  %s4103_s23 = smov [#allocation15]   ;;  %s572_s16 = int_to_ptr.hbm [resolvable:$true] %s571_s16 }
  0x5b   : > { %s588_s2 = sshll.u32 %s5824_s17, 4  ;;  %s590_s25 = sshll.u32 %s4103_s23, 4  ;;  %s589_s2 = int_to_ptr.hbm [resolvable:$true] %s588_s2  ;;  %s591_s25 = int_to_ptr.vmem [resolvable:$true] %s590_s25 }
  0x5c   : > { %3527 = dma.hbm_to_vmem [thread:$0]  (!%p3525_p9), %s572_s16, 4096, %s574_s18, [#allocation4], %s4101_s26, %s4101_s26, %s4102_s7  }
  0x5d   : > { %s652_s27 = scalar_lea.hbm %s5825_s5, %s4295_s29  ;;  %s5828_s17 = smov 128  }
  0x5e   : > { %3530 = dma.hbm_to_vmem [thread:$0]  (!%p3525_p9), %s589_s2, 4096, %s591_s25, [#allocation16], %s5828_s17, %s5828_s17, %s5827_s13  }
  0x5f   : > { %s653_s24 = sshll.u32 %s652_s27, 4  ;;  %s655_s16 = sshll.u32 %s647_s6, 4  ;;  %s654_s24 = int_to_ptr.hbm [resolvable:$true] %s653_s24  ;;  %s656_s16 = int_to_ptr.vmem [resolvable:$true] %s655_s16 }
  0x60   : > { %s5829_s18 = scalar_lea.sflag [#allocation7], %s4289_s14  ;;  %s696_s20 = scalar_lea.hbm %s5830_s10, %s4295_s29 }
  0x61   : > { %3537 = dma.hbm_to_vmem [thread:$0]  (!%p4304_p8), %s654_s24, 8192, %s656_s16, %s5829_s18, %s5828_s17, %s5828_s17, %s5827_s13  }
  0x62   : > { %s697_s5 = sshll.u32 %s696_s20, 4  ;;  %s691_s15 = scalar_lea.vmem [#allocation11], %s4292_s12  ;;  %s698_s5 = int_to_ptr.hbm [resolvable:$true] %s697_s5 }
  0x63   : > { %s699_s0 = sshll.u32 %s691_s15, 4  ;;  %s5831_s2 = scalar_lea.sflag [#allocation10], %s4289_s14  ;;  %s700_s0 = int_to_ptr.vmem [resolvable:$true] %s699_s0 }
  0x64   : > { %3543 = dma.hbm_to_vmem [thread:$0]  (!%p4304_p8), %s698_s5, 8192, %s700_s0, %s5831_s2, %s4101_s26, %s4101_s26, %s4102_s7  }
  0x65   : > { %s5832_s25 = scalar_lea.sflag [#allocation13], %s4289_s14  ;;  %s5833_s6 = int_to_ptr.vmem [resolvable:$true] %s5826_s28 }
  0x66   : > { %3549 = dma.hbm_to_vmem [thread:$0]  (!%p4304_p8), %s4344_s8, 16384, %s5833_s6, %s5832_s25, %s4101_s26, %s4101_s26, %s4102_s7  }
  0x67   : > { %804 = sbr.rel (%p4380_p6) target bundleno = 2290 (0x8f2), region = 96 }
  0x6c   : > { %4029 = dma.done.wait (%p170_p10), [#allocation4], 4096  }
  0x6d   : > { %4031 = vsyncadd (%p170_p10), [#allocation4], 4294963200  ;;  %s811_s12 = sand.u32 1, %s4347_s4   ;;  %s813_s13 = sand.u32 1, %s4070_s1  }
  0x6e   : > { %s3471_s17 = sshll.u32 %s813_s13, 9  ;;  %s812_s5 = scalar_lea.sflag [#allocation7], %s811_s12 }
  0x6f   : > { %s4433_s0 = scalar_lea.vmem [#allocation6], %s3471_s17 }
  0x70   : > { %4033 = dma.done.wait (%p4361_p11), %s812_s5, 16384  }
  0x71   : > { %4035 = vsyncadd (%p4361_p11), %s812_s5, 4294950912  ;;  %s4439_s14 = scalar_lea.vmem [#allocation8], %s3471_s17  ;;  %s832_s20 = scalar_lea.sflag [#allocation10], %s811_s12 }
  0x72   : > { %s4441_s22 = scalar_lea.vmem [#allocation9], %s3471_s17 }
  0x73   : > { %4037 = dma.done.wait (%p4361_p11), %s832_s20, 16384  }
  0x74   : > { %4039 = vsyncadd (%p4361_p11), %s832_s20, 4294950912  ;;  %s3475_s24 = sshll.u32 %s813_s13, 10  ;;  %s4447_s29 = scalar_lea.vmem [#allocation11], %s3471_s17 }
  0x75   : > { %s852_s8 = scalar_lea.sflag [#allocation13], %s811_s12  ;;  %s4449_s15 = scalar_lea.vmem [#allocation12], %s3475_s24 }
  0x76   : > { %5834 = sst [smem:[#allocation40_spill]] %s4449_s15 }
  0x77   : > { %4041 = dma.done.wait (%p4361_p11), %s852_s8, 32768  }
  0x78   : > { %4043 = vsyncadd (%p4361_p11), %s852_s8, 4294934528  ;;  %s4455_s21 = scalar_lea.vmem [#allocation14], %s3475_s24 }
  0x79   : > { %5835 = sst [smem:[#allocation41_spill]] %s4455_s21 }
  0x7a   : > { %4045 = dma.done.wait (%p170_p10), [#allocation16], 4096  }
  0x7b   : > { %4047 = vsyncadd (%p170_p10), [#allocation16], 4294963200  ;;  %s5836_s26 = sld [smem:[#allocation29_spill]]  ;;  %s5847_s18 = sand.u32 1, %s4058_s30  }
  0x7c   : > { %s5837_s7 = sld [smem:[#allocation28_spill]]  ;;  %s4511_s11 = scalar_lea.vmem [#allocation17], %s5847_s18 }
  0x7d   : > { %s5839_s2 = sld [smem:[#allocation42_spill]] }
  0x7e   : > { %s5843_s28 = sld [smem:[#allocation54_spill]] }
  0x7f   : > { %s5844_s3 = sld [smem:[#allocation56_spill]] }
  0x80   : > { %s5845_s5 = sld [smem:[#allocation57_spill]] }
  0x81   : > { %p986_p8 = scmp.lt.s32.totalorder %s5836_s26, 1  ;;  %s5846_s8 = sld [smem:[#allocation58_spill]] }
  0x82   : > { %p994_p12 = scmp.lt.s32.totalorder %s5837_s7, 1  ;;  %p3487_p10 = scmp.ne.s32.totalorder %s5837_s7, 0 }
  0x83   : > { %s5914_s26 = smov (!%p986_p8, %s5836_s26), 1  ;;  %s5850_s4 = sld [smem:[#allocation45_spill]] (!%p3487_p10) }
  0x84   : > { %s995_s9 = scalar_select %p994_p12, %s5837_s7, 1 }
  0x85   : > { %s3501_s27 = sshll.u32 %s5914_s26, 5  ;;  %s5848_s7 = sld [smem:[#allocation43_spill]] (!%p3487_p10) }
  0x86   : > { %s4476_s25 = scalar_lea.vmem %s5839_s2, %s3501_s27  ;;  %s4478_s6 = sshll.u32 %s995_s9, 1 }
  0x87   : > { %s5842_s27 = sld [smem:[#allocation52_spill]]  ;;  %s3483_s10 = sshll.u32 %s995_s9, 2 }
  0x88   : > { %s4495_s1 = scalar_lea.vmem %s5843_s28, %s3483_s10  ;;  %s1013_s19 = scalar_lea.vmem %s5844_s3, %s4478_s6 }
  0x89   : > { %s1017_s15 = scalar_lea.vmem %s5845_s5, %s4478_s6  ;;  %s1021_s16 = scalar_lea.vmem %s5846_s8, %s4478_s6 }
  0x8a   : > { %1025 = sbr.rel (%p3487_p10) target bundleno = 306 (0x132), region = 132 }
  0x8b   : > { %s5849_s28 = scalar_lea.vmem (!%p3487_p10), %s5848_s7, %s5914_s26 }
  0x8d   : > { %s1005_s23 = scalar_lea.vmem %s5842_s27, %s4478_s6 }
  0x8f   : > { %v1057_v0 = vld [vmem:[#allocation3 + $0xf0] sm:$0xff]  ;;  %v1058_v1 = vld [vmem:[#allocation3 + $0xf8] sm:$0xff]  ;;  %v1055_v2 = vld [vmem:[#allocation3 + $0xe0] sm:$0xff]  ;;  %vm1113_vm0 = vcmask 1040384  }
  0x90   : > { %1065 = vmatpush.msra.mxu0 %v1057_v0  ;;  %1085 = vmatpush.msra.mxu1 %v1058_v1  ;;  %v1056_v3 = vld [vmem:[#allocation3 + $0xe8] sm:$0xff]  ;;  %v1053_v4 = vld [vmem:[#allocation3 + $0xd0] sm:$0xff]  ;;  %v1054_v5 = vld [vmem:[#allocation3 + $0xd8] sm:$0xff] }
  0x91   : > { %v1051_v6 = vld [vmem:[#allocation3 + $0xc0] sm:$0xff]  ;;  %v1052_v7 = vld [vmem:[#allocation3 + $0xc8] sm:$0xff]  ;;  %v1049_v8 = vld [vmem:[#allocation3 + $0xb0] sm:$0xff] }
  0x92   : > { %1066 = vmatpush.msra.mxu0 %v1055_v2  ;;  %1086 = vmatpush.msra.mxu1 %v1056_v3  ;;  %v1050_v9 = vld [vmem:[#allocation3 + $0xb8] sm:$0xff]  ;;  %v1047_v10 = vld [vmem:[#allocation3 + $0xa0] sm:$0xff]  ;;  %v1048_v11 = vld [vmem:[#allocation3 + $0xa8] sm:$0xff] }
  0x93   : > { %v1045_v12 = vld [vmem:[#allocation3 + $0x90] sm:$0xff]  ;;  %v1046_v13 = vld [vmem:[#allocation3 + $0x98] sm:$0xff]  ;;  %v1043_v14 = vld [vmem:[#allocation3 + $0x80] sm:$0xff] }
  0x94   : > { %1067 = vmatpush.msra.mxu0 %v1053_v4  ;;  %1087 = vmatpush.msra.mxu1 %v1054_v5  ;;  %v1044_v15 = vld [vmem:[#allocation3 + $0x88] sm:$0xff]  ;;  %v1041_v16 = vld [vmem:[#allocation3 + $0x70] sm:$0xff]  ;;  %v1042_v17 = vld [vmem:[#allocation3 + $0x78] sm:$0xff] }
  0x95   : > { %v1039_v18 = vld [vmem:[#allocation3 + $0x60] sm:$0xff]  ;;  %v1040_v19 = vld [vmem:[#allocation3 + $0x68] sm:$0xff]  ;;  %v1037_v20 = vld [vmem:[#allocation3 + $0x50] sm:$0xff] }
  0x96   : > { %1068 = vmatpush.msra.mxu0 %v1051_v6  ;;  %1088 = vmatpush.msra.mxu1 %v1052_v7  ;;  %v1038_v21 = vld [vmem:[#allocation3 + $0x58] sm:$0xff]  ;;  %v1035_v22 = vld [vmem:[#allocation3 + $0x40] sm:$0xff]  ;;  %v1036_v23 = vld [vmem:[#allocation3 + $0x48] sm:$0xff] }
  0x97   : > { %v1033_v24 = vld [vmem:[#allocation3 + $0x30] sm:$0xff]  ;;  %v1034_v25 = vld [vmem:[#allocation3 + $0x38] sm:$0xff]  ;;  %v1031_v26 = vld [vmem:[#allocation3 + $0x20] sm:$0xff] }
  0x98   : > { %1069 = vmatpush.msra.mxu0 %v1049_v8  ;;  %1089 = vmatpush.msra.mxu1 %v1050_v9  ;;  %v1032_v27 = vld [vmem:[#allocation3 + $0x28] sm:$0xff]  ;;  %v1029_v28 = vld [vmem:[#allocation3 + $0x10] sm:$0xff]  ;;  %v1030_v29 = vld [vmem:[#allocation3 + $0x18] sm:$0xff] }
  0x99   : > { %v1027_v30 = vld [vmem:[#allocation3] sm:$0xff]  ;;  %v1028_v31 = vld [vmem:[#allocation3 + $0x8] sm:$0xff]  ;;  %v1107_v34 = vld [vmem:[%s4476_s25 + $0x10] sm:$0x7f] }
  0x9a   : > { %1070 = vmatpush.msra.mxu0 %v1047_v10  ;;  %1090 = vmatpush.msra.mxu1 %v1048_v11  ;;  %v1026_v32 = vld [vmem:[%s5849_s28] sm:$0x1]  ;;  %v1106_v35 = vld [vmem:[%s4476_s25 + $0x8] sm:$0xff]  ;;  %v1116_v37 = vrot.slane %v1107_v34, 7  ;;  %v1108_v38 = vld [vmem:[%s4476_s25 + $0x18] sm:$0x7f] }
  0x9b   : > { %v1105_v33 = vld [vmem:[%s4476_s25] sm:$0xff]  ;;  %v1115_v39 = vrot.slane %v1106_v35, 7  ;;  %v1118_v40 = vrot.slane %v1108_v38, 7 }
  0x9c   : > { %1071 = vmatpush.msra.mxu0 %v1045_v12  ;;  %1091 = vmatpush.msra.mxu1 %v1046_v13  ;;  %v1114_v36 = vrot.slane %v1105_v33, 7  ;;  %v1059_v43 = vld [vmem:[%s5850_s4] sm:$0x3] }
  0x9d   : > { %v1119_v42 = vsel %vm1113_vm0, %v1115_v39, %v1118_v40  ;;  %v1061_v44 = vperm.slane %v1059_v43, 0  ;;  %v1062_v45 = vperm.slane %v1059_v43, 1 }
  0x9e   : > { %1072 = vmatpush.msra.mxu0 %v1043_v14  ;;  %1092 = vmatpush.msra.mxu1 %v1044_v15  ;;  %v1117_v41 = vsel %vm1113_vm0, %v1114_v36, %v1116_v37  ;;  %1129 = vst [vmem:[#allocation2 + $0x8] sm:$0xff] %v1119_v42 }
  0x9f   : > { %1128 = vst [vmem:[#allocation2 + $0x18] sm:$0xff] %v1117_v41 }
  0xa0   : > { %1073 = vmatpush.msra.mxu0 %v1041_v16  ;;  %1093 = vmatpush.msra.mxu1 %v1042_v17 }
  0xa2   : > { %1074 = vmatpush.msra.mxu0 %v1039_v18  ;;  %1094 = vmatpush.msra.mxu1 %v1040_v19 }
  0xa4   : > { %1075 = vmatpush.msra.mxu0 %v1037_v20  ;;  %1095 = vmatpush.msra.mxu1 %v1038_v21 }
  0xa6   : > { %1076 = vmatpush.msra.mxu0 %v1035_v22  ;;  %1096 = vmatpush.msra.mxu1 %v1036_v23 }
  0xa8   : > { %1077 = vmatpush.msra.mxu0 %v1033_v24  ;;  %1097 = vmatpush.msra.mxu1 %v1034_v25 }
  0xaa   : > { %1078 = vmatpush.msra.mxu0 %v1031_v26  ;;  %1098 = vmatpush.msra.mxu1 %v1032_v27 }
  0xac   : > { %1079 = vmatpush.msra.mxu0 %v1029_v28  ;;  %1099 = vmatpush.msra.mxu1 %v1030_v29 }
  0xae   : > { %1080 = vmatpush.msra.mxu0 %v1027_v30  ;;  %1100 = vmatpush.msra.mxu1 %v1028_v31 }
  0xaf   : > { %1081 = vmatmul.f32.vlgmr.msra.gmra.mxu0 %v1026_v32  ;;  %1101 = vmatmul.f32.vlgmr.msra.gmra.mxu1 %v1026_v32 }
 0x12c   : > { %v1082_v46 = vpop.f32.mrf.mxu0  ;;  %v1102_v47 = vpop.f32.mrf.mxu1 }
 0x12d   : > { %v1083_v48 = vadd.f32 %v1082_v46, %v1061_v44  ;;  %v1103_v49 = vadd.f32 %v1102_v47, %v1062_v45 }
 0x12f   : > { %v1124_v50 = vsel %vm1113_vm0, %v1083_v48, %v1114_v36  ;;  %v1125_v51 = vsel %vm1113_vm0, %v1103_v49, %v1115_v39 }
 0x130   : > { %1126 = vst [vmem:[#allocation2 + $0x10] sm:$0xff] %v1124_v50 }
 0x131   : > { %1127 = vst [vmem:[#allocation2] sm:$0xff] %v1125_v51 }
 0x132 PF: > { %v1149_v52 = vld [vmem:[%s4433_s0 + $0x78] sm:$0xff]  ;;  %v1148_v56 = vld [vmem:[%s4433_s0 + $0x70] sm:$0xff]  ;;  %v1147_v60 = vld [vmem:[%s4433_s0 + $0x68] sm:$0xff]  ;;  %vm1652_vm1 = vcmask 130048   ;;  %s5854_s10 = sld [smem:[#allocation51_spill]] }
 0x133   : > { %v1165_v53 = vld [vmem:[%s4433_s0 + $0xf8] sm:$0xff]  ;;  %1198 = vmatpush.msra.mxu0 %v1149_v52  ;;  %v1164_v57 = vld [vmem:[%s4433_s0 + $0xf0] sm:$0xff]  ;;  %v1163_v61 = vld [vmem:[%s4433_s0 + $0xe8] sm:$0xff] }
 0x134   : > { %v1181_v54 = vld [vmem:[%s4433_s0 + $0x178] sm:$0xff]  ;;  %1221 = vmatpush.msra.mxu1 %v1165_v53  ;;  %v1180_v58 = vld [vmem:[%s4433_s0 + $0x170] sm:$0xff]  ;;  %v1179_v62 = vld [vmem:[%s4433_s0 + $0x168] sm:$0xff] }
 0x135   : > { %v1197_v55 = vld [vmem:[%s4433_s0 + $0x1f8] sm:$0xff]  ;;  %1244 = vmatpush.msra.mxu2 %v1181_v54  ;;  %v1196_v59 = vld [vmem:[%s4433_s0 + $0x1f0] sm:$0xff]  ;;  %1199 = vmatpush.msra.mxu0 %v1148_v56  ;;  %v1195_v63 = vld [vmem:[%s4433_s0 + $0x1e8] sm:$0xff] }
 0x136   : > { %1267 = vmatpush.msra.mxu3 %v1197_v55  ;;  %1222 = vmatpush.msra.mxu1 %v1164_v57  ;;  %v1146_v0 = vld [vmem:[%s4433_s0 + $0x60] sm:$0xff]  ;;  %v1145_v4 = vld [vmem:[%s4433_s0 + $0x58] sm:$0xff]  ;;  %v1144_v8 = vld [vmem:[%s4433_s0 + $0x50] sm:$0xff] }
 0x137   : > { %1245 = vmatpush.msra.mxu2 %v1180_v58  ;;  %v1162_v1 = vld [vmem:[%s4433_s0 + $0xe0] sm:$0xff]  ;;  %1200 = vmatpush.msra.mxu0 %v1147_v60  ;;  %v1161_v5 = vld [vmem:[%s4433_s0 + $0xd8] sm:$0xff]  ;;  %v1160_v9 = vld [vmem:[%s4433_s0 + $0xd0] sm:$0xff] }
 0x138   : > { %1268 = vmatpush.msra.mxu3 %v1196_v59  ;;  %1223 = vmatpush.msra.mxu1 %v1163_v61  ;;  %v1178_v2 = vld [vmem:[%s4433_s0 + $0x160] sm:$0xff]  ;;  %v1177_v6 = vld [vmem:[%s4433_s0 + $0x158] sm:$0xff]  ;;  %v1176_v10 = vld [vmem:[%s4433_s0 + $0x150] sm:$0xff]  ;;  %s5855_s2 = scalar_lea.vmem %s5854_s10, %s4478_s6 }
 0x139   : > { %v1194_v3 = vld [vmem:[%s4433_s0 + $0x1e0] sm:$0xff]  ;;  %1246 = vmatpush.msra.mxu2 %v1179_v62  ;;  %1201 = vmatpush.msra.mxu0 %v1146_v0  ;;  %v1193_v7 = vld [vmem:[%s4433_s0 + $0x1d8] sm:$0xff]  ;;  %v1192_v11 = vld [vmem:[%s4433_s0 + $0x1d0] sm:$0xff] }
 0x13a   : > { %1269 = vmatpush.msra.mxu3 %v1195_v63  ;;  %1224 = vmatpush.msra.mxu1 %v1162_v1  ;;  %v1143_v12 = vld [vmem:[%s4433_s0 + $0x48] sm:$0xff]  ;;  %v1142_v16 = vld [vmem:[%s4433_s0 + $0x40] sm:$0xff]  ;;  %v1141_v20 = vld [vmem:[%s4433_s0 + $0x38] sm:$0xff] }
 0x13b   : > { %1247 = vmatpush.msra.mxu2 %v1178_v2  ;;  %1202 = vmatpush.msra.mxu0 %v1145_v4  ;;  %v1159_v13 = vld [vmem:[%s4433_s0 + $0xc8] sm:$0xff]  ;;  %v1158_v17 = vld [vmem:[%s4433_s0 + $0xc0] sm:$0xff]  ;;  %v1157_v21 = vld [vmem:[%s4433_s0 + $0xb8] sm:$0xff] }
 0x13c   : > { %1270 = vmatpush.msra.mxu3 %v1194_v3  ;;  %1225 = vmatpush.msra.mxu1 %v1161_v5  ;;  %v1175_v14 = vld [vmem:[%s4433_s0 + $0x148] sm:$0xff]  ;;  %v1174_v18 = vld [vmem:[%s4433_s0 + $0x140] sm:$0xff]  ;;  %v1173_v22 = vld [vmem:[%s4433_s0 + $0x138] sm:$0xff] }
 0x13d   : > { %1248 = vmatpush.msra.mxu2 %v1177_v6  ;;  %1203 = vmatpush.msra.mxu0 %v1144_v8  ;;  %v1191_v15 = vld [vmem:[%s4433_s0 + $0x1c8] sm:$0xff]  ;;  %v1190_v19 = vld [vmem:[%s4433_s0 + $0x1c0] sm:$0xff]  ;;  %v1189_v23 = vld [vmem:[%s4433_s0 + $0x1b8] sm:$0xff] }
 0x13e   : > { %1271 = vmatpush.msra.mxu3 %v1193_v7  ;;  %1226 = vmatpush.msra.mxu1 %v1160_v9  ;;  %v1140_v24 = vld [vmem:[%s4433_s0 + $0x30] sm:$0xff]  ;;  %v1139_v28 = vld [vmem:[%s4433_s0 + $0x28] sm:$0xff]  ;;  %v1138_v32 = vld [vmem:[%s4433_s0 + $0x20] sm:$0xff] }
 0x13f   : > { %1249 = vmatpush.msra.mxu2 %v1176_v10  ;;  %1204 = vmatpush.msra.mxu0 %v1143_v12  ;;  %v1156_v25 = vld [vmem:[%s4433_s0 + $0xb0] sm:$0xff]  ;;  %v1155_v29 = vld [vmem:[%s4433_s0 + $0xa8] sm:$0xff]  ;;  %v1154_v33 = vld [vmem:[%s4433_s0 + $0xa0] sm:$0xff] }
 0x140   : > { %1272 = vmatpush.msra.mxu3 %v1192_v11  ;;  %1227 = vmatpush.msra.mxu1 %v1159_v13  ;;  %v1172_v26 = vld [vmem:[%s4433_s0 + $0x130] sm:$0xff]  ;;  %v1171_v30 = vld [vmem:[%s4433_s0 + $0x128] sm:$0xff]  ;;  %v1170_v34 = vld [vmem:[%s4433_s0 + $0x120] sm:$0xff] }
 0x141   : > { %1250 = vmatpush.msra.mxu2 %v1175_v14  ;;  %1205 = vmatpush.msra.mxu0 %v1142_v16  ;;  %v1188_v27 = vld [vmem:[%s4433_s0 + $0x1b0] sm:$0xff]  ;;  %v1187_v31 = vld [vmem:[%s4433_s0 + $0x1a8] sm:$0xff]  ;;  %v1186_v35 = vld [vmem:[%s4433_s0 + $0x1a0] sm:$0xff] }
 0x142   : > { %1273 = vmatpush.msra.mxu3 %v1191_v15  ;;  %1228 = vmatpush.msra.mxu1 %v1158_v17  ;;  %v1137_v36 = vld [vmem:[%s4433_s0 + $0x18] sm:$0xff]  ;;  %v1136_v40 = vld [vmem:[%s4433_s0 + $0x10] sm:$0xff]  ;;  %v1135_v44 = vld [vmem:[%s4433_s0 + $0x8] sm:$0xff] }
 0x143   : > { %1251 = vmatpush.msra.mxu2 %v1174_v18  ;;  %1206 = vmatpush.msra.mxu0 %v1141_v20  ;;  %v1153_v37 = vld [vmem:[%s4433_s0 + $0x98] sm:$0xff]  ;;  %v1152_v41 = vld [vmem:[%s4433_s0 + $0x90] sm:$0xff]  ;;  %v1151_v45 = vld [vmem:[%s4433_s0 + $0x88] sm:$0xff] }
 0x144   : > { %1274 = vmatpush.msra.mxu3 %v1190_v19  ;;  %1229 = vmatpush.msra.mxu1 %v1157_v21  ;;  %v1169_v38 = vld [vmem:[%s4433_s0 + $0x118] sm:$0xff]  ;;  %v1168_v42 = vld [vmem:[%s4433_s0 + $0x110] sm:$0xff]  ;;  %v1167_v46 = vld [vmem:[%s4433_s0 + $0x108] sm:$0xff] }
 0x145   : > { %1252 = vmatpush.msra.mxu2 %v1173_v22  ;;  %1207 = vmatpush.msra.mxu0 %v1140_v24  ;;  %v1185_v39 = vld [vmem:[%s4433_s0 + $0x198] sm:$0xff]  ;;  %v1184_v43 = vld [vmem:[%s4433_s0 + $0x190] sm:$0xff]  ;;  %v1183_v47 = vld [vmem:[%s4433_s0 + $0x188] sm:$0xff] }
 0x146   : > { %1275 = vmatpush.msra.mxu3 %v1189_v23  ;;  %1230 = vmatpush.msra.mxu1 %v1156_v25  ;;  %v1134_v48 = vld [vmem:[%s4433_s0] sm:$0xff]  ;;  %v1305_v52 = vld [vmem:[%s4439_s14 + $0x78] sm:$0xff]  ;;  %v1304_v56 = vld [vmem:[%s4439_s14 + $0x70] sm:$0xff] }
 0x147   : > { %1253 = vmatpush.msra.mxu2 %v1172_v26  ;;  %1208 = vmatpush.msra.mxu0 %v1139_v28  ;;  %v1150_v49 = vld [vmem:[%s4433_s0 + $0x80] sm:$0xff]  ;;  %v1321_v53 = vld [vmem:[%s4439_s14 + $0xf8] sm:$0xff]  ;;  %v1320_v57 = vld [vmem:[%s4439_s14 + $0xf0] sm:$0xff] }
 0x148   : > { %1276 = vmatpush.msra.mxu3 %v1188_v27  ;;  %1231 = vmatpush.msra.mxu1 %v1155_v29  ;;  %v1166_v50 = vld [vmem:[%s4433_s0 + $0x100] sm:$0xff]  ;;  %v1337_v54 = vld [vmem:[%s4439_s14 + $0x178] sm:$0xff]  ;;  %v1336_v58 = vld [vmem:[%s4439_s14 + $0x170] sm:$0xff] }
 0x149   : > { %1254 = vmatpush.msra.mxu2 %v1171_v30  ;;  %1209 = vmatpush.msra.mxu0 %v1138_v32  ;;  %v1182_v51 = vld [vmem:[%s4433_s0 + $0x180] sm:$0xff]  ;;  %v1353_v55 = vld [vmem:[%s4439_s14 + $0x1f8] sm:$0xff]  ;;  %v1352_v59 = vld [vmem:[%s4439_s14 + $0x1f0] sm:$0xff] }
 0x14a   : > { %1277 = vmatpush.msra.mxu3 %v1187_v31  ;;  %1232 = vmatpush.msra.mxu1 %v1154_v33  ;;  %v1303_v60 = vld [vmem:[%s4439_s14 + $0x68] sm:$0xff]  ;;  %v1302_v0 = vld [vmem:[%s4439_s14 + $0x60] sm:$0xff]  ;;  %v1301_v4 = vld [vmem:[%s4439_s14 + $0x58] sm:$0xff] }
 0x14b   : > { %1255 = vmatpush.msra.mxu2 %v1170_v34  ;;  %1210 = vmatpush.msra.mxu0 %v1137_v36  ;;  %v1319_v61 = vld [vmem:[%s4439_s14 + $0xe8] sm:$0xff]  ;;  %v1318_v1 = vld [vmem:[%s4439_s14 + $0xe0] sm:$0xff]  ;;  %v1317_v5 = vld [vmem:[%s4439_s14 + $0xd8] sm:$0xff] }
 0x14c   : > { %1278 = vmatpush.msra.mxu3 %v1186_v35  ;;  %1233 = vmatpush.msra.mxu1 %v1153_v37  ;;  %v1335_v62 = vld [vmem:[%s4439_s14 + $0x168] sm:$0xff]  ;;  %v1334_v2 = vld [vmem:[%s4439_s14 + $0x160] sm:$0xff]  ;;  %v1333_v6 = vld [vmem:[%s4439_s14 + $0x158] sm:$0xff] }
 0x14d   : > { %1256 = vmatpush.msra.mxu2 %v1169_v38  ;;  %1211 = vmatpush.msra.mxu0 %v1136_v40  ;;  %v1351_v63 = vld [vmem:[%s4439_s14 + $0x1e8] sm:$0xff]  ;;  %v1350_v3 = vld [vmem:[%s4439_s14 + $0x1e0] sm:$0xff]  ;;  %v1349_v7 = vld [vmem:[%s4439_s14 + $0x1d8] sm:$0xff] }
 0x14e   : > { %1279 = vmatpush.msra.mxu3 %v1185_v39  ;;  %1234 = vmatpush.msra.mxu1 %v1152_v41  ;;  %v1300_v8 = vld [vmem:[%s4439_s14 + $0x50] sm:$0xff]  ;;  %v1299_v12 = vld [vmem:[%s4439_s14 + $0x48] sm:$0xff]  ;;  %v1298_v16 = vld [vmem:[%s4439_s14 + $0x40] sm:$0xff] }
 0x14f   : > { %1257 = vmatpush.msra.mxu2 %v1168_v42  ;;  %1212 = vmatpush.msra.mxu0 %v1135_v44  ;;  %v1316_v9 = vld [vmem:[%s4439_s14 + $0xd0] sm:$0xff]  ;;  %v1315_v13 = vld [vmem:[%s4439_s14 + $0xc8] sm:$0xff]  ;;  %v1314_v17 = vld [vmem:[%s4439_s14 + $0xc0] sm:$0xff] }
 0x150   : > { %1280 = vmatpush.msra.mxu3 %v1184_v43  ;;  %1235 = vmatpush.msra.mxu1 %v1151_v45  ;;  %v1332_v10 = vld [vmem:[%s4439_s14 + $0x150] sm:$0xff]  ;;  %v1331_v14 = vld [vmem:[%s4439_s14 + $0x148] sm:$0xff]  ;;  %v1330_v18 = vld [vmem:[%s4439_s14 + $0x140] sm:$0xff] }
 0x151   : > { %1258 = vmatpush.msra.mxu2 %v1167_v46  ;;  %1213 = vmatpush.msra.mxu0 %v1134_v48  ;;  %v1348_v11 = vld [vmem:[%s4439_s14 + $0x1d0] sm:$0xff]  ;;  %v1347_v15 = vld [vmem:[%s4439_s14 + $0x1c8] sm:$0xff]  ;;  %v1346_v19 = vld [vmem:[%s4439_s14 + $0x1c0] sm:$0xff] }
 0x152   : > { %1281 = vmatpush.msra.mxu3 %v1183_v47  ;;  %1236 = vmatpush.msra.mxu1 %v1150_v49  ;;  %v4626_v20 = vld [vmem:[#allocation2 + $0x10] sm:$0xff]  ;;  %v4628_v21 = vld [vmem:[#allocation2] sm:$0xff]  ;;  %v1297_v22 = vld [vmem:[%s4439_s14 + $0x38] sm:$0xff] }
 0x153   : > { %1259 = vmatpush.msra.mxu2 %v1166_v50  ;;  %1354 = vmatpush.msrb.mxu0 %v1305_v52  ;;  %v1313_v23 = vld [vmem:[%s4439_s14 + $0xb8] sm:$0xff]  ;;  %v1296_v26 = vld [vmem:[%s4439_s14 + $0x30] sm:$0xff]  ;;  %v1295_v30 = vld [vmem:[%s4439_s14 + $0x28] sm:$0xff] }
 0x154   : > { %1282 = vmatpush.msra.mxu3 %v1182_v51  ;;  %1377 = vmatpush.msrb.mxu1 %v1321_v53  ;;  %v1329_v24 = vld [vmem:[%s4439_s14 + $0x138] sm:$0xff]  ;;  %v1312_v27 = vld [vmem:[%s4439_s14 + $0xb0] sm:$0xff]  ;;  %v1311_v31 = vld [vmem:[%s4439_s14 + $0xa8] sm:$0xff] }
 0x155   : > { %1400 = vmatpush.msrb.mxu2 %v1337_v54  ;;  %1355 = vmatpush.msrb.mxu0 %v1304_v56  ;;  %v1345_v25 = vld [vmem:[%s4439_s14 + $0x1b8] sm:$0xff]  ;;  %v1328_v28 = vld [vmem:[%s4439_s14 + $0x130] sm:$0xff]  ;;  %v1327_v32 = vld [vmem:[%s4439_s14 + $0x128] sm:$0xff] }
 0x156   : > { %1423 = vmatpush.msrb.mxu3 %v1353_v55  ;;  %1378 = vmatpush.msrb.mxu1 %v1320_v57  ;;  %v1344_v29 = vld [vmem:[%s4439_s14 + $0x1b0] sm:$0xff]  ;;  %v1343_v33 = vld [vmem:[%s4439_s14 + $0x1a8] sm:$0xff]  ;;  %v1294_v34 = vld [vmem:[%s4439_s14 + $0x20] sm:$0xff] }
 0x157   : > { %1401 = vmatpush.msrb.mxu2 %v1336_v58  ;;  %1356 = vmatpush.msrb.mxu0 %v1303_v60  ;;  %v1310_v35 = vld [vmem:[%s4439_s14 + $0xa0] sm:$0xff]  ;;  %v4650_v38 = vld [vmem:[#allocation2 + $0x18] sm:$0xff]  ;;  %v4652_v39 = vld [vmem:[#allocation2 + $0x8] sm:$0xff] }
 0x158   : > { %1424 = vmatpush.msrb.mxu3 %v1352_v59  ;;  %1379 = vmatpush.msrb.mxu1 %v1319_v61  ;;  %v1326_v36 = vld [vmem:[%s4439_s14 + $0x120] sm:$0xff]  ;;  %v1293_v40 = vld [vmem:[%s4439_s14 + $0x18] sm:$0xff]  ;;  %v1292_v44 = vld [vmem:[%s4439_s14 + $0x10] sm:$0xff] }
 0x159   : > { %1402 = vmatpush.msrb.mxu2 %v1335_v62  ;;  %1357 = vmatpush.msrb.mxu0 %v1302_v0  ;;  %v1342_v37 = vld [vmem:[%s4439_s14 + $0x1a0] sm:$0xff]  ;;  %v1309_v41 = vld [vmem:[%s4439_s14 + $0x98] sm:$0xff]  ;;  %v1308_v45 = vld [vmem:[%s4439_s14 + $0x90] sm:$0xff] }
 0x15a   : > { %1425 = vmatpush.msrb.mxu3 %v1351_v63  ;;  %1380 = vmatpush.msrb.mxu1 %v1318_v1  ;;  %v1325_v42 = vld [vmem:[%s4439_s14 + $0x118] sm:$0xff]  ;;  %v1324_v46 = vld [vmem:[%s4439_s14 + $0x110] sm:$0xff]  ;;  %v1291_v48 = vld [vmem:[%s4439_s14 + $0x8] sm:$0xff] }
 0x15b   : > { %1403 = vmatpush.msrb.mxu2 %v1334_v2  ;;  %1358 = vmatpush.msrb.mxu0 %v1301_v4  ;;  %v1341_v43 = vld [vmem:[%s4439_s14 + $0x198] sm:$0xff]  ;;  %v1340_v47 = vld [vmem:[%s4439_s14 + $0x190] sm:$0xff]  ;;  %v1307_v49 = vld [vmem:[%s4439_s14 + $0x88] sm:$0xff] }
 0x15c   : > { %1426 = vmatpush.msrb.mxu3 %v1350_v3  ;;  %1381 = vmatpush.msrb.mxu1 %v1317_v5  ;;  %v1323_v50 = vld [vmem:[%s4439_s14 + $0x108] sm:$0xff]  ;;  %v1290_v52 = vld [vmem:[%s4439_s14] sm:$0xff]  ;;  %v1461_v56 = vld [vmem:[%s4441_s22 + $0x78] sm:$0xff] }
 0x15d   : > { %1404 = vmatpush.msrb.mxu2 %v1333_v6  ;;  %1359 = vmatpush.msrb.mxu0 %v1300_v8  ;;  %v1339_v51 = vld [vmem:[%s4439_s14 + $0x188] sm:$0xff]  ;;  %v1306_v53 = vld [vmem:[%s4439_s14 + $0x80] sm:$0xff]  ;;  %v1477_v57 = vld [vmem:[%s4441_s22 + $0xf8] sm:$0xff] }
 0x15e   : > { %1427 = vmatpush.msrb.mxu3 %v1349_v7  ;;  %1382 = vmatpush.msrb.mxu1 %v1316_v9  ;;  %v1322_v54 = vld [vmem:[%s4439_s14 + $0x100] sm:$0xff]  ;;  %v1460_v58 = vld [vmem:[%s4441_s22 + $0x70] sm:$0xff]  ;;  %v1459_v60 = vld [vmem:[%s4441_s22 + $0x68] sm:$0xff] }
 0x15f   : > { %1405 = vmatpush.msrb.mxu2 %v1332_v10  ;;  %1360 = vmatpush.msrb.mxu0 %v1299_v12  ;;  %v1338_v55 = vld [vmem:[%s4439_s14 + $0x180] sm:$0xff]  ;;  %v1476_v59 = vld [vmem:[%s4441_s22 + $0xf0] sm:$0xff]  ;;  %v1475_v61 = vld [vmem:[%s4441_s22 + $0xe8] sm:$0xff] }
 0x160   : > { %1428 = vmatpush.msrb.mxu3 %v1348_v11  ;;  %1383 = vmatpush.msrb.mxu1 %v1315_v13  ;;  %v1458_v62 = vld [vmem:[%s4441_s22 + $0x60] sm:$0xff]  ;;  %v1457_v0 = vld [vmem:[%s4441_s22 + $0x58] sm:$0xff]  ;;  %v1456_v1 = vld [vmem:[%s4441_s22 + $0x50] sm:$0xff] }
 0x161   : > { %1406 = vmatpush.msrb.mxu2 %v1331_v14  ;;  %1361 = vmatpush.msrb.mxu0 %v1298_v16  ;;  %v1474_v63 = vld [vmem:[%s4441_s22 + $0xe0] sm:$0xff]  ;;  %v1455_v2 = vld [vmem:[%s4441_s22 + $0x48] sm:$0xff]  ;;  %v1473_v3 = vld [vmem:[%s4441_s22 + $0xd8] sm:$0xff] }
 0x162   : > { %1429 = vmatpush.msrb.mxu3 %v1347_v15  ;;  %1384 = vmatpush.msrb.mxu1 %v1314_v17  ;;  %v1472_v4 = vld [vmem:[%s4441_s22 + $0xd0] sm:$0xff]  ;;  %v1471_v5 = vld [vmem:[%s4441_s22 + $0xc8] sm:$0xff]  ;;  %v1454_v6 = vld [vmem:[%s4441_s22 + $0x40] sm:$0xff] }
 0x163   : > { %1407 = vmatpush.msrb.mxu2 %v1330_v18  ;;  %1214 = vmatmul.f32.vlgmr.msra.gmra.mxu0 %v4626_v20  ;;  %v1453_v7 = vld [vmem:[%s4441_s22 + $0x38] sm:$0xff]  ;;  %v1470_v8 = vld [vmem:[%s4441_s22 + $0xc0] sm:$0xff]  ;;  %v1452_v9 = vld [vmem:[%s4441_s22 + $0x30] sm:$0xff] }
 0x164   : > { %1430 = vmatpush.msrb.mxu3 %v1346_v19  ;;  %1237 = vmatmul.f32.vlgmr.msra.gmra.mxu1 %v4628_v21  ;;  %v1469_v10 = vld [vmem:[%s4441_s22 + $0xb8] sm:$0xff]  ;;  %v1468_v11 = vld [vmem:[%s4441_s22 + $0xb0] sm:$0xff]  ;;  %v1451_v12 = vld [vmem:[%s4441_s22 + $0x28] sm:$0xff] }
 0x165   : > { %1260 = vmatmul.f32.vlgmr.msra.gmra.mxu2 %v4626_v20  ;;  %1283 = vmatmul.f32.vlgmr.msra.gmra.mxu3 %v4628_v21  ;;  %v1467_v13 = vld [vmem:[%s4441_s22 + $0xa8] sm:$0xff]  ;;  %v1450_v14 = vld [vmem:[%s4441_s22 + $0x20] sm:$0xff]  ;;  %v1449_v16 = vld [vmem:[%s4441_s22 + $0x18] sm:$0xff] }
 0x166   : > { %1362 = vmatpush.msrb.mxu0 %v1297_v22  ;;  %1385 = vmatpush.msrb.mxu1 %v1313_v23  ;;  %v1466_v15 = vld [vmem:[%s4441_s22 + $0xa0] sm:$0xff]  ;;  %v1448_v17 = vld [vmem:[%s4441_s22 + $0x10] sm:$0xff]  ;;  %v1465_v18 = vld [vmem:[%s4441_s22 + $0x98] sm:$0xff] }
 0x167   : > { %1408 = vmatpush.msrb.mxu2 %v1329_v24  ;;  %1431 = vmatpush.msrb.mxu3 %v1345_v25  ;;  %v1464_v19 = vld [vmem:[%s4441_s22 + $0x90] sm:$0xff]  ;;  %v1447_v22 = vld [vmem:[%s4441_s22 + $0x8] sm:$0xff]  ;;  %v1446_v24 = vld [vmem:[%s4441_s22] sm:$0xff] }
 0x168   : > { %1363 = vmatpush.msrb.mxu0 %v1296_v26  ;;  %1386 = vmatpush.msrb.mxu1 %v1312_v27  ;;  %v1463_v23 = vld [vmem:[%s4441_s22 + $0x88] sm:$0xff]  ;;  %v1462_v25 = vld [vmem:[%s4441_s22 + $0x80] sm:$0xff] }
 0x169   : > { %1409 = vmatpush.msrb.mxu2 %v1328_v28  ;;  %1432 = vmatpush.msrb.mxu3 %v1344_v29 }
 0x16a   : > { %1364 = vmatpush.msrb.mxu0 %v1295_v30  ;;  %1387 = vmatpush.msrb.mxu1 %v1311_v31 }
 0x16b   : > { %1410 = vmatpush.msrb.mxu2 %v1327_v32  ;;  %1433 = vmatpush.msrb.mxu3 %v1343_v33 }
 0x16c   : > { %1365 = vmatpush.msrb.mxu0 %v1294_v34  ;;  %1388 = vmatpush.msrb.mxu1 %v1310_v35 }
 0x16d   : > { %1411 = vmatpush.msrb.mxu2 %v1326_v36  ;;  %1434 = vmatpush.msrb.mxu3 %v1342_v37  ;;  %v1493_v36 = vld [vmem:[%s4441_s22 + $0x178] sm:$0xff]  ;;  %v1492_v37 = vld [vmem:[%s4441_s22 + $0x170] sm:$0xff] }
 0x16e   : > { %1217 = vmatmul.f32.gmra.mxu0 %v4650_v38  ;;  %1240 = vmatmul.f32.gmra.mxu1 %v4652_v39 }
 0x16f   : > { %1263 = vmatmul.f32.gmra.mxu2 %v4650_v38  ;;  %1286 = vmatmul.f32.gmra.mxu3 %v4652_v39 }
 0x170   : > { %1366 = vmatpush.msrb.mxu0 %v1293_v40  ;;  %1389 = vmatpush.msrb.mxu1 %v1309_v41  ;;  %v1491_v40 = vld [vmem:[%s4441_s22 + $0x168] sm:$0xff]  ;;  %v1490_v41 = vld [vmem:[%s4441_s22 + $0x160] sm:$0xff] }
 0x171   : > { %1412 = vmatpush.msrb.mxu2 %v1325_v42  ;;  %1435 = vmatpush.msrb.mxu3 %v1341_v43 }
 0x172   : > { %1367 = vmatpush.msrb.mxu0 %v1292_v44  ;;  %1390 = vmatpush.msrb.mxu1 %v1308_v45  ;;  %v1489_v44 = vld [vmem:[%s4441_s22 + $0x158] sm:$0xff] }
 0x173   : > { %1413 = vmatpush.msrb.mxu2 %v1324_v46  ;;  %1436 = vmatpush.msrb.mxu3 %v1340_v47 }
 0x174   : > { %1368 = vmatpush.msrb.mxu0 %v1291_v48  ;;  %1391 = vmatpush.msrb.mxu1 %v1307_v49  ;;  %v1488_v48 = vld [vmem:[%s4441_s22 + $0x150] sm:$0xff] }
 0x175   : > { %1414 = vmatpush.msrb.mxu2 %v1323_v50  ;;  %1437 = vmatpush.msrb.mxu3 %v1339_v51  ;;  %v1487_v50 = vld [vmem:[%s4441_s22 + $0x148] sm:$0xff]  ;;  %v1486_v51 = vld [vmem:[%s4441_s22 + $0x140] sm:$0xff] }
 0x176   : > { %1369 = vmatpush.msrb.mxu0 %v1290_v52  ;;  %1392 = vmatpush.msrb.mxu1 %v1306_v53 }
 0x177   : > { %1415 = vmatpush.msrb.mxu2 %v1322_v54  ;;  %1438 = vmatpush.msrb.mxu3 %v1338_v55 }
 0x178   : > { %1370 = vmatmul.f32.vlgmr.msrb.gmra.mxu0 %v4626_v20  ;;  %1393 = vmatmul.f32.vlgmr.msrb.gmra.mxu1 %v4628_v21 }
 0x179   : > { %1416 = vmatmul.f32.vlgmr.msrb.gmra.mxu2 %v4626_v20  ;;  %1439 = vmatmul.f32.vlgmr.msrb.gmra.mxu3 %v4628_v21 }
 0x17a   : > { %1510 = vmatpush.msra.mxu0 %v1461_v56  ;;  %1533 = vmatpush.msra.mxu1 %v1477_v57 }
 0x17b   : > { %1556 = vmatpush.msra.mxu2 %v1493_v36  ;;  %v1495_v36 = vld [vmem:[%s4441_s22 + $0x188] sm:$0xff] }
 0x17c   : > { %1511 = vmatpush.msra.mxu0 %v1460_v58  ;;  %1534 = vmatpush.msra.mxu1 %v1476_v59 }
 0x17d   : > { %1557 = vmatpush.msra.mxu2 %v1492_v37 }
 0x17e   : > { %1512 = vmatpush.msra.mxu0 %v1459_v60  ;;  %1535 = vmatpush.msra.mxu1 %v1475_v61  ;;  %v1485_v60 = vld [vmem:[%s4441_s22 + $0x138] sm:$0xff]  ;;  %v1484_v61 = vld [vmem:[%s4441_s22 + $0x130] sm:$0xff] }
 0x17f   : > { %1558 = vmatpush.msra.mxu2 %v1491_v40  ;;  %v1494_v40 = vld [vmem:[%s4441_s22 + $0x180] sm:$0xff] }
 0x180   : > { %1373 = vmatmul.f32.gmra.mxu0 %v4650_v38  ;;  %1396 = vmatmul.f32.gmra.mxu1 %v4652_v39 }
 0x181   : > { %1419 = vmatmul.f32.gmra.mxu2 %v4650_v38  ;;  %1442 = vmatmul.f32.gmra.mxu3 %v4652_v39 }
 0x182   : > { %1513 = vmatpush.msra.mxu0 %v1458_v62  ;;  %1536 = vmatpush.msra.mxu1 %v1474_v63  ;;  %v1483_v62 = vld [vmem:[%s4441_s22 + $0x128] sm:$0xff]  ;;  %v1482_v63 = vld [vmem:[%s4441_s22 + $0x120] sm:$0xff] }
 0x183   : > { %1559 = vmatpush.msra.mxu2 %v1490_v41 }
 0x184   : > { %1514 = vmatpush.msra.mxu0 %v1457_v0  ;;  %1537 = vmatpush.msra.mxu1 %v1473_v3  ;;  %v1481_v0 = vld [vmem:[%s4441_s22 + $0x118] sm:$0xff]  ;;  %v1478_v3 = vld [vmem:[%s4441_s22 + $0x100] sm:$0xff] }
 0x185   : > { %1560 = vmatpush.msra.mxu2 %v1489_v44 }
 0x186   : > { %1515 = vmatpush.msra.mxu0 %v1456_v1  ;;  %1538 = vmatpush.msra.mxu1 %v1472_v4  ;;  %v1480_v1 = vld [vmem:[%s4441_s22 + $0x110] sm:$0xff] }
 0x187   : > { %1561 = vmatpush.msra.mxu2 %v1488_v48 }
 0x188   : > { %1516 = vmatpush.msra.mxu0 %v1455_v2  ;;  %1539 = vmatpush.msra.mxu1 %v1471_v5  ;;  %v1479_v2 = vld [vmem:[%s4441_s22 + $0x108] sm:$0xff] }
 0x189   : > { %1562 = vmatpush.msra.mxu2 %v1487_v50 }
 0x18a   : > { %1517 = vmatpush.msra.mxu0 %v1454_v6  ;;  %1540 = vmatpush.msra.mxu1 %v1470_v8 }
 0x18b   : > { %1563 = vmatpush.msra.mxu2 %v1486_v51 }
 0x18c   : > { %1518 = vmatpush.msra.mxu0 %v1453_v7  ;;  %1541 = vmatpush.msra.mxu1 %v1469_v10  ;;  %v1509_v10 = vld [vmem:[%s4441_s22 + $0x1f8] sm:$0xff] }
 0x18d   : > { %1564 = vmatpush.msra.mxu2 %v1485_v60  ;;  %1579 = vmatpush.msra.mxu3 %v1509_v10  ;;  %v1785_v10 = vld [vmem:[%s4447_s29 + $0xf0] sm:$0xff] }
 0x18e   : > { %1519 = vmatpush.msra.mxu0 %v1452_v9  ;;  %1542 = vmatpush.msra.mxu1 %v1468_v11  ;;  %v1508_v11 = vld [vmem:[%s4441_s22 + $0x1f0] sm:$0xff] }
 0x18f   : > { %1565 = vmatpush.msra.mxu2 %v1484_v61  ;;  %1580 = vmatpush.msra.mxu3 %v1508_v11  ;;  %v1811_v11 = vld [vmem:[%s4447_s29 + $0x1c0] sm:$0xff] }
 0x190   : > { %1520 = vmatpush.msra.mxu0 %v1451_v12  ;;  %1543 = vmatpush.msra.mxu1 %v1467_v13  ;;  %v1507_v12 = vld [vmem:[%s4441_s22 + $0x1e8] sm:$0xff]  ;;  %v1506_v13 = vld [vmem:[%s4441_s22 + $0x1e0] sm:$0xff] }
 0x191   : > { %1566 = vmatpush.msra.mxu2 %v1483_v62  ;;  %1581 = vmatpush.msra.mxu3 %v1507_v12  ;;  %v1786_v12 = vld [vmem:[%s4447_s29 + $0xf8] sm:$0xff] }
 0x192   : > { %1521 = vmatpush.msra.mxu0 %v1450_v14  ;;  %1544 = vmatpush.msra.mxu1 %v1466_v15  ;;  %v1505_v14 = vld [vmem:[%s4441_s22 + $0x1d8] sm:$0xff]  ;;  %v1504_v15 = vld [vmem:[%s4441_s22 + $0x1d0] sm:$0xff] }
 0x193   : > { %1567 = vmatpush.msra.mxu2 %v1482_v63  ;;  %1582 = vmatpush.msra.mxu3 %v1506_v13  ;;  %v1812_v13 = vld [vmem:[%s4447_s29 + $0x1c8] sm:$0xff] }
 0x194   : > { %1522 = vmatpush.msra.mxu0 %v1449_v16  ;;  %1545 = vmatpush.msra.mxu1 %v1465_v18  ;;  %v1503_v16 = vld [vmem:[%s4441_s22 + $0x1c8] sm:$0xff]  ;;  %v1502_v18 = vld [vmem:[%s4441_s22 + $0x1c0] sm:$0xff] }
 0x195   : > { %1568 = vmatpush.msra.mxu2 %v1481_v0  ;;  %1583 = vmatpush.msra.mxu3 %v1505_v14  ;;  %v1783_v14 = vld [vmem:[%s4447_s29 + $0xe0] sm:$0xff] }
 0x196   : > { %1523 = vmatpush.msra.mxu0 %v1448_v17  ;;  %1546 = vmatpush.msra.mxu1 %v1464_v19 }
 0x197   : > { %1569 = vmatpush.msra.mxu2 %v1480_v1  ;;  %1584 = vmatpush.msra.mxu3 %v1504_v15  ;;  %v1784_v15 = vld [vmem:[%s4447_s29 + $0xe8] sm:$0xff] }
 0x198   : > { %1524 = vmatpush.msra.mxu0 %v1447_v22  ;;  %1547 = vmatpush.msra.mxu1 %v1463_v23  ;;  %v1501_v23 = vld [vmem:[%s4441_s22 + $0x1b8] sm:$0xff] }
 0x199   : > { %1570 = vmatpush.msra.mxu2 %v1479_v2  ;;  %1585 = vmatpush.msra.mxu3 %v1503_v16 }
 0x19a   : > { %1525 = vmatpush.msra.mxu0 %v1446_v24  ;;  %1548 = vmatpush.msra.mxu1 %v1462_v25  ;;  %v1500_v25 = vld [vmem:[%s4441_s22 + $0x1b0] sm:$0xff] }
 0x19b   : > { %1526 = vmatmul.f32.vlgmr.msra.gmra.mxu0 %v4626_v20  ;;  %1549 = vmatmul.f32.vlgmr.msra.gmra.mxu1 %v4628_v21 }
 0x19c   : > { %1571 = vmatpush.msra.mxu2 %v1478_v3  ;;  %1586 = vmatpush.msra.mxu3 %v1502_v18  ;;  %v1782_v18 = vld [vmem:[%s4447_s29 + $0xd8] sm:$0xff] }
 0x19d   : > { %1572 = vmatmul.f32.vlgmr.msra.gmra.mxu2 %v4626_v20 }
 0x19e   : > { %1587 = vmatpush.msra.mxu3 %v1501_v23  ;;  %v1779_v23 = vld [vmem:[%s4447_s29 + $0xc0] sm:$0xff] }
 0x1a0   : > { %1588 = vmatpush.msra.mxu3 %v1500_v25  ;;  %v1807_v25 = vld [vmem:[%s4447_s29 + $0x1a0] sm:$0xff] }
 0x1a3   : > { %1529 = vmatmul.f32.gmra.mxu0 %v4650_v38  ;;  %1552 = vmatmul.f32.gmra.mxu1 %v4652_v39 }
 0x1a5   : > { %1575 = vmatmul.f32.gmra.mxu2 %v4650_v38 }
 0x1e0   : > { %v1215_v26 = vpop.f32.mrf.mxu0 }
 0x1e1   : > { %v1238_v27 = vpop.f32.mrf.mxu1 }
 0x1e2   : > { %v1239_v54 = vadd.f32 %v1238_v27, %v1215_v26  ;;  %v1499_v26 = vld [vmem:[%s4441_s22 + $0x1a8] sm:$0xff] }
 0x1e3   : > { %1589 = vmatpush.msra.mxu3 %v1499_v26  ;;  %v1808_v26 = vld [vmem:[%s4447_s29 + $0x1a8] sm:$0xff] }
 0x1e8   : > { %v1261_v28 = vpop.f32.mrf.mxu2  ;;  %v1284_v29 = vpop.f32.mrf.mxu3 }
 0x1e9   : > { %v1285_v57 = vadd.f32 %v1284_v29, %v1261_v28  ;;  %v1498_v29 = vld [vmem:[%s4441_s22 + $0x1a0] sm:$0xff] }
 0x1ea   : > { %1590 = vmatpush.msra.mxu3 %v1498_v29  ;;  %v1805_v29 = vld [vmem:[%s4447_s29 + $0x190] sm:$0xff] }
 0x1eb   : > { %v1218_v30 = vpop.f32.mrf.mxu0  ;;  %v1241_v31 = vpop.f32.mrf.mxu1 }
 0x1ec   : > { %v1242_v58 = vadd.f32 %v1241_v31, %v1218_v30  ;;  %v1497_v31 = vld [vmem:[%s4441_s22 + $0x198] sm:$0xff] }
 0x1ed   : > { %1591 = vmatpush.msra.mxu3 %v1497_v31  ;;  %v1775_v31 = vld [vmem:[%s4447_s29 + $0xa0] sm:$0xff] }
 0x1f2   : > { %v1264_v32 = vpop.f32.mrf.mxu2  ;;  %v1287_v33 = vpop.f32.mrf.mxu3 }
 0x1f3   : > { %v1288_v59 = vadd.f32 %v1287_v33, %v1264_v32 }
 0x1f5   : > { %v1371_v34 = vpop.f32.mrf.mxu0  ;;  %v1394_v35 = vpop.f32.mrf.mxu1 }
 0x1f6   : > { %v1395_v49 = vadd.f32 %v1394_v35, %v1371_v34  ;;  %v1496_v35 = vld [vmem:[%s4441_s22 + $0x190] sm:$0xff]  ;;  %s5851_s22 = sld [smem:[#allocation50_spill]] }
 0x1f7   : > { %1592 = vmatpush.msra.mxu3 %v1496_v35 }
 0x1f9   : > { %1593 = vmatpush.msra.mxu3 %v1495_v36 }
 0x1fb   : > { %1594 = vmatpush.msra.mxu3 %v1494_v40  ;;  %v1773_v40 = vld [vmem:[%s4447_s29 + $0x90] sm:$0xff] }
 0x1fc   : > { %v1417_v42 = vpop.f32.mrf.mxu2  ;;  %v1440_v43 = vpop.f32.mrf.mxu3  ;;  %1595 = vmatmul.f32.vlgmr.msra.gmra.mxu3 %v4628_v21  ;;  %s5852_s25 = scalar_lea.vmem %s5851_s22, %s4478_s6 }
 0x1fd   : > { %v1374_v45 = vpop.f32.mrf.mxu0  ;;  %v1397_v46 = vpop.f32.mrf.mxu1  ;;  %v1441_v56 = vadd.f32 %v1440_v43, %v1417_v42 }
 0x1fe   : > { %v1398_v47 = vadd.f32 %v1397_v46, %v1374_v45 }
 0x200   : > { %1616 = vmatpush.xpose.msrb.mxu0 %v1398_v47 }
 0x204   : > { %v1420_v52 = vpop.f32.mrf.mxu2  ;;  %v1443_v53 = vpop.f32.mrf.mxu3  ;;  %1617 = vmatpush.xpose.msrb.mxu0 %v1395_v49  ;;  %1598 = vmatmul.f32.gmra.mxu3 %v4652_v39 }
 0x205   : > { %v1444_v55 = vadd.f32 %v1443_v53, %v1420_v52 }
 0x207   : > { %1639 = vmatpush.xpose.msrb.mxu1 %v1444_v55  ;;  %1618 = vmatmul.f32.vlgmr.msrb.gmra.mxu0 %v1239_v54 }
 0x208   : > { %1819 = vmatpush.msra.mxu0 %v1785_v10  ;;  %v1764_v10 = vld [vmem:[%s4447_s29 + $0x48] sm:$0xff] }
 0x20a   : > { %1820 = vmatpush.msra.mxu0 %v1783_v14  ;;  %v1762_v14 = vld [vmem:[%s4447_s29 + $0x38] sm:$0xff] }
 0x20b   : > { %1640 = vmatpush.xpose.msrb.mxu1 %v1441_v56 }
 0x20e   : > { %1641 = vmatmul.f32.vlgmr.msrb.gmra.mxu1 %v1285_v57 }
 0x20f   : > { %1621 = vmatmul.f32.gmra.mxu0 %v1242_v58  ;;  %1842 = vmatpush.msra.mxu1 %v1786_v12  ;;  %v1788_v12 = vld [vmem:[%s4447_s29 + $0x108] sm:$0xff] }
 0x211   : > { %1843 = vmatpush.msra.mxu1 %v1784_v15  ;;  %v1759_v15 = vld [vmem:[%s4447_s29 + $0x20] sm:$0xff] }
 0x213   : > { %1844 = vmatpush.msra.mxu1 %v1782_v18  ;;  %v1755_v18 = vld [vmem:[%s4447_s29] sm:$0xff] }
 0x216   : > { %1644 = vmatmul.f32.gmra.mxu1 %v1288_v59 }
 0x218   : > { %v1527_v4 = vpop.f32.mrf.mxu0  ;;  %v1550_v5 = vpop.f32.mrf.mxu1 }
 0x219   : > { %v1551_v8 = vadd.f32 %v1550_v5, %v1527_v4  ;;  %v1817_v4 = vld [vmem:[%s4447_s29 + $0x1f0] sm:$0xff]  ;;  %v1818_v5 = vld [vmem:[%s4447_s29 + $0x1f8] sm:$0xff] }
 0x220   : > { %v1530_v6 = vpop.f32.mrf.mxu0  ;;  %v1553_v7 = vpop.f32.mrf.mxu1 }
 0x221   : > { %v1554_v9 = vadd.f32 %v1553_v7, %v1530_v6  ;;  %v1573_v62 = vpop.f32.mrf.mxu2  ;;  %v1815_v6 = vld [vmem:[%s4447_s29 + $0x1e0] sm:$0xff]  ;;  %v1816_v7 = vld [vmem:[%s4447_s29 + $0x1e8] sm:$0xff] }
 0x223   : > { %1717 = vmatpush.msrb.mxu2 %v1554_v9  ;;  %v1814_v9 = vld [vmem:[%s4447_s29 + $0x1d8] sm:$0xff] }
 0x225   : > { %1718 = vmatpush.msrb.mxu2 %v1551_v8  ;;  %v1813_v8 = vld [vmem:[%s4447_s29 + $0x1d0] sm:$0xff] }
 0x227   : > { %1865 = vmatpush.msra.mxu2 %v1817_v4  ;;  %v1766_v4 = vld [vmem:[%s4447_s29 + $0x58] sm:$0xff] }
 0x229   : > { %v1576_v0 = vpop.f32.mrf.mxu2  ;;  %1866 = vmatpush.msra.mxu2 %v1815_v6  ;;  %v1790_v6 = vld [vmem:[%s4447_s29 + $0x118] sm:$0xff] }
 0x22b   : > { %1867 = vmatpush.msra.mxu2 %v1813_v8 }
 0x22d   : > { %1868 = vmatpush.msra.mxu2 %v1811_v11  ;;  %v1787_v11 = vld [vmem:[%s4447_s29 + $0x100] sm:$0xff] }
 0x27f   : > { %v1596_v63 = vpop.f32.mrf.mxu3 }
 0x280   : > { %v1597_v2 = vadd.f32 %v1596_v63, %v1573_v62  ;;  %v1796_v62 = vld [vmem:[%s4447_s29 + $0x148] sm:$0xff] }
 0x284   : > { %v1619_v22 = vpop.f32.mrf.mxu0 }
 0x285   : > { %v1648_v27 = vmul.f32 0.088388346, %v1619_v22  ;;  %v1810_v22 = vld [vmem:[%s4447_s29 + $0x1b8] sm:$0xff] }
 0x287   : > { %v1653_v33 = vsel %vm1652_vm1, %v1648_v27, -inf  ;;  %v1599_v1 = vpop.f32.mrf.mxu3 }
 0x288   : > { %v1600_v3 = vadd.f32 %v1599_v1, %v1576_v0  ;;  %v1793_v0 = vld [vmem:[%s4447_s29 + $0x130] sm:$0xff]  ;;  %v1768_v1 = vld [vmem:[%s4447_s29 + $0x68] sm:$0xff] }
 0x28a   : > { %1746 = vmatpush.msrb.mxu3 %v1600_v3  ;;  %v1791_v3 = vld [vmem:[%s4447_s29 + $0x120] sm:$0xff] }
 0x28b   : > { %v1642_v17 = vpop.f32.mrf.mxu1 }
 0x28c   : > { %v1650_v19 = vmul.f32 0.088388346, %v1642_v17  ;;  %v1622_v34 = vpop.f32.mrf.mxu0  ;;  %1747 = vmatpush.msrb.mxu3 %v1597_v2  ;;  %v1781_v17 = vld [vmem:[%s4447_s29 + $0xd0] sm:$0xff]  ;;  %v1794_v2 = vld [vmem:[%s4447_s29 + $0x138] sm:$0xff] }
 0x28d   : > { %v1649_v37 = vmul.f32 0.088388346, %v1622_v34  ;;  %1821 = vmatpush.msra.mxu0 %v1781_v17  ;;  %v1803_v34 = vld [vmem:[%s4447_s29 + $0x180] sm:$0xff]  ;;  %v1758_v17 = vld [vmem:[%s4447_s29 + $0x18] sm:$0xff] }
 0x28e   : > { %v1659_v24 = vsel %vm1652_vm1, %v1650_v19, -inf  ;;  %1888 = vmatpush.msra.mxu3 %v1818_v5  ;;  %v1789_v5 = vld [vmem:[%s4447_s29 + $0x110] sm:$0xff] }
 0x28f   : > { %1660 = vmax.xlane.f32.xlu0 %v1659_v24  ;;  %v1656_v41 = vsel %vm1652_vm1, %v1649_v37, -inf  ;;  %v1780_v24 = vld [vmem:[%s4447_s29 + $0xc8] sm:$0xff]  ;;  %1822 = vmatpush.msra.mxu0 %v1779_v23 }
 0x290   : > { %1889 = vmatpush.msra.mxu3 %v1816_v7  ;;  %1845 = vmatpush.msra.mxu1 %v1780_v24 }
 0x292   : > { %1890 = vmatpush.msra.mxu3 %v1814_v9  ;;  %v1763_v9 = vld [vmem:[%s4447_s29 + $0x40] sm:$0xff] }
 0x293   : > { %v1645_v28 = vpop.f32.mrf.mxu1 }
 0x294   : > { %v1651_v30 = vmul.f32 0.088388346, %v1645_v28  ;;  %1891 = vmatpush.msra.mxu3 %v1812_v13  ;;  %v1778_v28 = vld [vmem:[%s4447_s29 + $0xb8] sm:$0xff]  ;;  %v1761_v13 = vld [vmem:[%s4447_s29 + $0x30] sm:$0xff] }
 0x295   : > { %1846 = vmatpush.msra.mxu1 %v1778_v28 }
 0x296   : > { %v1662_v32 = vsel %vm1652_vm1, %v1651_v30, -inf  ;;  %1892 = vmatpush.msra.mxu3 %v1810_v22 }
 0x297   : > { %1663 = vmax.xlane.f32.xlu1 %v1662_v32  ;;  %1654 = vmax.xlane.f32.xlu0 %v1653_v33  ;;  %v1776_v32 = vld [vmem:[%s4447_s29 + $0xa8] sm:$0xff] }
 0x298   : > { %1893 = vmatpush.msra.mxu3 %v1808_v26  ;;  %1847 = vmatpush.msra.mxu1 %v1776_v32  ;;  %v1915_v26 = vld [vmem:[%s5852_s25] sm:$0x3] }
 0x29f   : > { %1657 = vmax.xlane.f32.xlu1 %v1656_v41 }
 0x302   : > { %v1661_v42 = vpop.xlane.xlu0 %1660 }
 0x303   : > { %v1667_v43 = vsub.f32 %v1650_v19, %v1661_v42  ;;  %v1809_v19 = vld [vmem:[%s4447_s29 + $0x1b0] sm:$0xff] }
 0x304   : > { %1869 = vmatpush.msra.mxu2 %v1809_v19  ;;  %v1801_v42 = vld [vmem:[%s4447_s29 + $0x170] sm:$0xff]  ;;  %v1756_v19 = vld [vmem:[%s4447_s29 + $0x8] sm:$0xff] }
 0x305   : > { %v1673_v44 = vmul.f32 1.442695, %v1667_v43  ;;  %v1774_v43 = vld [vmem:[%s4447_s29 + $0x98] sm:$0xff] }
 0x306   : > { %1870 = vmatpush.msra.mxu2 %v1807_v25  ;;  %1848 = vmatpush.msra.mxu1 %v1774_v43 }
 0x307   : > { %3658 = vpow2.f32 %v1673_v44  ;;  %v1802_v44 = vld [vmem:[%s4447_s29 + $0x178] sm:$0xff] }
 0x308   : > { %1871 = vmatpush.msra.mxu2 %v1805_v29  ;;  %v1917_v29 = vperm.slane %v1915_v26, 0 }
 0x30a   : > { %v1664_v45 = vpop.xlane.xlu1 %1663  ;;  %v1655_v46 = vpop.xlane.xlu0 %1654  ;;  %1872 = vmatpush.msra.mxu2 %v1803_v34 }
 0x30b   : > { %v1668_v47 = vsub.f32 %v1651_v30, %v1664_v45  ;;  %v1665_v48 = vsub.f32 %v1648_v27, %v1655_v46  ;;  %v1777_v27 = vld [vmem:[%s4447_s29 + $0xb0] sm:$0xff]  ;;  %v1806_v30 = vld [vmem:[%s4447_s29 + $0x198] sm:$0xff]  ;;  %v1771_v45 = vld [vmem:[%s4447_s29 + $0x80] sm:$0xff] }
 0x30c   : > { %1823 = vmatpush.msra.mxu0 %v1777_v27  ;;  %1894 = vmatpush.msra.mxu3 %v1806_v30  ;;  %v1799_v46 = vld [vmem:[%s4447_s29 + $0x160] sm:$0xff]  ;;  %v1918_v30 = vperm.slane %v1915_v26, 1 }
 0x30d   : > { %v4758_v49 = vpop.eup %3658  ;;  %v1675_v50 = vmul.f32 1.442695, %v1668_v47  ;;  %v1669_v51 = vmul.f32 1.442695, %v1665_v48  ;;  %v1772_v47 = vld [vmem:[%s4447_s29 + $0x88] sm:$0xff]  ;;  %1873 = vmatpush.msra.mxu2 %v1801_v42 }
 0x30e   : > { %v1683_v52 = vsel %vm1652_vm1, %v4758_v49, 0.0  ;;  %1824 = vmatpush.msra.mxu0 %v1775_v31  ;;  %v1800_v48 = vld [vmem:[%s4447_s29 + $0x168] sm:$0xff]  ;;  %1849 = vmatpush.msra.mxu1 %v1772_v47 }
 0x30f   : > { %3660 = vpow2.f32 %v1675_v50  ;;  %1684 = vadd.xlane.f32.xlu2 %v1683_v52  ;;  %v1797_v50 = vld [vmem:[%s4447_s29 + $0x150] sm:$0xff]  ;;  %1874 = vmatpush.msra.mxu2 %v1799_v46  ;;  %v1798_v52 = vld [vmem:[%s4447_s29 + $0x158] sm:$0xff] }
 0x310   : > { %3662 = vpow2.f32 %v1669_v51  ;;  %1825 = vmatpush.msra.mxu0 %v1773_v40  ;;  %v1770_v51 = vld [vmem:[%s4447_s29 + $0x78] sm:$0xff] }
 0x311   : > { %1875 = vmatpush.msra.mxu2 %v1797_v50  ;;  %1850 = vmatpush.msra.mxu1 %v1770_v51  ;;  %v4104_v51 = vmov 256.0  }
 0x312   : > { %v1658_v53 = vpop.xlane.xlu1 %1657  ;;  %1826 = vmatpush.msra.mxu0 %v1771_v45 }
 0x313   : > { %v1666_v54 = vsub.f32 %v1649_v37, %v1658_v53  ;;  %v1804_v37 = vld [vmem:[%s4447_s29 + $0x188] sm:$0xff]  ;;  %v1767_v53 = vld [vmem:[%s4447_s29 + $0x60] sm:$0xff]  ;;  %1851 = vmatpush.msra.mxu1 %v1768_v1 }
 0x314   : > { %1895 = vmatpush.msra.mxu3 %v1804_v37 }
 0x315   : > { %v4762_v55 = vpop.eup %3660  ;;  %v1671_v56 = vmul.f32 1.442695, %v1666_v54  ;;  %1852 = vmatpush.msra.mxu1 %v1766_v4 }
 0x316   : > { %v4764_v57 = vpop.eup %3662  ;;  %v1686_v58 = vsel %vm1652_vm1, %v4762_v55, 0.0  ;;  %1896 = vmatpush.msra.mxu3 %v1802_v44 }
 0x317   : > { %3664 = vpow2.f32 %v1671_v56  ;;  %1687 = vadd.xlane.f32.xlu0 %v1686_v58  ;;  %v1677_v59 = vsel %vm1652_vm1, %v4764_v57, 0.0  ;;  %v1795_v56 = vld [vmem:[%s4447_s29 + $0x140] sm:$0xff]  ;;  %1853 = vmatpush.msra.mxu1 %v1764_v10 }
 0x318   : > { %1678 = vadd.xlane.f32.xlu2 %v1677_v59  ;;  %1897 = vmatpush.msra.mxu3 %v1800_v48 }
 0x319   : > { %1876 = vmatpush.msra.mxu2 %v1795_v56  ;;  %1854 = vmatpush.msra.mxu1 %v1762_v14 }
 0x31a   : > { %1898 = vmatpush.msra.mxu3 %v1798_v52 }
 0x31b   : > { %1877 = vmatpush.msra.mxu2 %v1793_v0 }
 0x31c   : > { %1899 = vmatpush.msra.mxu3 %v1796_v62 }
 0x31d   : > { %v4770_v60 = vpop.eup %3664  ;;  %1878 = vmatpush.msra.mxu2 %v1791_v3 }
 0x31e   : > { %v1680_v61 = vsel %vm1652_vm1, %v4770_v60, 0.0  ;;  %1900 = vmatpush.msra.mxu3 %v1794_v2 }
 0x31f   : > { %1681 = vadd.xlane.f32.xlu1 %v1680_v61  ;;  %1879 = vmatpush.msra.mxu2 %v1789_v5 }
 0x321   : > { %1880 = vmatpush.msra.mxu2 %v1787_v11 }
 0x382   : > { %v1685_v16 = vpop.xlane.xlu2 %1684 }
 0x383   : > { %3666 = vrcp.f32 %v1685_v16  ;;  %v1757_v16 = vld [vmem:[%s4447_s29 + $0x10] sm:$0xff] }
 0x389   : > { %v3667_v33 = vpop.eup %3666 }
 0x38a   : > { %v1695_v35 = vmul.f32 %v3667_v33, %v4758_v49  ;;  %v1688_v36 = vpop.xlane.xlu0 %1687  ;;  %v1769_v49 = vld [vmem:[%s4447_s29 + $0x70] sm:$0xff] }
 0x38b   : > { %v1679_v41 = vpop.xlane.xlu2 %1678  ;;  %3668 = vrcp.f32 %v1688_v36  ;;  %1827 = vmatpush.msra.mxu0 %v1769_v49 }
 0x38c   : > { %3670 = vrcp.f32 %v1679_v41  ;;  %3490 = vmatmul.msk.f32.vlgmr.msrb.gmra.mxu3 %vm1652_vm1, %v1695_v35 }
 0x38d   : > { %1828 = vmatpush.msra.mxu0 %v1767_v53 }
 0x391   : > { %v3669_v54 = vpop.eup %3668 }
 0x392   : > { %v3671_v58 = vpop.eup %3670  ;;  %v1682_v59 = vpop.xlane.xlu1 %1681  ;;  %v1696_v61 = vmul.f32 %v3669_v54, %v4762_v55  ;;  %v1765_v55 = vld [vmem:[%s4447_s29 + $0x50] sm:$0xff] }
 0x393   : > { %v1693_v63 = vmul.f32 %v3671_v58, %v4764_v57  ;;  %3672 = vrcp.f32 %v1682_v59  ;;  %v1792_v57 = vld [vmem:[%s4447_s29 + $0x128] sm:$0xff]  ;;  %1829 = vmatpush.msra.mxu0 %v1765_v55 }
 0x394   : > { %3491 = vmatmul.msk.f32.gmra.mxu3 %vm1652_vm1, %v1696_v61  ;;  %3674 = vrcp.f32 %v4104_v51 }
 0x395   : > { %3488 = vmatmul.msk.f32.vlgmr.msrb.gmra.mxu2 %vm1652_vm1, %v1693_v63  ;;  %1901 = vmatpush.msra.mxu3 %v1792_v57 }
 0x396   : > { %1830 = vmatpush.msra.mxu0 %v1763_v9 }
 0x397   : > { %1902 = vmatpush.msra.mxu3 %v1790_v6 }
 0x398   : > { %1831 = vmatpush.msra.mxu0 %v1761_v13 }
 0x399   : > { %v3673_v7 = vpop.eup %3672  ;;  %1903 = vmatpush.msra.mxu3 %v1788_v12 }
 0x39a   : > { %v1694_v8 = vmul.f32 %v3673_v7, %v4770_v60  ;;  %v1760_v60 = vld [vmem:[%s4447_s29 + $0x28] sm:$0xff]  ;;  %1832 = vmatpush.msra.mxu0 %v1759_v15  ;;  %s5853_s29 = sld [smem:[#allocation40_spill]]  ;;  %v3675_v52 = vpop.eup %3674 }
 0x39b   : > { %1855 = vmatpush.msra.mxu1 %v1760_v60  ;;  %v1938_v53 = vmul.f32 256.0, %v3675_v52  ;;  %vm1942_vm2 = vweird.f32 %v3675_v52 }
 0x39c   : > { %1833 = vmatpush.msra.mxu0 %v1757_v16 }
 0x39d   : > { %3489 = vmatmul.msk.f32.gmra.mxu2 %vm1652_vm1, %v1694_v8  ;;  %1856 = vmatpush.msra.mxu1 %v1758_v17  ;;  %v1939_v58 = vsub.f32 1.0, %v1938_v53 }
 0x39e   : > { %1834 = vmatpush.msra.mxu0 %v1755_v18 }
 0x39f   : > { %1857 = vmatpush.msra.mxu1 %v1756_v19  ;;  %v1940_v57 = vmul.f32 %v3675_v52, %v1939_v58 }
 0x3a0   : > { %v2066_v54 = vld [vmem:[%s5853_s29 + $0x1e0] sm:$0xff]  ;;  %v2063_v62 = vld [vmem:[%s5853_s29 + $0x1c8] sm:$0xff] }
 0x3a1   : > { %v2130_v56 = vld [vmem:[%s5853_s29 + $0x3e0] sm:$0xff]  ;;  %2144 = vmatpush.msrb.mxu0 %v2066_v54  ;;  %v2127_v63 = vld [vmem:[%s5853_s29 + $0x3c8] sm:$0xff]  ;;  %v1941_v13 = vadd.f32 %v3675_v52, %v1940_v57 }
 0x3a2   : > { %2167 = vmatpush.msrb.mxu1 %v2130_v56  ;;  %v2062_v59 = vld [vmem:[%s5853_s29 + $0x1c0] sm:$0xff]  ;;  %v2059_v2 = vld [vmem:[%s5853_s29 + $0x1a8] sm:$0xff] }
 0x3a3   : > { %v2126_v61 = vld [vmem:[%s5853_s29 + $0x3c0] sm:$0xff]  ;;  %2145 = vmatpush.msrb.mxu0 %v2062_v59  ;;  %v2123_v55 = vld [vmem:[%s5853_s29 + $0x3a8] sm:$0xff] }
 0x3a4   : > { %v2058_v0 = vld [vmem:[%s5853_s29 + $0x1a0] sm:$0xff]  ;;  %2168 = vmatpush.msrb.mxu1 %v2126_v61  ;;  %v2055_v5 = vld [vmem:[%s5853_s29 + $0x188] sm:$0xff] }
 0x3a5   : > { %v2122_v1 = vld [vmem:[%s5853_s29 + $0x3a0] sm:$0xff]  ;;  %2146 = vmatpush.msrb.mxu0 %v2058_v0  ;;  %v2119_v6 = vld [vmem:[%s5853_s29 + $0x388] sm:$0xff] }
 0x3a6   : > { %v2054_v3 = vld [vmem:[%s5853_s29 + $0x180] sm:$0xff]  ;;  %2169 = vmatpush.msrb.mxu1 %v2122_v1  ;;  %v2051_v9 = vld [vmem:[%s5853_s29 + $0x168] sm:$0xff] }
 0x3a7   : > { %v2118_v4 = vld [vmem:[%s5853_s29 + $0x380] sm:$0xff]  ;;  %2147 = vmatpush.msrb.mxu0 %v2054_v3  ;;  %v2115_v10 = vld [vmem:[%s5853_s29 + $0x368] sm:$0xff] }
 0x3a8   : > { %v2050_v7 = vld [vmem:[%s5853_s29 + $0x160] sm:$0xff]  ;;  %2170 = vmatpush.msrb.mxu1 %v2118_v4  ;;  %v2047_v14 = vld [vmem:[%s5853_s29 + $0x148] sm:$0xff] }
 0x3a9   : > { %v2114_v8 = vld [vmem:[%s5853_s29 + $0x360] sm:$0xff]  ;;  %2148 = vmatpush.msrb.mxu0 %v2050_v7  ;;  %v2111_v15 = vld [vmem:[%s5853_s29 + $0x348] sm:$0xff]  ;;  %v2068_v7 = vld [vmem:[%s5853_s29 + $0x1f0] sm:$0xff] }
 0x3aa   : > { %v2046_v11 = vld [vmem:[%s5853_s29 + $0x140] sm:$0xff]  ;;  %2171 = vmatpush.msrb.mxu1 %v2114_v8  ;;  %v2043_v17 = vld [vmem:[%s5853_s29 + $0x128] sm:$0xff]  ;;  %v2132_v8 = vld [vmem:[%s5853_s29 + $0x3f0] sm:$0xff] }
 0x3ab   : > { %v2110_v12 = vld [vmem:[%s5853_s29 + $0x340] sm:$0xff]  ;;  %2149 = vmatpush.msrb.mxu0 %v2046_v11  ;;  %v2107_v18 = vld [vmem:[%s5853_s29 + $0x328] sm:$0xff]  ;;  %v2064_v11 = vld [vmem:[%s5853_s29 + $0x1d0] sm:$0xff] }
 0x3ac   : > { %v2042_v60 = vld [vmem:[%s5853_s29 + $0x120] sm:$0xff]  ;;  %2172 = vmatpush.msrb.mxu1 %v2110_v12  ;;  %v2091_v51 = vld [vmem:[%s5853_s29 + $0x2a8] sm:$0xff]  ;;  %v2128_v12 = vld [vmem:[%s5853_s29 + $0x3d0] sm:$0xff] }
 0x3ad   : > { %v2106_v16 = vld [vmem:[%s5853_s29 + $0x320] sm:$0xff]  ;;  %2150 = vmatpush.msrb.mxu0 %v2042_v60  ;;  %v2023_v54 = vld [vmem:[%s5853_s29 + $0x88] sm:$0xff]  ;;  %v2124_v60 = vld [vmem:[%s5853_s29 + $0x3b0] sm:$0xff] }
 0x3ae   : > { %v2038_v19 = vld [vmem:[%s5853_s29 + $0x100] sm:$0xff]  ;;  %2173 = vmatpush.msrb.mxu1 %v2106_v16  ;;  %v2087_v56 = vld [vmem:[%s5853_s29 + $0x288] sm:$0xff]  ;;  %v2061_v16 = vld [vmem:[%s5853_s29 + $0x1b8] sm:$0xff] }
 0x3af   : > { %v2034_v26 = vld [vmem:[%s5853_s29 + $0xe0] sm:$0xff]  ;;  %2151 = vmatpush.msrb.mxu0 %v2038_v19  ;;  %v2083_v59 = vld [vmem:[%s5853_s29 + $0x268] sm:$0xff]  ;;  %v2120_v19 = vld [vmem:[%s5853_s29 + $0x390] sm:$0xff] }
 0x3b0   : > { %v2086_v53 = vld [vmem:[%s5853_s29 + $0x280] sm:$0xff]  ;;  %v2079_v0 = vld [vmem:[%s5853_s29 + $0x248] sm:$0xff] }
 0x3b1   : > { %2152 = vmatpush.msrb.mxu0 %v2034_v26  ;;  %v2082_v58 = vld [vmem:[%s5853_s29 + $0x260] sm:$0xff]  ;;  %v2075_v3 = vld [vmem:[%s5853_s29 + $0x228] sm:$0xff]  ;;  %v2116_v26 = vld [vmem:[%s5853_s29 + $0x370] sm:$0xff] }
 0x3b2   : > { %v2014_v61 = vld [vmem:[%s5853_s29 + $0x40] sm:$0xff] }
 0x3b3   : > { %v2010_v1 = vld [vmem:[%s5853_s29 + $0x20] sm:$0xff] }
 0x3b4   : > { %v2006_v4 = vld [vmem:[%s5853_s29] sm:$0xff] }
 0x3b5   : > { %v2070_v57 = vld [vmem:[%s5853_s29 + $0x200] sm:$0xff] }
 0x40f   : > { %v1749_v22 = vpop.f32.mrf.mxu3 }
 0x410   : > { %1881 = vmatmul.f32.vlgmr.msra.gmra.mxu2 %v1749_v22  ;;  %1904 = vmatmul.f32.vlgmr.msra.gmra.mxu3 %v1749_v22  ;;  %v2102_v22 = vld [vmem:[%s5853_s29 + $0x300] sm:$0xff] }
 0x411   : > { %2174 = vmatpush.msrb.mxu1 %v2102_v22  ;;  %v2057_v22 = vld [vmem:[%s5853_s29 + $0x198] sm:$0xff] }
 0x417   : > { %v1752_v23 = vpop.f32.mrf.mxu3 }
 0x418   : > { %v1720_v24 = vpop.f32.mrf.mxu2  ;;  %1884 = vmatmul.f32.gmra.mxu2 %v1752_v23  ;;  %1907 = vmatmul.f32.gmra.mxu3 %v1752_v23  ;;  %v4897_v23 = vsel %vm1942_vm2, %v3675_v52, %v1941_v13  ;;  %v2022_v52 = vld [vmem:[%s5853_s29 + $0x80] sm:$0xff]  ;;  %v2065_v13 = vld [vmem:[%s5853_s29 + $0x1d8] sm:$0xff] }
 0x419   : > { %1835 = vmatmul.f32.vlgmr.msra.gmra.mxu0 %v1720_v24  ;;  %1858 = vmatmul.f32.vlgmr.msra.gmra.mxu1 %v1720_v24  ;;  %v2039_v24 = vld [vmem:[%s5853_s29 + $0x108] sm:$0xff] }
 0x420   : > { %v1723_v25 = vpop.f32.mrf.mxu2 }
 0x421   : > { %1838 = vmatmul.f32.gmra.mxu0 %v1723_v25  ;;  %1861 = vmatmul.f32.gmra.mxu1 %v1723_v25  ;;  %v2103_v25 = vld [vmem:[%s5853_s29 + $0x308] sm:$0xff] }
 0x493   : > { %v1882_v27 = vpop.f32.mrf.mxu2  ;;  %v1905_v28 = vpop.f32.mrf.mxu3 }
 0x496   : > { %v1836_v31 = vpop.f32.mrf.mxu0  ;;  %v1859_v32 = vpop.f32.mrf.mxu1 }
 0x497   : > { %v1911_v33 = vadd.f32 %v1882_v27, %v1836_v31  ;;  %v1912_v34 = vadd.f32 %v1905_v28, %v1859_v32  ;;  %v2098_v27 = vld [vmem:[%s5853_s29 + $0x2e0] sm:$0xff] }
 0x498   : > { %2175 = vmatpush.msrb.mxu1 %v2098_v27  ;;  %v2053_v27 = vld [vmem:[%s5853_s29 + $0x178] sm:$0xff] }
 0x499   : > { %v1921_v35 = vadd.f32 %v1917_v29, %v1911_v33  ;;  %v1922_v36 = vadd.f32 %v1918_v30, %v1912_v34 }
 0x49b   : > { %v4852_v37 = vadd.f32 %v1921_v35, %v4626_v20  ;;  %v4855_v40 = vadd.f32 %v1922_v36, %v4628_v21  ;;  %v1885_v41 = vpop.f32.mrf.mxu2  ;;  %v1908_v42 = vpop.f32.mrf.mxu3 }
 0x49d   : > { %v1931_v43 = vadd.f32 %v4855_v40, %v4852_v37 }
 0x49e   : > { %v1839_v44 = vpop.f32.mrf.mxu0  ;;  %v1862_v45 = vpop.f32.mrf.mxu1 }
 0x49f   : > { %v1913_v46 = vadd.f32 %v1885_v41, %v1839_v44  ;;  %v1914_v47 = vadd.f32 %v1908_v42, %v1862_v45  ;;  %1932 = vadd.xlane.f32.xlu2 %v1931_v43 }
 0x4a1   : > { %v1923_v48 = vadd.f32 %v1917_v29, %v1913_v46  ;;  %v1924_v20 = vadd.f32 %v1918_v30, %v1914_v47  ;;  %v2035_v29 = vld [vmem:[%s5853_s29 + $0xe8] sm:$0xff]  ;;  %v2030_v46 = vld [vmem:[%s5853_s29 + $0xc0] sm:$0xff] }
 0x4a2   : > { %v2099_v30 = vld [vmem:[%s5853_s29 + $0x2e8] sm:$0xff]  ;;  %v2094_v47 = vld [vmem:[%s5853_s29 + $0x2c0] sm:$0xff]  ;;  %2153 = vmatpush.msrb.mxu0 %v2030_v46  ;;  %v2105_v46 = vld [vmem:[%s5853_s29 + $0x318] sm:$0xff] }
 0x4a3   : > { %v4860_v21 = vadd.f32 %v1923_v48, %v4650_v38  ;;  %v4863_v49 = vadd.f32 %v1924_v20, %v4652_v39  ;;  %v2067_v38 = vld [vmem:[%s5853_s29 + $0x1e8] sm:$0xff]  ;;  %2176 = vmatpush.msrb.mxu1 %v2094_v47  ;;  %v2036_v47 = vld [vmem:[%s5853_s29 + $0xf0] sm:$0xff] }
 0x4a4   : > { %v2131_v39 = vld [vmem:[%s5853_s29 + $0x3e8] sm:$0xff]  ;;  %2190 = vmatpush.msrb.mxu2 %v2067_v38  ;;  %v2018_v38 = vld [vmem:[%s5853_s29 + $0x60] sm:$0xff] }
 0x4a5   : > { %v1934_v50 = vadd.f32 %v4863_v49, %v4860_v21  ;;  %2213 = vmatpush.msrb.mxu3 %v2131_v39  ;;  %v2031_v48 = vld [vmem:[%s5853_s29 + $0xc8] sm:$0xff] }
 0x4a6   : > { %2191 = vmatpush.msrb.mxu2 %v2063_v62  ;;  %v2095_v20 = vld [vmem:[%s5853_s29 + $0x2c8] sm:$0xff]  ;;  %v2078_v62 = vld [vmem:[%s5853_s29 + $0x240] sm:$0xff] }
 0x4a7   : > { %1935 = vadd.xlane.f32.xlu0 %v1934_v50  ;;  %2214 = vmatpush.msrb.mxu3 %v2127_v63  ;;  %v2027_v50 = vld [vmem:[%s5853_s29 + $0xa8] sm:$0xff] }
 0x4a8   : > { %2192 = vmatpush.msrb.mxu2 %v2059_v2  ;;  %v2019_v39 = vld [vmem:[%s5853_s29 + $0x68] sm:$0xff]  ;;  %v2074_v2 = vld [vmem:[%s5853_s29 + $0x220] sm:$0xff] }
 0x4a9   : > { %2215 = vmatpush.msrb.mxu3 %v2123_v55  ;;  %v2015_v63 = vld [vmem:[%s5853_s29 + $0x48] sm:$0xff] }
 0x4aa   : > { %2193 = vmatpush.msrb.mxu2 %v2055_v5  ;;  %v2011_v55 = vld [vmem:[%s5853_s29 + $0x28] sm:$0xff] }
 0x4ab   : > { %2216 = vmatpush.msrb.mxu3 %v2119_v6  ;;  %v2007_v5 = vld [vmem:[%s5853_s29 + $0x8] sm:$0xff] }
 0x4ac   : > { %2194 = vmatpush.msrb.mxu2 %v2051_v9  ;;  %v2071_v6 = vld [vmem:[%s5853_s29 + $0x208] sm:$0xff]  ;;  %v2069_v9 = vld [vmem:[%s5853_s29 + $0x1f8] sm:$0xff] }
 0x4ad   : > { %2217 = vmatpush.msrb.mxu3 %v2115_v10  ;;  %v2133_v10 = vld [vmem:[%s5853_s29 + $0x3f8] sm:$0xff] }
 0x4ae   : > { %2195 = vmatpush.msrb.mxu2 %v2047_v14  ;;  %v2129_v14 = vld [vmem:[%s5853_s29 + $0x3d8] sm:$0xff] }
 0x4af   : > { %2218 = vmatpush.msrb.mxu3 %v2111_v15  ;;  %v2060_v15 = vld [vmem:[%s5853_s29 + $0x1b0] sm:$0xff] }
 0x4b0   : > { %2196 = vmatpush.msrb.mxu2 %v2043_v17  ;;  %v2125_v17 = vld [vmem:[%s5853_s29 + $0x3b8] sm:$0xff] }
 0x4b1   : > { %2219 = vmatpush.msrb.mxu3 %v2107_v18  ;;  %v2056_v18 = vld [vmem:[%s5853_s29 + $0x190] sm:$0xff] }
 0x4b2   : > { %2197 = vmatpush.msrb.mxu2 %v2039_v24  ;;  %v2121_v24 = vld [vmem:[%s5853_s29 + $0x398] sm:$0xff] }
 0x4b3   : > { %2220 = vmatpush.msrb.mxu3 %v2103_v25  ;;  %v2052_v25 = vld [vmem:[%s5853_s29 + $0x170] sm:$0xff] }
 0x4b4   : > { %2198 = vmatpush.msrb.mxu2 %v2035_v29  ;;  %v2048_v29 = vld [vmem:[%s5853_s29 + $0x150] sm:$0xff] }
 0x4b5   : > { %2221 = vmatpush.msrb.mxu3 %v2099_v30  ;;  %v2112_v30 = vld [vmem:[%s5853_s29 + $0x350] sm:$0xff] }
 0x4b6   : > { %2199 = vmatpush.msrb.mxu2 %v2031_v48  ;;  %v2100_v48 = vld [vmem:[%s5853_s29 + $0x2f0] sm:$0xff] }
 0x4b7   : > { %2222 = vmatpush.msrb.mxu3 %v2095_v20  ;;  %v2037_v20 = vld [vmem:[%s5853_s29 + $0xf8] sm:$0xff] }
 0x4b8   : > { %2200 = vmatpush.msrb.mxu2 %v2027_v50  ;;  %v2032_v50 = vld [vmem:[%s5853_s29 + $0xd0] sm:$0xff] }
 0x4b9   : > { %2223 = vmatpush.msrb.mxu3 %v2091_v51  ;;  %v2096_v51 = vld [vmem:[%s5853_s29 + $0x2d0] sm:$0xff] }
 0x4ba   : > { %2201 = vmatpush.msrb.mxu2 %v2023_v54  ;;  %v2097_v54 = vld [vmem:[%s5853_s29 + $0x2d8] sm:$0xff] }
 0x4bb   : > { %2224 = vmatpush.msrb.mxu3 %v2087_v56  ;;  %v2028_v56 = vld [vmem:[%s5853_s29 + $0xb0] sm:$0xff] }
 0x4bc   : > { %2202 = vmatpush.msrb.mxu2 %v2019_v39  ;;  %v2093_v39 = vld [vmem:[%s5853_s29 + $0x2b8] sm:$0xff] }
 0x4bd   : > { %2225 = vmatpush.msrb.mxu3 %v2083_v59  ;;  %v2024_v59 = vld [vmem:[%s5853_s29 + $0x90] sm:$0xff] }
 0x4be   : > { %2203 = vmatpush.msrb.mxu2 %v2015_v63  ;;  %v2025_v63 = vld [vmem:[%s5853_s29 + $0x98] sm:$0xff] }
 0x4bf   : > { %2226 = vmatpush.msrb.mxu3 %v2079_v0  ;;  %v2089_v0 = vld [vmem:[%s5853_s29 + $0x298] sm:$0xff] }
 0x4c0   : > { %2204 = vmatpush.msrb.mxu2 %v2011_v55  ;;  %v2021_v55 = vld [vmem:[%s5853_s29 + $0x78] sm:$0xff] }
 0x4c1   : > { %2227 = vmatpush.msrb.mxu3 %v2075_v3  ;;  %v2085_v3 = vld [vmem:[%s5853_s29 + $0x278] sm:$0xff] }
 0x4c2   : > { %2205 = vmatpush.msrb.mxu2 %v2007_v5 }
 0x4c3   : > { %2228 = vmatpush.msrb.mxu3 %v2071_v6  ;;  %v2017_v6 = vld [vmem:[%s5853_s29 + $0x58] sm:$0xff] }
 0x4c4   : > { %2282 = vmatpush.msra.mxu2 %v2069_v9 }
 0x4c5   : > { %2305 = vmatpush.msra.mxu3 %v2133_v10  ;;  %v2076_v10 = vld [vmem:[%s5853_s29 + $0x230] sm:$0xff] }
 0x4c6   : > { %2283 = vmatpush.msra.mxu2 %v2065_v13  ;;  %v2008_v13 = vld [vmem:[%s5853_s29 + $0x10] sm:$0xff] }
 0x4c7   : > { %2306 = vmatpush.msra.mxu3 %v2129_v14  ;;  %v2072_v14 = vld [vmem:[%s5853_s29 + $0x210] sm:$0xff] }
 0x4c8   : > { %2284 = vmatpush.msra.mxu2 %v2061_v16  ;;  %v2009_v16 = vld [vmem:[%s5853_s29 + $0x18] sm:$0xff] }
 0x4c9   : > { %2307 = vmatpush.msra.mxu3 %v2125_v17  ;;  %v2073_v17 = vld [vmem:[%s5853_s29 + $0x218] sm:$0xff] }
 0x4ca   : > { %2285 = vmatpush.msra.mxu2 %v2057_v22 }
 0x4cb   : > { %2308 = vmatpush.msra.mxu3 %v2121_v24  ;;  %v1929_v24 = vld [vmem:[%s5855_s2] sm:$0x3] }
 0x4cc   : > { %2286 = vmatpush.msra.mxu2 %v2053_v27 }
 0x512   : > { %v1933_v28 = vpop.xlane.xlu2 %1932 }
 0x513   : > { %v1944_v31 = vmul.f32 %v4897_v23, %v1933_v28  ;;  %v2117_v28 = vld [vmem:[%s5853_s29 + $0x378] sm:$0xff] }
 0x514   : > { %2309 = vmatpush.msra.mxu3 %v2117_v28 }
 0x515   : > { %v4907_v32 = vsub.f32 %v4852_v37, %v1944_v31  ;;  %v4910_v33 = vsub.f32 %v4855_v40, %v1944_v31  ;;  %v2049_v31 = vld [vmem:[%s5853_s29 + $0x158] sm:$0xff] }
 0x516   : > { %2287 = vmatpush.msra.mxu2 %v2049_v31  ;;  %v1990_v31 = vperm.slane %v1929_v24, 1 }
 0x517   : > { %v1950_v34 = vmul.f32 %v4907_v32, %v4907_v32  ;;  %v1951_v35 = vmul.f32 %v4910_v33, %v4910_v33 }
 0x519   : > { %v1954_v36 = vadd.f32 %v1951_v35, %v1950_v34  ;;  %v2113_v34 = vld [vmem:[%s5853_s29 + $0x358] sm:$0xff]  ;;  %v2044_v35 = vld [vmem:[%s5853_s29 + $0x130] sm:$0xff] }
 0x51a   : > { %v1936_v41 = vpop.xlane.xlu0 %1935  ;;  %2310 = vmatpush.msra.mxu3 %v2113_v34 }
 0x51b   : > { %v1945_v37 = vmul.f32 %v4897_v23, %v1936_v41  ;;  %1955 = vadd.xlane.f32.xlu1 %v1954_v36  ;;  %v2108_v36 = vld [vmem:[%s5853_s29 + $0x330] sm:$0xff]  ;;  %v2045_v41 = vld [vmem:[%s5853_s29 + $0x138] sm:$0xff] }
 0x51c   : > { %2288 = vmatpush.msra.mxu2 %v2045_v41 }
 0x51d   : > { %v4918_v40 = vsub.f32 %v4860_v21, %v1945_v37  ;;  %v4921_v42 = vsub.f32 %v4863_v49, %v1945_v37  ;;  %v2026_v21 = vld [vmem:[%s5853_s29 + $0xa0] sm:$0xff]  ;;  %v2109_v37 = vld [vmem:[%s5853_s29 + $0x338] sm:$0xff] }
 0x51e   : > { %v2090_v49 = vld [vmem:[%s5853_s29 + $0x2a0] sm:$0xff]  ;;  %2154 = vmatpush.msrb.mxu0 %v2026_v21  ;;  %2311 = vmatpush.msra.mxu3 %v2109_v37  ;;  %v2101_v21 = vld [vmem:[%s5853_s29 + $0x2f8] sm:$0xff] }
 0x51f   : > { %v1952_v43 = vmul.f32 %v4918_v40, %v4918_v40  ;;  %v1953_v44 = vmul.f32 %v4921_v42, %v4921_v42  ;;  %2177 = vmatpush.msrb.mxu1 %v2090_v49 }
 0x520   : > { %2155 = vmatpush.msrb.mxu0 %v2022_v52  ;;  %2312 = vmatpush.msra.mxu3 %v2105_v46  ;;  %v2033_v52 = vld [vmem:[%s5853_s29 + $0xd8] sm:$0xff] }
 0x521   : > { %v1957_v45 = vadd.f32 %v1953_v44, %v1952_v43  ;;  %2178 = vmatpush.msrb.mxu1 %v2086_v53  ;;  %v2040_v43 = vld [vmem:[%s5853_s29 + $0x110] sm:$0xff] }
 0x522   : > { %2156 = vmatpush.msrb.mxu0 %v2018_v38  ;;  %v2104_v44 = vld [vmem:[%s5853_s29 + $0x310] sm:$0xff]  ;;  %2313 = vmatpush.msra.mxu3 %v2101_v21 }
 0x523   : > { %1958 = vadd.xlane.f32.xlu2 %v1957_v45  ;;  %2179 = vmatpush.msrb.mxu1 %v2082_v58  ;;  %v2041_v45 = vld [vmem:[%s5853_s29 + $0x118] sm:$0xff]  ;;  %v2092_v38 = vld [vmem:[%s5853_s29 + $0x2b0] sm:$0xff] }
 0x524   : > { %2157 = vmatpush.msrb.mxu0 %v2014_v61  ;;  %2289 = vmatpush.msra.mxu2 %v2041_v45  ;;  %v2029_v58 = vld [vmem:[%s5853_s29 + $0xb8] sm:$0xff] }
 0x525   : > { %2180 = vmatpush.msrb.mxu1 %v2078_v62  ;;  %2314 = vmatpush.msra.mxu3 %v2097_v54  ;;  %v2088_v62 = vld [vmem:[%s5853_s29 + $0x290] sm:$0xff] }
 0x526   : > { %2158 = vmatpush.msrb.mxu0 %v2010_v1  ;;  %2290 = vmatpush.msra.mxu2 %v2037_v20  ;;  %v2020_v1 = vld [vmem:[%s5853_s29 + $0x70] sm:$0xff] }
 0x527   : > { %2181 = vmatpush.msrb.mxu1 %v2074_v2  ;;  %2315 = vmatpush.msra.mxu3 %v2093_v39  ;;  %v2084_v2 = vld [vmem:[%s5853_s29 + $0x270] sm:$0xff] }
 0x528   : > { %2159 = vmatpush.msrb.mxu0 %v2006_v4  ;;  %2291 = vmatpush.msra.mxu2 %v2033_v52  ;;  %v2016_v4 = vld [vmem:[%s5853_s29 + $0x50] sm:$0xff] }
 0x529   : > { %2182 = vmatpush.msrb.mxu1 %v2070_v57  ;;  %2316 = vmatpush.msra.mxu3 %v2089_v0  ;;  %v2080_v57 = vld [vmem:[%s5853_s29 + $0x250] sm:$0xff] }
 0x52a   : > { %2236 = vmatpush.msra.mxu0 %v2068_v7  ;;  %2292 = vmatpush.msra.mxu2 %v2029_v58  ;;  %v2081_v7 = vld [vmem:[%s5853_s29 + $0x258] sm:$0xff] }
 0x52b   : > { %2259 = vmatpush.msra.mxu1 %v2132_v8  ;;  %2317 = vmatpush.msra.mxu3 %v2085_v3  ;;  %v2012_v8 = vld [vmem:[%s5853_s29 + $0x30] sm:$0xff] }
 0x52c   : > { %2237 = vmatpush.msra.mxu0 %v2064_v11  ;;  %2293 = vmatpush.msra.mxu2 %v2025_v63  ;;  %v2013_v11 = vld [vmem:[%s5853_s29 + $0x38] sm:$0xff] }
 0x52d   : > { %2260 = vmatpush.msra.mxu1 %v2128_v12  ;;  %v2077_v12 = vld [vmem:[%s5853_s29 + $0x238] sm:$0xff]  ;;  %2318 = vmatpush.msra.mxu3 %v2081_v7 }
 0x52e   : > { %2238 = vmatpush.msra.mxu0 %v2060_v15  ;;  %2294 = vmatpush.msra.mxu2 %v2021_v55 }
 0x52f   : > { %2261 = vmatpush.msra.mxu1 %v2124_v60  ;;  %2319 = vmatpush.msra.mxu3 %v2077_v12 }
 0x530   : > { %2239 = vmatpush.msra.mxu0 %v2056_v18  ;;  %2295 = vmatpush.msra.mxu2 %v2017_v6 }
 0x531   : > { %2262 = vmatpush.msra.mxu1 %v2120_v19  ;;  %2320 = vmatpush.msra.mxu3 %v2073_v17 }
 0x532   : > { %2240 = vmatpush.msra.mxu0 %v2052_v25  ;;  %2296 = vmatpush.msra.mxu2 %v2013_v11 }
 0x533   : > { %2263 = vmatpush.msra.mxu1 %v2116_v26 }
 0x534   : > { %2241 = vmatpush.msra.mxu0 %v2048_v29  ;;  %2297 = vmatpush.msra.mxu2 %v2009_v16  ;;  %v1930_v29 = vld [vmem:[%s1005_s23] sm:$0x3]  ;;  %s5857_s23 = sld [smem:[#allocation41_spill]] }
 0x535   : > { %2264 = vmatpush.msra.mxu1 %v2112_v30  ;;  %v1989_v30 = vperm.slane %v1929_v24, 0  ;;  %v1998_v37 = vperm.slane %v1930_v29, 0 }
 0x536   : > { %2242 = vmatpush.msra.mxu0 %v2044_v35 }
 0x537   : > { %2265 = vmatpush.msra.mxu1 %v2108_v36 }
 0x538   : > { %2243 = vmatpush.msra.mxu0 %v2040_v43  ;;  %v1999_v43 = vperm.slane %v1930_v29, 1 }
 0x539   : > { %2266 = vmatpush.msra.mxu1 %v2104_v44 }
 0x53a   : > { %2244 = vmatpush.msra.mxu0 %v2036_v47  ;;  %v2674_v54 = vld [vmem:[%s5857_s23 + $0xd0] sm:$0xff]  ;;  %v2708_v39 = vld [vmem:[%s5857_s23 + $0x1e0] sm:$0xff] }
 0x53b   : > { %2267 = vmatpush.msra.mxu1 %v2100_v48  ;;  %v2670_v58 = vld [vmem:[%s5857_s23 + $0xb0] sm:$0xff]  ;;  %v2664_v6 = vld [vmem:[%s5857_s23 + $0x80] sm:$0xff] }
 0x53c   : > { %2245 = vmatpush.msra.mxu0 %v2032_v50  ;;  %v2706_v63 = vld [vmem:[%s5857_s23 + $0x1d0] sm:$0xff]  ;;  %v2700_v12 = vld [vmem:[%s5857_s23 + $0x1a0] sm:$0xff] }
 0x53d   : > { %2268 = vmatpush.msra.mxu1 %v2096_v51  ;;  %v2666_v3 = vld [vmem:[%s5857_s23 + $0x90] sm:$0xff] }
 0x53e   : > { %2246 = vmatpush.msra.mxu0 %v2028_v56  ;;  %v2672_v56 = vld [vmem:[%s5857_s23 + $0xc0] sm:$0xff]  ;;  %v2702_v7 = vld [vmem:[%s5857_s23 + $0x1b0] sm:$0xff] }
 0x53f   : > { %2269 = vmatpush.msra.mxu1 %v2092_v38  ;;  %v2710_v38 = vld [vmem:[%s5857_s23 + $0x1f0] sm:$0xff] }
 0x540   : > { %2247 = vmatpush.msra.mxu0 %v2024_v59  ;;  %v5072_v59 = vld [vmem:[%s4495_s1] sm:$0xf]  ;;  %v2662_v11 = vld [vmem:[%s5857_s23 + $0x70] sm:$0xff] }
 0x541   : > { %2270 = vmatpush.msra.mxu1 %v2088_v62  ;;  %v2668_v62 = vld [vmem:[%s5857_s23 + $0xa0] sm:$0xff] }
 0x542   : > { %2248 = vmatpush.msra.mxu0 %v2020_v1 }
 0x543   : > { %2271 = vmatpush.msra.mxu1 %v2084_v2 }
 0x544   : > { %2249 = vmatpush.msra.mxu0 %v2016_v4  ;;  %v2704_v4 = vld [vmem:[%s5857_s23 + $0x1c0] sm:$0xff] }
 0x545   : > { %2272 = vmatpush.msra.mxu1 %v2080_v57  ;;  %v2137_v57 = vperm.slane %v5072_v59, 1 }
 0x546   : > { %2250 = vmatpush.msra.mxu0 %v2012_v8 }
 0x547   : > { %2273 = vmatpush.msra.mxu1 %v2076_v10 }
 0x548   : > { %2251 = vmatpush.msra.mxu0 %v2008_v13  ;;  %v2742_v13 = vld [vmem:[%s5857_s23 + $0x2f0] sm:$0xff] }
 0x549   : > { %2274 = vmatpush.msra.mxu1 %v2072_v14 }
 0x58e   : > { %v1956_v49 = vpop.xlane.xlu1 %1955 }
 0x58f   : > { %v1960_v53 = vmul.f32 %v1956_v49, %v4897_v23 }
 0x591   : > { %v5001_v61 = vadd.f32 1e-05, %v1960_v53 }
 0x593   : > { %3676 = vrsqrt.f32 %v5001_v61  ;;  %vm1970_vm4 = vweird.f32 %v5001_v61 }
 0x596   : > { %v1959_v5 = vpop.xlane.xlu2 %1958 }
 0x597   : > { %v1961_v9 = vmul.f32 %v1959_v5, %v4897_v23 }
 0x599   : > { %v3677_v15 = vpop.eup %3676  ;;  %v1963_v60 = vadd.f32 1e-05, %v1961_v9 }
 0x59a   : > { %v1965_v18 = vmul.f32 %v3677_v15, %v5001_v61  ;;  %vm1971_vm3 = vweird.f32 %v3677_v15  ;;  %v2136_v61 = vperm.slane %v5072_v59, 0 }
 0x59b   : > { %3678 = vrsqrt.f32 %v1963_v60  ;;  %vm1972_vm5 = vmor %vm1970_vm4, %vm1971_vm3  ;;  %vm1980_vm7 = vweird.f32 %v1963_v60 }
 0x59c   : > { %v1966_v19 = vmul.f32 %v3677_v15, %v1965_v18 }
 0x59e   : > { %v1967_v22 = vmul.f32 0.5, %v1966_v19 }
 0x5a0   : > { %v1968_v25 = vsub.f32 1.5, %v1967_v22 }
 0x5a1   : > { %v3679_v26 = vpop.eup %3678 }
 0x5a2   : > { %v1969_v27 = vmul.f32 %v3677_v15, %v1968_v25  ;;  %v1975_v28 = vmul.f32 %v3679_v26, %v1963_v60  ;;  %vm1981_vm6 = vweird.f32 %v3679_v26 }
 0x5a3   : > { %vm1982_vm8 = vmor %vm1980_vm7, %vm1981_vm6 }
 0x5a4   : > { %v1973_v34 = vsel %vm1972_vm5, %v3677_v15, %v1969_v27  ;;  %v1976_v35 = vmul.f32 %v3679_v26, %v1975_v28 }
 0x5a5   : > { %v1984_v36 = vmul.f32 %v1973_v34, %v4907_v32  ;;  %v1985_v41 = vmul.f32 %v1973_v34, %v4910_v33 }
 0x5a6   : > { %v1977_v44 = vmul.f32 0.5, %v1976_v35 }
 0x5a7   : > { %v1993_v45 = vmul.f32 %v1989_v30, %v1984_v36  ;;  %v1994_v46 = vmul.f32 %v1990_v31, %v1985_v41  ;;  %v2698_v36 = vld [vmem:[%s5857_s23 + $0x190] sm:$0xff]  ;;  %v2740_v41 = vld [vmem:[%s5857_s23 + $0x2e0] sm:$0xff] }
 0x5a8   : > { %v1978_v47 = vsub.f32 1.5, %v1977_v44 }
 0x5a9   : > { %v5038_v48 = vadd.f32 %v1998_v37, %v1993_v45  ;;  %v5040_v20 = vadd.f32 %v1999_v43, %v1994_v46  ;;  %v2139_v46 = vperm.slane %v5072_v59, 3 }
 0x5aa   : > { %v1979_v21 = vmul.f32 %v3679_v26, %v1978_v47  ;;  %v2658_v47 = vld [vmem:[%s5857_s23 + $0x50] sm:$0xff] }
 0x5ab   : > { %2160 = vmatmul.f32.vlgmr.msrb.gmra.mxu0 %v5038_v48  ;;  %2183 = vmatmul.f32.vlgmr.msrb.gmra.mxu1 %v5040_v20 }
 0x5ac   : > { %v1983_v32 = vsel %vm1982_vm8, %v3679_v26, %v1979_v21  ;;  %2206 = vmatmul.f32.vlgmr.msrb.gmra.mxu2 %v5038_v48  ;;  %2229 = vmatmul.f32.vlgmr.msrb.gmra.mxu3 %v5040_v20  ;;  %v2138_v26 = vperm.slane %v5072_v59, 2  ;;  %v2696_v21 = vld [vmem:[%s5857_s23 + $0x180] sm:$0xff]  ;;  %v2750_v59 = vld [vmem:[%s5857_s23 + $0x330] sm:$0xff] }
 0x5ad   : > { %v1986_v33 = vmul.f32 %v1983_v32, %v4918_v40  ;;  %v1987_v49 = vmul.f32 %v1983_v32, %v4921_v42  ;;  %v2678_v40 = vld [vmem:[%s5857_s23 + $0xf0] sm:$0xff]  ;;  %v2676_v42 = vld [vmem:[%s5857_s23 + $0xe0] sm:$0xff]  ;;  %2805 = vmatpush.msrb.mxu1 %v2710_v38  ;;  %2828 = vmatpush.msrb.mxu2 %v2742_v13 }
 0x5ae   : > { %2782 = vmatpush.msrb.mxu0 %v2678_v40  ;;  %v2738_v32 = vld [vmem:[%s5857_s23 + $0x2d0] sm:$0xff]  ;;  %v2736_v38 = vld [vmem:[%s5857_s23 + $0x2c0] sm:$0xff] }
 0x5af   : > { %v1995_v50 = vmul.f32 %v1989_v30, %v1986_v33  ;;  %v1996_v51 = vmul.f32 %v1990_v31, %v1987_v49  ;;  %2806 = vmatpush.msrb.mxu1 %v2708_v39  ;;  %v2660_v30 = vld [vmem:[%s5857_s23 + $0x60] sm:$0xff]  ;;  %2829 = vmatpush.msrb.mxu2 %v2740_v41 }
 0x5b0   : > { %2783 = vmatpush.msrb.mxu0 %v2676_v42  ;;  %v2652_v13 = vld [vmem:[%s5857_s23 + $0x20] sm:$0xff] }
 0x5b1   : > { %v5048_v52 = vadd.f32 %v1998_v37, %v1995_v50  ;;  %v5050_v53 = vadd.f32 %v1999_v43, %v1996_v51  ;;  %2807 = vmatpush.msrb.mxu1 %v2706_v63  ;;  %2830 = vmatpush.msrb.mxu2 %v2738_v32  ;;  %v2774_v63 = vld [vmem:[%s5857_s23 + $0x3f0] sm:$0xff] }
 0x5b2   : > { %2784 = vmatpush.msrb.mxu0 %v2674_v54  ;;  %v2656_v54 = vld [vmem:[%s5857_s23 + $0x40] sm:$0xff]  ;;  %2851 = vmatpush.msrb.mxu3 %v2774_v63 }
 0x5b3   : > { %2163 = vmatmul.f32.gmra.mxu0 %v5048_v52  ;;  %2186 = vmatmul.f32.gmra.mxu1 %v5050_v53 }
 0x5b4   : > { %2209 = vmatmul.f32.gmra.mxu2 %v5048_v52  ;;  %2232 = vmatmul.f32.gmra.mxu3 %v5050_v53 }
 0x5b5   : > { %2785 = vmatpush.msrb.mxu0 %v2672_v56  ;;  %2808 = vmatpush.msrb.mxu1 %v2704_v4  ;;  %v2694_v56 = vld [vmem:[%s5857_s23 + $0x170] sm:$0xff] }
 0x5b6   : > { %2831 = vmatpush.msrb.mxu2 %v2736_v38 }
 0x5b7   : > { %2786 = vmatpush.msrb.mxu0 %v2670_v58  ;;  %2809 = vmatpush.msrb.mxu1 %v2702_v7  ;;  %v2692_v7 = vld [vmem:[%s5857_s23 + $0x160] sm:$0xff] }
 0x5b9   : > { %2787 = vmatpush.msrb.mxu0 %v2668_v62  ;;  %2810 = vmatpush.msrb.mxu1 %v2700_v12  ;;  %v2772_v12 = vld [vmem:[%s5857_s23 + $0x3e0] sm:$0xff] }
 0x5ba   : > { %2852 = vmatpush.msrb.mxu3 %v2772_v12 }
 0x5bb   : > { %2252 = vmatmul.f32.vlgmr.msra.gmra.mxu0 %v5038_v48  ;;  %2275 = vmatmul.f32.vlgmr.msra.gmra.mxu1 %v5040_v20 }
 0x5bc   : > { %2298 = vmatmul.f32.vlgmr.msra.gmra.mxu2 %v5038_v48  ;;  %2321 = vmatmul.f32.vlgmr.msra.gmra.mxu3 %v5040_v20 }
 0x5bd   : > { %2788 = vmatpush.msrb.mxu0 %v2666_v3  ;;  %2811 = vmatpush.msrb.mxu1 %v2698_v36  ;;  %v2675_v36 = vld [vmem:[%s5857_s23 + $0xd8] sm:$0xff] }
 0x5bf   : > { %2789 = vmatpush.msrb.mxu0 %v2664_v6  ;;  %2812 = vmatpush.msrb.mxu1 %v2696_v21  ;;  %v2654_v6 = vld [vmem:[%s5857_s23 + $0x30] sm:$0xff] }
 0x5c1   : > { %2790 = vmatpush.msrb.mxu0 %v2662_v11  ;;  %2813 = vmatpush.msrb.mxu1 %v2694_v56  ;;  %v2734_v11 = vld [vmem:[%s5857_s23 + $0x2b0] sm:$0xff] }
 0x5c2   : > { %2832 = vmatpush.msrb.mxu2 %v2734_v11 }
 0x5c3   : > { %2255 = vmatmul.f32.gmra.mxu0 %v5048_v52  ;;  %2278 = vmatmul.f32.gmra.mxu1 %v5050_v53 }
 0x5c4   : > { %2301 = vmatmul.f32.gmra.mxu2 %v5048_v52  ;;  %2324 = vmatmul.f32.gmra.mxu3 %v5050_v53 }
 0x5c5   : > { %2791 = vmatpush.msrb.mxu0 %v2660_v30  ;;  %2814 = vmatpush.msrb.mxu1 %v2692_v7  ;;  %v2764_v7 = vld [vmem:[%s5857_s23 + $0x3a0] sm:$0xff] }
 0x5c7   : > { %2792 = vmatpush.msrb.mxu0 %v2658_v47  ;;  %v2768_v47 = vld [vmem:[%s5857_s23 + $0x3c0] sm:$0xff] }
 0x5c9   : > { %2793 = vmatpush.msrb.mxu0 %v2656_v54 }
 0x5cb   : > { %2794 = vmatpush.msrb.mxu0 %v2654_v6  ;;  %v2726_v6 = vld [vmem:[%s5857_s23 + $0x270] sm:$0xff] }
 0x5cd   : > { %2795 = vmatpush.msrb.mxu0 %v2652_v13 }
 0x628   : > { %v2161_v0 = vpop.f32.mrf.mxu0  ;;  %v2184_v1 = vpop.f32.mrf.mxu1 }
 0x629   : > { %v2162_v2 = vadd.f32 %v2161_v0, %v2136_v61  ;;  %v4105_v0 = vmov -1.0  }
 0x62b   : > { %v2185_v55 = vadd.f32 %v2184_v1, %v2162_v2 }
 0x62d   : > { %v5080_v5 = vmul.f32 0.70710677, %v2185_v55  ;;  %v5123_v40 = vmul.f32 0.5, %v2185_v55 }
 0x62f   : > { %v2360_v8 = vand.u32 2147483647, %v5080_v5  ;;  %v2207_v9 = vpop.f32.mrf.mxu2  ;;  %v2230_v10 = vpop.f32.mrf.mxu3  ;;  %vm2344_vm9 = vcmp.ge.f32.partialorder %v5080_v5, 0.0 }
 0x630   : > { %v2208_v14 = vadd.f32 %v2207_v9, %v2137_v57  ;;  %v2164_v15 = vpop.f32.mrf.mxu0  ;;  %v2187_v18 = vpop.f32.mrf.mxu1  ;;  %v5138_v1 = vsel %vm2344_vm9, 1.0, %v4105_v0 }
 0x631   : > { %v2368_v60 = vmul.f32 0.3275911, %v2360_v8  ;;  %v2165_v16 = vadd.f32 %v2164_v15, %v2136_v61  ;;  %v2576_v25 = vsub.f32 0.0, %v2360_v8 }
 0x632   : > { %v2231_v17 = vadd.f32 %v2230_v10, %v2208_v14 }
 0x633   : > { %v5088_v19 = vadd.f32 1.0, %v2368_v60  ;;  %v5090_v22 = vadd.f32 %v2187_v18, %v2165_v16  ;;  %v2584_v37 = vmul.f32 %v2576_v25, %v2360_v8  ;;  %v2690_v16 = vld [vmem:[%s5857_s23 + $0x150] sm:$0xff] }
 0x634   : > { %v5092_v24 = vmul.f32 0.70710677, %v2231_v17  ;;  %v2770_v18 = vld [vmem:[%s5857_s23 + $0x3d0] sm:$0xff]  ;;  %2815 = vmatpush.msrb.mxu1 %v2690_v16  ;;  %v2677_v16 = vld [vmem:[%s5857_s23 + $0xe8] sm:$0xff] }
 0x635   : > { %3680 = vrcp.f32 %v5088_v19  ;;  %v5100_v28 = vmul.f32 0.70710677, %v5090_v22  ;;  %v2393_v33 = vand.u32 2147483647, %v5088_v19  ;;  %v2395_v39 = vand.u32 2147483648, %v5088_v19  ;;  %2853 = vmatpush.msrb.mxu3 %v2770_v18  ;;  %v2724_v18 = vld [vmem:[%s5857_s23 + $0x260] sm:$0xff] }
 0x636   : > { %v5097_v27 = vand.u32 2147483647, %v5092_v24  ;;  %v5140_v2 = vmul.f32 1.442695, %v2584_v37  ;;  %vm2389_vm10 = vweird.f32 %v5088_v19  ;;  %vm2345_vm13 = vcmp.ge.f32.partialorder %v5092_v24, 0.0  ;;  %v2648_v24 = vld [vmem:[%s5857_s23] sm:$0xff] }
 0x637   : > { %v2210_v29 = vpop.f32.mrf.mxu2  ;;  %v5107_v43 = vand.u32 2147483647, %v5100_v28  ;;  %v2233_v44 = vpop.f32.mrf.mxu3  ;;  %vm5155_vm12 = vcmp.eq.f32.partialorder %v2393_v33, 8.507059e+37  ;;  %v2396_v15 = vor.u32 1.1754944e-38, %v2395_v39  ;;  %vm2348_vm14 = vcmp.ge.f32.partialorder %v5100_v28, 0.0  ;;  %v2686_v33 = vld [vmem:[%s5857_s23 + $0x130] sm:$0xff]  ;;  %2854 = vmatpush.msrb.mxu3 %v2768_v47 }
 0x638   : > { %v2369_v31 = vmul.f32 0.3275911, %v5097_v27  ;;  %v2211_v34 = vadd.f32 %v2210_v29, %v2137_v57  ;;  %v2253_v35 = vpop.f32.mrf.mxu0  ;;  %v2577_v61 = vsub.f32 0.0, %v5097_v27  ;;  %v2276_v62 = vpop.f32.mrf.mxu1  ;;  %v5147_v57 = vmul.f32 0.5, %v2231_v17  ;;  %v2732_v17 = vld [vmem:[%s5857_s23 + $0x2a0] sm:$0xff]  ;;  %v2766_v39 = vld [vmem:[%s5857_s23 + $0x3b0] sm:$0xff] }
 0x639   : > { %v2254_v45 = vadd.f32 %v2253_v35, %v2138_v26  ;;  %v2372_v42 = vmul.f32 0.3275911, %v5107_v43  ;;  %v2580_v9 = vsub.f32 0.0, %v5107_v43  ;;  %v5193_v41 = vsel %vm2345_vm13, 1.0, %v4105_v0  ;;  %2833 = vmatpush.msrb.mxu2 %v2732_v17  ;;  %v2679_v28 = vld [vmem:[%s5857_s23 + $0xf8] sm:$0xff]  ;;  %2855 = vmatpush.msrb.mxu3 %v2766_v39  ;;  %v2682_v17 = vld [vmem:[%s5857_s23 + $0x110] sm:$0xff] }
 0x63a   : > { %v5117_v49 = vadd.f32 1.0, %v2369_v31  ;;  %v5119_v50 = vadd.f32 %v2233_v44, %v2211_v34  ;;  %v2585_v60 = vmul.f32 %v2577_v61, %v5097_v27  ;;  %v2650_v27 = vld [vmem:[%s5857_s23 + $0x10] sm:$0xff]  ;;  %v2688_v31 = vld [vmem:[%s5857_s23 + $0x140] sm:$0xff]  ;;  %v5208_v54 = vsel %vm2348_vm14, 1.0, %v4105_v0 }
 0x63b   : > { %v5121_v51 = vpop.eup %3680  ;;  %v5142_v55 = vadd.f32 1.0, %v2372_v42  ;;  %v5144_v3 = vadd.f32 %v2276_v62, %v2254_v45  ;;  %v2730_v45 = vld [vmem:[%s5857_s23 + $0x290] sm:$0xff]  ;;  %v2588_v21 = vmul.f32 %v2580_v9, %v5107_v43  ;;  %2796 = vmatpush.msrb.mxu0 %v2650_v27  ;;  %2816 = vmatpush.msrb.mxu1 %v2688_v31  ;;  %v2728_v42 = vld [vmem:[%s5857_s23 + $0x280] sm:$0xff] }
 0x63c   : > { %v2385_v58 = vmul.f32 %v5121_v51, %v5088_v19  ;;  %3682 = vrcp.f32 %v5117_v49  ;;  %v5150_v5 = vmul.f32 0.70710677, %v5119_v50  ;;  %vm2390_vm11 = vweird.f32 %v5121_v51  ;;  %2834 = vmatpush.msrb.mxu2 %v2730_v45  ;;  %2856 = vmatpush.msrb.mxu3 %v2764_v7  ;;  %v2680_v47 = vld [vmem:[%s5857_s23 + $0x100] sm:$0xff] }
 0x63d   : > { %3684 = vrcp.f32 %v5142_v55  ;;  %v5173_v29 = vmul.f32 0.70710677, %v5144_v3  ;;  %vm5186_vm15 = vmor %vm2389_vm10, %vm2390_vm11  ;;  %v2408_v37 = vand.u32 2147483647, %v5117_v49  ;;  %v2410_v44 = vand.u32 2147483648, %v5117_v49  ;;  %2797 = vmatpush.msrb.mxu0 %v2648_v24  ;;  %2817 = vmatpush.msrb.mxu1 %v2686_v33  ;;  %v2673_v33 = vld [vmem:[%s5857_s23 + $0xc8] sm:$0xff] }
 0x63e   : > { %v2386_v4 = vsub.f32 1.0, %v2385_v58  ;;  %v2365_v25 = vand.u32 2147483647, %v5150_v5  ;;  %vm2404_vm0 = vweird.f32 %v5117_v49  ;;  %v5223_v63 = vmul.f32 1.442695, %v2585_v60  ;;  %2835 = vmatpush.msrb.mxu2 %v2728_v42  ;;  %v2711_v42 = vld [vmem:[%s5857_s23 + $0x1f8] sm:$0xff] }
 0x63f   : > { %v2299_v10 = vpop.f32.mrf.mxu2  ;;  %v5215_v38 = vand.u32 2147483647, %v5173_v29  ;;  %v2322_v58 = vpop.f32.mrf.mxu3  ;;  %vm5231_vm1 = vcmp.eq.f32.partialorder %v2408_v37, 8.507059e+37  ;;  %v2411_v8 = vor.u32 1.1754944e-38, %v2410_v44  ;;  %2874 = vmatpush.msra.mxu0 %v2679_v28  ;;  %vm2346_vm3 = vcmp.ge.f32.partialorder %v5173_v29, 0.0  ;;  %v2758_v29 = vld [vmem:[%s5857_s23 + $0x370] sm:$0xff] }
 0x640   : > { %v2387_v14 = vmul.f32 %v5121_v51, %v2386_v4  ;;  %v2300_v30 = vadd.f32 %v2299_v10, %v2139_v46  ;;  %v2373_v32 = vmul.f32 0.3275911, %v2365_v25  ;;  %v2581_v43 = vsub.f32 0.0, %v2365_v25  ;;  %v2684_v4 = vld [vmem:[%s5857_s23 + $0x120] sm:$0xff]  ;;  %v2256_v12 = vpop.f32.mrf.mxu0  ;;  %2836 = vmatpush.msrb.mxu2 %v2726_v6  ;;  %v2279_v7 = vpop.f32.mrf.mxu1  ;;  %v2718_v10 = vld [vmem:[%s5857_s23 + $0x230] sm:$0xff] }
 0x641   : > { %v2370_v11 = vmul.f32 0.3275911, %v5215_v38  ;;  %2818 = vmatpush.msrb.mxu1 %v2684_v4  ;;  %v5254_v44 = vmul.f32 0.5, %v5144_v3  ;;  %2875 = vmatpush.msra.mxu0 %v2677_v16  ;;  %v2756_v16 = vld [vmem:[%s5857_s23 + $0x360] sm:$0xff]  ;;  %v2754_v3 = vld [vmem:[%s5857_s23 + $0x350] sm:$0xff]  ;;  %vm2449_vm5 = vweird.f32 %v5142_v55 }
 0x642   : > { %v5179_v34 = vpop.eup %3682  ;;  %v2388_v35 = vadd.f32 %v5121_v51, %v2387_v14  ;;  %v5242_v60 = vadd.f32 1.0, %v2373_v32  ;;  %v2589_v27 = vmul.f32 %v2581_v43, %v2365_v25  ;;  %v2257_v25 = vadd.f32 %v2256_v12, %v2138_v26  ;;  %2837 = vmatpush.msrb.mxu2 %v2724_v18  ;;  %v2720_v43 = vld [vmem:[%s5857_s23 + $0x240] sm:$0xff] }
 0x643   : > { %v2400_v19 = vmul.f32 %v5179_v34, %v5117_v49  ;;  %v5236_v13 = vpop.eup %3684  ;;  %vm2405_vm2 = vweird.f32 %v5179_v34  ;;  %v5248_v31 = vadd.f32 1.0, %v2370_v11  ;;  %2819 = vmatpush.msrb.mxu1 %v2682_v17  ;;  %v2578_v26 = vsub.f32 0.0, %v5215_v38  ;;  %2876 = vmatpush.msra.mxu0 %v2675_v36  ;;  %v2669_v17 = vld [vmem:[%s5857_s23 + $0xa8] sm:$0xff] }
 0x644   : > { %v2392_v56 = vsel %vm5186_vm15, %v5121_v51, %v2388_v35  ;;  %v5225_v51 = vadd.f32 %v2322_v58, %v2300_v30  ;;  %v2762_v35 = vld [vmem:[%s5857_s23 + $0x390] sm:$0xff]  ;;  %vm5269_vm4 = vmor %vm2404_vm0, %vm2405_vm2  ;;  %v5275_v24 = vmul.f32 %v5236_v13, %v5142_v55  ;;  %v2453_v58 = vand.u32 2147483647, %v5142_v55 }
 0x645   : > { %v5221_v61 = vsel %vm5155_vm12, %v2396_v15, %v2392_v56  ;;  %v2401_v62 = vsub.f32 1.0, %v2400_v19  ;;  %v5240_v15 = vmul.f32 1.442695, %v2588_v21  ;;  %v2722_v19 = vld [vmem:[%s5857_s23 + $0x250] sm:$0xff]  ;;  %v2760_v21 = vld [vmem:[%s5857_s23 + $0x380] sm:$0xff]  ;;  %3686 = vrcp.f32 %v5248_v31  ;;  %2857 = vmatpush.msrb.mxu3 %v2762_v35  ;;  %2820 = vmatpush.msrb.mxu1 %v2680_v47 }
 0x646   : > { %v2504_v9 = vmul.f32 1.0614054, %v5221_v61  ;;  %v5257_v45 = vmul.f32 0.70710677, %v5225_v51  ;;  %3688 = vrcp.f32 %v5242_v60  ;;  %v5288_v56 = vsel %vm2346_vm3, 1.0, %v4105_v0  ;;  %2838 = vmatpush.msrb.mxu2 %v2722_v19  ;;  %2877 = vmatpush.msra.mxu0 %v2673_v33  ;;  %v2716_v35 = vld [vmem:[%s5857_s23 + $0x220] sm:$0xff] }
 0x647   : > { %v2402_v14 = vmul.f32 %v5179_v34, %v2401_v62  ;;  %2858 = vmatpush.msrb.mxu3 %v2760_v21  ;;  %v2671_v62 = vld [vmem:[%s5857_s23 + $0xb8] sm:$0xff]  ;;  %2897 = vmatpush.msra.mxu1 %v2711_v42  ;;  %v2446_v11 = vsub.f32 1.0, %v5275_v24  ;;  %v2586_v12 = vmul.f32 %v2578_v26, %v5215_v38  ;;  %3690 = vpow2.f32 %v5140_v2  ;;  %v2705_v26 = vld [vmem:[%s5857_s23 + $0x1c8] sm:$0xff] }
 0x648   : > { %v2512_v30 = vadd.f32 -1.4531521, %v2504_v9  ;;  %v5302_v6 = vand.u32 2147483647, %v5257_v45  ;;  %v2709_v9 = vld [vmem:[%s5857_s23 + $0x1e8] sm:$0xff]  ;;  %2839 = vmatpush.msrb.mxu2 %v2720_v43  ;;  %2878 = vmatpush.msra.mxu0 %v2671_v62  ;;  %3692 = vpow2.f32 %v5223_v63  ;;  %v2425_v21 = vand.u32 2147483648, %v5248_v31  ;;  %v2302_v63 = vpop.f32.mrf.mxu2 }
 0x649   : > { %v2403_v37 = vadd.f32 %v5179_v34, %v2402_v14  ;;  %v5309_v14 = vadd.f32 %v2279_v7, %v2257_v25  ;;  %2859 = vmatpush.msrb.mxu3 %v2758_v29  ;;  %v2423_v38 = vand.u32 2147483647, %v5248_v31  ;;  %2898 = vmatpush.msra.mxu1 %v2709_v9  ;;  %v2667_v24 = vld [vmem:[%s5857_s23 + $0x98] sm:$0xff]  ;;  %3694 = vpow2.f32 %v5240_v15  ;;  %v2714_v43 = vld [vmem:[%s5857_s23 + $0x210] sm:$0xff]  ;;  %v2712_v9 = vld [vmem:[%s5857_s23 + $0x200] sm:$0xff] }
 0x64a   : > { %v2520_v32 = vmul.f32 %v2512_v30, %v5221_v61  ;;  %v2371_v30 = vmul.f32 0.3275911, %v5302_v6  ;;  %2840 = vmatpush.msrb.mxu2 %v2718_v10  ;;  %2879 = vmatpush.msra.mxu0 %v2669_v17  ;;  %v5337_v42 = vmul.f32 1.442695, %v2586_v12  ;;  %v2703_v7 = vld [vmem:[%s5857_s23 + $0x1b8] sm:$0xff]  ;;  %v2447_v12 = vmul.f32 %v5236_v13, %v2446_v11 }
 0x64b   : > { %v2407_v49 = vsel %vm5269_vm4, %v5179_v34, %v2403_v37  ;;  %v5296_v34 = vmul.f32 1.442695, %v2589_v27  ;;  %v2707_v27 = vld [vmem:[%s5857_s23 + $0x1d8] sm:$0xff]  ;;  %v5317_v36 = vpop.eup %3686  ;;  %v5322_v25 = vmul.f32 0.70710677, %v5309_v14  ;;  %2860 = vmatpush.msrb.mxu3 %v2756_v16  ;;  %vm5365_vm7 = vcmp.eq.f32.partialorder %v2423_v38, 8.507059e+37  ;;  %v2325_v38 = vpop.f32.mrf.mxu3 }
 0x64c   : > { %v2528_v39 = vadd.f32 1.4214138, %v2520_v32  ;;  %v5294_v28 = vsel %vm5231_vm1, %v2411_v8, %v2407_v49  ;;  %v5324_v2 = vpop.eup %3688  ;;  %v2415_v19 = vmul.f32 %v5317_v36, %v5248_v31  ;;  %v5330_v32 = vadd.f32 1.0, %v2371_v30  ;;  %2899 = vmatpush.msra.mxu1 %v2707_v27  ;;  %2841 = vmatpush.msrb.mxu2 %v2716_v35  ;;  %v2695_v35 = vld [vmem:[%s5857_s23 + $0x178] sm:$0xff] }
 0x64d   : > { %v2505_v4 = vmul.f32 1.0614054, %v5294_v28  ;;  %v5340_v49 = vand.u32 2147483647, %v5322_v25  ;;  %2861 = vmatpush.msrb.mxu3 %v2754_v3  ;;  %2880 = vmatpush.msra.mxu0 %v2667_v24  ;;  %v5350_v10 = vmul.f32 %v5324_v2, %v5242_v60  ;;  %v3691_v16 = vpop.eup %3690  ;;  %vm2420_vm6 = vweird.f32 %v5317_v36  ;;  %v2748_v3 = vld [vmem:[%s5857_s23 + $0x320] sm:$0xff] }
 0x64e   : > { %v2536_v8 = vmul.f32 %v2528_v39, %v5221_v61  ;;  %v2752_v39 = vld [vmem:[%s5857_s23 + $0x340] sm:$0xff]  ;;  %v2416_v62 = vsub.f32 1.0, %v2415_v19  ;;  %3696 = vrcp.f32 %v5330_v32  ;;  %2900 = vmatpush.msra.mxu1 %v2705_v26  ;;  %2842 = vmatpush.msrb.mxu2 %v2714_v43  ;;  %v5362_v27 = vpop.eup %3692  ;;  %v2701_v19 = vld [vmem:[%s5857_s23 + $0x1a8] sm:$0xff]  ;;  %vm2419_vm8 = vweird.f32 %v5248_v31 }
 0x64f   : > { %v2513_v18 = vadd.f32 -1.4531521, %v2505_v4  ;;  %v2665_v4 = vld [vmem:[%s5857_s23 + $0x88] sm:$0xff]  ;;  %v2374_v30 = vmul.f32 0.3275911, %v5340_v49  ;;  %2862 = vmatpush.msrb.mxu3 %v2752_v39  ;;  %v5380_v39 = vpop.eup %3694  ;;  %vm5385_vm9 = vmor %vm2419_vm8, %vm2420_vm6  ;;  %vm2450_vm10 = vweird.f32 %v5236_v13  ;;  %vm2434_vm11 = vweird.f32 %v5330_v32 }
 0x650   : > { %v2544_v37 = vadd.f32 -0.28449672, %v2536_v8  ;;  %v2303_v8 = vadd.f32 %v2302_v63, %v2139_v46  ;;  %2881 = vmatpush.msra.mxu0 %v2665_v4  ;;  %v2663_v46 = vld [vmem:[%s5857_s23 + $0x78] sm:$0xff]  ;;  %2901 = vmatpush.msra.mxu1 %v2703_v7  ;;  %v2741_v43 = vld [vmem:[%s5857_s23 + $0x2e8] sm:$0xff]  ;;  %v2440_v4 = vand.u32 2147483648, %v5330_v32  ;;  %vm5432_vm13 = vmor %vm2449_vm5, %vm2450_vm10  ;;  %vm2454_vm14 = vcmp.eq.f32.partialorder %v2453_v58, 8.507059e+37 }
 0x651   : > { %v2521_v47 = vmul.f32 %v2513_v18, %v5294_v28  ;;  %v2417_v18 = vmul.f32 %v5317_v36, %v2416_v62  ;;  %2843 = vmatpush.msrb.mxu2 %v2712_v9  ;;  %v2743_v63 = vld [vmem:[%s5857_s23 + $0x2f8] sm:$0xff]  ;;  %2863 = vmatpush.msrb.mxu3 %v2750_v59  ;;  %v2461_v62 = vsub.f32 1.0, %v5350_v10  ;;  %v2746_v9 = vld [vmem:[%s5857_s23 + $0x310] sm:$0xff]  ;;  %v5404_v59 = vadd.f32 %v5236_v13, %v2447_v12 }
 0x652   : > { %v2552_v33 = vmul.f32 %v2544_v37, %v5221_v61  ;;  %v2426_v37 = vor.u32 1.1754944e-38, %v2425_v21  ;;  %2882 = vmatpush.msra.mxu0 %v2663_v46  ;;  %v2661_v21 = vld [vmem:[%s5857_s23 + $0x68] sm:$0xff]  ;;  %v5390_v7 = vadd.f32 %v2325_v38, %v2303_v8  ;;  %2902 = vmatpush.msra.mxu1 %v2701_v19  ;;  %v2438_v38 = vand.u32 2147483647, %v5330_v32 }
 0x653   : > { %v2529_v29 = vadd.f32 1.4214138, %v2521_v47  ;;  %v2579_v47 = vsub.f32 0.0, %v5302_v6  ;;  %v2418_v26 = vadd.f32 %v5317_v36, %v2417_v18  ;;  %2920 = vmatpush.msra.mxu2 %v2743_v63  ;;  %2864 = vmatpush.msrb.mxu3 %v2748_v3  ;;  %v2697_v8 = vld [vmem:[%s5857_s23 + $0x188] sm:$0xff]  ;;  %vm2465_vm1 = vweird.f32 %v5324_v2 }
 0x654   : > { %v2560_v15 = vadd.f32 0.2548296, %v2552_v33  ;;  %v2699_v33 = vld [vmem:[%s5857_s23 + $0x198] sm:$0xff]  ;;  %2883 = vmatpush.msra.mxu0 %v2661_v21  ;;  %v2657_v63 = vld [vmem:[%s5857_s23 + $0x48] sm:$0xff]  ;;  %v5423_v21 = vmul.f32 0.70710677, %v5390_v7  ;;  %vm2464_vm2 = vweird.f32 %v5242_v60 }
 0x655   : > { %v2537_v17 = vmul.f32 %v2529_v29, %v5294_v28  ;;  %v2422_v18 = vsel %vm5385_vm9, %v5317_v36, %v2418_v26  ;;  %2903 = vmatpush.msra.mxu1 %v2699_v33  ;;  %2921 = vmatpush.msra.mxu2 %v2741_v43  ;;  %v2744_v36 = vld [vmem:[%s5857_s23 + $0x300] sm:$0xff]  ;;  %v2775_v33 = vld [vmem:[%s5857_s23 + $0x3f8] sm:$0xff]  ;;  %vm2439_vm0 = vcmp.eq.f32.partialorder %v2438_v38, 8.507059e+37  ;;  %v2769_v38 = vld [vmem:[%s5857_s23 + $0x3c8] sm:$0xff]  ;;  %vm2347_vm9 = vcmp.ge.f32.partialorder %v5257_v45, 0.0 }
 0x656   : > { %v2568_v11 = vmul.f32 %v2560_v15, %v5221_v61  ;;  %v5375_v61 = vadd.f32 1.0, %v2374_v30  ;;  %v2659_v15 = vld [vmem:[%s5857_s23 + $0x58] sm:$0xff]  ;;  %2865 = vmatpush.msrb.mxu3 %v2746_v9  ;;  %v5439_v9 = vand.u32 2147483647, %v5423_v21  ;;  %vm5512_vm3 = vmor %vm2464_vm2, %vm2465_vm1 }
 0x657   : > { %v2545_v24 = vadd.f32 -0.28449672, %v2537_v17  ;;  %v2739_v30 = vld [vmem:[%s5857_s23 + $0x2d8] sm:$0xff]  ;;  %2884 = vmatpush.msra.mxu0 %v2659_v15  ;;  %2904 = vmatpush.msra.mxu1 %v2697_v8  ;;  %v2452_v15 = vsel %vm5432_vm13, %v5236_v13, %v5404_v59 }
 0x658   : > { %v2608_v29 = vmul.f32 %v3691_v16, %v2568_v11  ;;  %v5394_v16 = vpop.eup %3696  ;;  %3698 = vrcp.f32 %v5375_v61  ;;  %v5408_v11 = vsel %vm5365_vm7, %v2426_v37, %v2422_v18  ;;  %v2737_v37 = vld [vmem:[%s5857_s23 + $0x2c8] sm:$0xff]  ;;  %2922 = vmatpush.msra.mxu2 %v2739_v30  ;;  %2866 = vmatpush.msrb.mxu3 %v2744_v36  ;;  %v2375_v59 = vmul.f32 0.3275911, %v5439_v9 }
 0x659   : > { %v2553_v17 = vmul.f32 %v2545_v24, %v5294_v28  ;;  %v2430_v19 = vmul.f32 %v5394_v16, %v5330_v32  ;;  %v2506_v12 = vmul.f32 1.0614054, %v5408_v11  ;;  %3700 = vpow2.f32 %v5337_v42  ;;  %2885 = vmatpush.msra.mxu0 %v2657_v63  ;;  %2905 = vmatpush.msra.mxu1 %v2695_v35  ;;  %v2693_v18 = vld [vmem:[%s5857_s23 + $0x168] sm:$0xff]  ;;  %v2735_v63 = vld [vmem:[%s5857_s23 + $0x2b8] sm:$0xff] }
 0x65a   : > { %v2616_v46 = vsub.f32 1.0, %v2608_v29  ;;  %vm2435_vm12 = vweird.f32 %v5394_v16  ;;  %v2455_v29 = vand.u32 2147483648, %v5142_v55  ;;  %2923 = vmatpush.msra.mxu2 %v2737_v37  ;;  %2943 = vmatpush.msra.mxu3 %v2775_v33  ;;  %v2771_v33 = vld [vmem:[%s5857_s23 + $0x3d8] sm:$0xff]  ;;  %v5482_v32 = vadd.f32 1.0, %v2375_v59 }
 0x65b   : > { %v2561_v3 = vadd.f32 0.2548296, %v2553_v17  ;;  %v2431_v26 = vsub.f32 1.0, %v2430_v19  ;;  %v2514_v43 = vadd.f32 -1.4531521, %v2506_v12  ;;  %v2655_v17 = vld [vmem:[%s5857_s23 + $0x38] sm:$0xff]  ;;  %2906 = vmatpush.msra.mxu1 %v2693_v18  ;;  %vm5469_vm15 = vmor %vm2434_vm11, %vm2435_vm12  ;;  %vm2479_vm6 = vweird.f32 %v5375_v61 }
 0x65c   : > { %v2624_v24 = vmul.f32 %v2616_v46, %v5138_v1  ;;  %v2441_v19 = vor.u32 1.1754944e-38, %v2440_v4  ;;  %v2456_v36 = vor.u32 1.1754944e-38, %v2455_v29  ;;  %2886 = vmatpush.msra.mxu0 %v2655_v17  ;;  %v2653_v12 = vld [vmem:[%s5857_s23 + $0x28] sm:$0xff]  ;;  %2924 = vmatpush.msra.mxu2 %v2735_v63  ;;  %3702 = vrcp.f32 %v5482_v32 }
 0x65d   : > { %v2569_v42 = vmul.f32 %v2561_v3, %v5294_v28  ;;  %v2432_v28 = vmul.f32 %v5394_v16, %v2431_v26  ;;  %v2522_v46 = vmul.f32 %v2514_v43, %v5408_v11  ;;  %v2773_v3 = vld [vmem:[%s5857_s23 + $0x3e8] sm:$0xff]  ;;  %v2582_v63 = vsub.f32 0.0, %v5340_v49 }
 0x65e   : > { %v2632_v31 = vadd.f32 1.0, %v2624_v24  ;;  %v5447_v8 = vpop.eup %3698  ;;  %v2733_v4 = vld [vmem:[%s5857_s23 + $0x2a8] sm:$0xff]  ;;  %v5475_v58 = vsel %vm2454_vm14, %v2456_v36, %v2452_v15  ;;  %2944 = vmatpush.msra.mxu3 %v2773_v3  ;;  %2887 = vmatpush.msra.mxu0 %v2653_v12  ;;  %v2468_v12 = vand.u32 2147483647, %v5242_v60  ;;  %vm2494_vm11 = vweird.f32 %v5482_v32 }
 0x65f   : > { %v2609_v30 = vmul.f32 %v5362_v27, %v2569_v42  ;;  %v2433_v13 = vadd.f32 %v5394_v16, %v2432_v28  ;;  %v2691_v27 = vld [vmem:[%s5857_s23 + $0x158] sm:$0xff]  ;;  %v5463_v37 = vpop.eup %3700  ;;  %v2475_v55 = vmul.f32 %v5447_v8, %v5375_v61  ;;  %v2508_v1 = vmul.f32 1.0614054, %v5475_v58  ;;  %v2689_v29 = vld [vmem:[%s5857_s23 + $0x148] sm:$0xff]  ;;  %2925 = vmatpush.msra.mxu2 %v2733_v4 }
 0x660   : > { %v5455_v35 = vmul.f32 %v2632_v31, %v5123_v40  ;;  %v2530_v40 = vadd.f32 1.4214138, %v2522_v46  ;;  %v2651_v42 = vld [vmem:[%s5857_s23 + $0x18] sm:$0xff]  ;;  %2907 = vmatpush.msra.mxu1 %v2691_v27  ;;  %2945 = vmatpush.msra.mxu3 %v2771_v33  ;;  %vm5521_vm4 = vcmp.eq.f32.partialorder %v2468_v12, 8.507059e+37  ;;  %vm2480_vm5 = vweird.f32 %v5447_v8 }
 0x661   : > { %v2617_v24 = vsub.f32 1.0, %v2609_v30  ;;  %v2437_v43 = vsel %vm5469_vm15, %v5394_v16, %v2433_v13  ;;  %v2731_v31 = vld [vmem:[%s5857_s23 + $0x298] sm:$0xff]  ;;  %v2587_v16 = vmul.f32 %v2579_v47, %v5302_v6  ;;  %v2516_v30 = vadd.f32 -1.4531521, %v2508_v1  ;;  %2888 = vmatpush.msra.mxu0 %v2651_v42  ;;  %v2729_v42 = vld [vmem:[%s5857_s23 + $0x288] sm:$0xff]  ;;  %vm5556_vm7 = vmor %vm2479_vm6, %vm2480_vm5 }
 0x662   : > { %2798 = vmatmul.f32.vlgmr.msrb.gmra.mxu0 %v5455_v35  ;;  %v2538_v15 = vmul.f32 %v2530_v40, %v5408_v11  ;;  %v5490_v17 = vsel %vm2439_vm0, %v2441_v19, %v2437_v43  ;;  %v2476_v36 = vsub.f32 1.0, %v2475_v55  ;;  %2908 = vmatpush.msra.mxu1 %v2689_v29  ;;  %v2649_v55 = vld [vmem:[%s5857_s23 + $0x8] sm:$0xff]  ;;  %v2687_v33 = vld [vmem:[%s5857_s23 + $0x138] sm:$0xff]  ;;  %v2483_v4 = vand.u32 2147483647, %v5375_v61 }
 0x663   : > { %v2625_v28 = vmul.f32 %v2617_v24, %v5193_v41  ;;  %v2507_v18 = vmul.f32 1.0614054, %v5490_v17  ;;  %v2462_v41 = vmul.f32 %v5324_v2, %v2461_v62  ;;  %2926 = vmatpush.msra.mxu2 %v2731_v31  ;;  %v2524_v47 = vmul.f32 %v2516_v30, %v5475_v58  ;;  %2946 = vmatpush.msra.mxu3 %v2769_v38  ;;  %v2683_v30 = vld [vmem:[%s5857_s23 + $0x118] sm:$0xff] }
 0x664   : > { %v2546_v19 = vadd.f32 -0.28449672, %v2538_v15  ;;  %v2598_v59 = vmul.f32 1.442695, %v2587_v16  ;;  %v2470_v24 = vand.u32 2147483648, %v5242_v60  ;;  %v2477_v43 = vmul.f32 %v5447_v8, %v2476_v36  ;;  %v5529_v60 = vpop.eup %3702  ;;  %2889 = vmatpush.msra.mxu0 %v2649_v55  ;;  %2909 = vmatpush.msra.mxu1 %v2687_v33  ;;  %v2727_v15 = vld [vmem:[%s5857_s23 + $0x278] sm:$0xff] }
 0x665   : > { %v2633_v46 = vadd.f32 1.0, %v2625_v28  ;;  %v2515_v6 = vadd.f32 -1.4531521, %v2507_v18  ;;  %v2463_v3 = vadd.f32 %v5324_v2, %v2462_v41  ;;  %v2532_v27 = vadd.f32 1.4214138, %v2524_v47  ;;  %v2685_v28 = vld [vmem:[%s5857_s23 + $0x128] sm:$0xff]  ;;  %2927 = vmatpush.msra.mxu2 %v2729_v42 }
 0x666   : > { %v2554_v62 = vmul.f32 %v2546_v19, %v5408_v11  ;;  %v2471_v31 = vor.u32 1.1754944e-38, %v2470_v24  ;;  %v2490_v38 = vmul.f32 %v5529_v60, %v5482_v32  ;;  %v2765_v18 = vld [vmem:[%s5857_s23 + $0x3a8] sm:$0xff]  ;;  %v2478_v41 = vadd.f32 %v5447_v8, %v2477_v43  ;;  %2910 = vmatpush.msra.mxu1 %v2685_v28 }
 0x667   : > { %v5506_v10 = vmul.f32 %v2633_v46, %v5147_v57  ;;  %v2523_v13 = vmul.f32 %v2515_v6, %v5490_v17  ;;  %v2467_v40 = vsel %vm5512_vm3, %v5324_v2, %v2463_v3  ;;  %v2540_v29 = vmul.f32 %v2532_v27, %v5475_v58  ;;  %v2767_v2 = vld [vmem:[%s5857_s23 + $0x3b8] sm:$0xff]  ;;  %2928 = vmatpush.msra.mxu2 %v2727_v15 }
 0x668   : > { %v2562_v57 = vadd.f32 0.2548296, %v2554_v62  ;;  %2947 = vmatpush.msra.mxu3 %v2767_v2  ;;  %v5546_v36 = vsel %vm5521_vm4, %v2471_v31, %v2467_v40  ;;  %v2763_v6 = vld [vmem:[%s5857_s23 + $0x398] sm:$0xff]  ;;  %v2485_v47 = vand.u32 2147483648, %v5375_v61  ;;  %v2491_v62 = vsub.f32 1.0, %v2490_v38  ;;  %2911 = vmatpush.msra.mxu1 %v2683_v30  ;;  %v2721_v31 = vld [vmem:[%s5857_s23 + $0x248] sm:$0xff] }
 0x669   : > { %2821 = vmatmul.f32.vlgmr.msrb.gmra.mxu1 %v5506_v10  ;;  %v2531_v1 = vadd.f32 1.4214138, %v2523_v13  ;;  %v2548_v19 = vadd.f32 -0.28449672, %v2540_v29  ;;  %v2509_v12 = vmul.f32 1.0614054, %v5546_v36  ;;  %v2482_v26 = vsel %vm5556_vm7, %v5447_v8, %v2478_v41 }
 0x66a   : > { %v2570_v16 = vmul.f32 %v2562_v57, %v5408_v11  ;;  %v2725_v11 = vld [vmem:[%s5857_s23 + $0x268] sm:$0xff]  ;;  %2948 = vmatpush.msra.mxu3 %v2765_v18  ;;  %v2723_v40 = vld [vmem:[%s5857_s23 + $0x258] sm:$0xff]  ;;  %v2486_v55 = vor.u32 1.1754944e-38, %v2485_v47  ;;  %3704 = vpow2.f32 %v2598_v59  ;;  %vm2484_vm8 = vcmp.eq.f32.partialorder %v2483_v4, 8.507059e+37 }
 0x66b   : > { %v2539_v46 = vmul.f32 %v2531_v1, %v5490_v17  ;;  %v2681_v13 = vld [vmem:[%s5857_s23 + $0x108] sm:$0xff]  ;;  %v2556_v57 = vmul.f32 %v2548_v19, %v5475_v58  ;;  %v2517_v42 = vadd.f32 -1.4531521, %v2509_v12  ;;  %2929 = vmatpush.msra.mxu2 %v2725_v11  ;;  %v2492_v29 = vmul.f32 %v5529_v60, %v2491_v62  ;;  %v2759_v2 = vld [vmem:[%s5857_s23 + $0x378] sm:$0xff] }
 0x66c   : > { %v2610_v3 = vmul.f32 %v5463_v37, %v2570_v16  ;;  %v2761_v37 = vld [vmem:[%s5857_s23 + $0x388] sm:$0xff]  ;;  %2949 = vmatpush.msra.mxu3 %v2763_v6  ;;  %2912 = vmatpush.msra.mxu1 %v2681_v13  ;;  %v5568_v1 = vsel %vm2484_vm8, %v2486_v55, %v2482_v26  ;;  %v2719_v38 = vld [vmem:[%s5857_s23 + $0x238] sm:$0xff]  ;;  %vm2495_vm10 = vweird.f32 %v5529_v60  ;;  %v2590_v41 = vmul.f32 %v2582_v63, %v5340_v49 }
 0x66d   : > { %v2547_v24 = vadd.f32 -0.28449672, %v2539_v46  ;;  %v2564_v43 = vadd.f32 0.2548296, %v2556_v57  ;;  %v2525_v59 = vmul.f32 %v2517_v42, %v5546_v36  ;;  %2930 = vmatpush.msra.mxu2 %v2723_v40  ;;  %v2510_v28 = vmul.f32 1.0614054, %v5568_v1  ;;  %vm5598_vm12 = vmor %vm2494_vm11, %vm2495_vm10 }
 0x66e   : > { %v2618_v33 = vsub.f32 1.0, %v2610_v3  ;;  %2950 = vmatpush.msra.mxu3 %v2761_v37  ;;  %v2757_v18 = vld [vmem:[%s5857_s23 + $0x368] sm:$0xff]  ;;  %v2493_v30 = vadd.f32 %v5529_v60, %v2492_v29  ;;  %v2755_v6 = vld [vmem:[%s5857_s23 + $0x358] sm:$0xff]  ;;  %v2498_v47 = vand.u32 2147483647, %v5482_v32  ;;  %v2500_v12 = vand.u32 2147483648, %v5482_v32 }
 0x66f   : > { %v2555_v61 = vmul.f32 %v2547_v24, %v5490_v17  ;;  %v2572_v16 = vmul.f32 %v2564_v43, %v5475_v58  ;;  %v2533_v46 = vadd.f32 1.4214138, %v2525_v59  ;;  %2931 = vmatpush.msra.mxu2 %v2721_v31  ;;  %v2518_v19 = vadd.f32 -1.4531521, %v2510_v28  ;;  %v2753_v4 = vld [vmem:[%s5857_s23 + $0x348] sm:$0xff]  ;;  %v2715_v32 = vld [vmem:[%s5857_s23 + $0x218] sm:$0xff] }
 0x670   : > { %v2626_v8 = vmul.f32 %v2618_v33, %v5288_v56  ;;  %2951 = vmatpush.msra.mxu3 %v2759_v2  ;;  %v3705_v3 = vpop.eup %3704  ;;  %v2497_v24 = vsel %vm5598_vm12, %v5529_v60, %v2493_v30  ;;  %3706 = vpow2.f32 %v5296_v34  ;;  %v2501_v37 = vor.u32 1.1754944e-38, %v2500_v12  ;;  %v2751_v43 = vld [vmem:[%s5857_s23 + $0x338] sm:$0xff] }
 0x671   : > { %v2563_v15 = vadd.f32 0.2548296, %v2555_v61  ;;  %v2612_v58 = vmul.f32 %v5380_v39, %v2572_v16  ;;  %v2541_v49 = vmul.f32 %v2533_v46, %v5546_v36  ;;  %v2526_v63 = vmul.f32 %v2518_v19, %v5568_v1  ;;  %2932 = vmatpush.msra.mxu2 %v2719_v38  ;;  %v2713_v61 = vld [vmem:[%s5857_s23 + $0x208] sm:$0xff]  ;;  %v2747_v30 = vld [vmem:[%s5857_s23 + $0x318] sm:$0xff] }
 0x672   : > { %v2634_v56 = vadd.f32 1.0, %v2626_v8  ;;  %2952 = vmatpush.msra.mxu3 %v2757_v18  ;;  %v2604_v26 = vmul.f32 1.442695, %v2590_v41  ;;  %vm2499_vm13 = vcmp.eq.f32.partialorder %v2498_v47, 8.507059e+37  ;;  %v2583_v60 = vsub.f32 0.0, %v5439_v9 }
 0x673   : > { %v2571_v11 = vmul.f32 %v2563_v15, %v5490_v17  ;;  %v2717_v17 = vld [vmem:[%s5857_s23 + $0x228] sm:$0xff]  ;;  %v2620_v27 = vsub.f32 1.0, %v2612_v58  ;;  %v2549_v57 = vadd.f32 -0.28449672, %v2541_v49  ;;  %v2534_v40 = vadd.f32 1.4214138, %v2526_v63 }
 0x674   : > { %v5591_v62 = vmul.f32 %v2634_v56, %v5254_v44  ;;  %v2355_v44 = vsel %vm2347_vm9, 1.0, %v4105_v0  ;;  %2953 = vmatpush.msra.mxu3 %v2755_v6  ;;  %2933 = vmatpush.msra.mxu2 %v2717_v17  ;;  %v2502_v42 = vsel %vm2499_vm13, %v2501_v37, %v2497_v24  ;;  %v2332_v29 = vmul.f32 0.5, %v5090_v22 }
 0x675   : > { %v2611_v13 = vmul.f32 %v3705_v3, %v2571_v11  ;;  %v2628_v55 = vmul.f32 %v2620_v27, %v5208_v54  ;;  %v2557_v34 = vmul.f32 %v2549_v57, %v5546_v36  ;;  %v2542_v33 = vmul.f32 %v2534_v40, %v5568_v1  ;;  %v2749_v54 = vld [vmem:[%s5857_s23 + $0x328] sm:$0xff] }
 0x676   : > { %2844 = vmatmul.f32.vlgmr.msrb.gmra.mxu2 %v5591_v62  ;;  %2954 = vmatpush.msra.mxu3 %v2753_v4  ;;  %v2511_v31 = vmul.f32 1.0614054, %v2502_v42  ;;  %v2331_v2 = vmul.f32 0.5, %v5225_v51  ;;  %3708 = vpow2.f32 %v2604_v26  ;;  %v3707_v56 = vpop.eup %3706  ;;  %v2591_v22 = vmul.f32 %v2583_v60, %v5439_v9  ;;  %v2745_v11 = vld [vmem:[%s5857_s23 + $0x308] sm:$0xff] }
 0x677   : > { %v2619_v45 = vsub.f32 1.0, %v2611_v13  ;;  %v2636_v59 = vadd.f32 1.0, %v2628_v55  ;;  %2934 = vmatpush.msra.mxu2 %v2715_v32  ;;  %v2565_v28 = vadd.f32 0.2548296, %v2557_v34  ;;  %v2550_v15 = vadd.f32 -0.28449672, %v2542_v33 }
 0x678   : > { %2955 = vmatpush.msra.mxu3 %v2751_v43  ;;  %v2519_v18 = vadd.f32 -1.4531521, %v2511_v31  ;;  %vm2349_vm14 = vcmp.ge.f32.partialorder %v5150_v5, 0.0  ;;  %v2606_v3 = vmul.f32 1.442695, %v2591_v22  ;;  %vm2350_vm15 = vcmp.ge.f32.partialorder %v5322_v25, 0.0 }
 0x679   : > { %v2627_v8 = vmul.f32 %v2619_v45, %v2355_v44  ;;  %v2644_v38 = vmul.f32 %v2636_v59, %v2332_v29  ;;  %2935 = vmatpush.msra.mxu2 %v2713_v61  ;;  %v2573_v41 = vmul.f32 %v2565_v28, %v5546_v36  ;;  %v2558_v46 = vmul.f32 %v2550_v15, %v5568_v1 }
 0x67a   : > { %2956 = vmatpush.msra.mxu3 %v2749_v54  ;;  %v2527_v51 = vmul.f32 %v2519_v18, %v2502_v42  ;;  %v2357_v63 = vsel %vm2349_vm14, 1.0, %v4105_v0  ;;  %v2333_v5 = vmul.f32 0.5, %v5119_v50  ;;  %3710 = vpow2.f32 %v2606_v3 }
 0x67b   : > { %v2635_v16 = vadd.f32 1.0, %v2627_v8  ;;  %2801 = vmatmul.f32.gmra.mxu0 %v2644_v38  ;;  %v2613_v58 = vmul.f32 %v3707_v56, %v2573_v41  ;;  %v2566_v6 = vadd.f32 0.2548296, %v2558_v46  ;;  %v2358_v4 = vsel %vm2350_vm15, 1.0, %v4105_v0 }
 0x67c   : > { %2957 = vmatpush.msra.mxu3 %v2747_v30  ;;  %v2535_v47 = vadd.f32 1.4214138, %v2527_v51  ;;  %v3709_v36 = vpop.eup %3708  ;;  %v2334_v32 = vmul.f32 0.5, %v5309_v14  ;;  %vm2351_vm0 = vcmp.ge.f32.partialorder %v5423_v21, 0.0  ;;  %v2335_v34 = vmul.f32 0.5, %v5390_v7 }
 0x67d   : > { %v2643_v19 = vmul.f32 %v2635_v16, %v2331_v2  ;;  %v2621_v49 = vsub.f32 1.0, %v2613_v58  ;;  %v2574_v9 = vmul.f32 %v2566_v6, %v5568_v1  ;;  %v2776_v7 = vld [vmem:[%s1013_s19] sm:$0x3] }
 0x67e   : > { %2958 = vmatpush.msra.mxu3 %v2745_v11  ;;  %v2543_v17 = vmul.f32 %v2535_v47, %v2502_v42 }
 0x67f   : > { %2867 = vmatmul.f32.vlgmr.msrb.gmra.mxu3 %v2643_v19  ;;  %v2629_v39 = vmul.f32 %v2621_v49, %v2357_v63  ;;  %v2614_v12 = vmul.f32 %v3709_v36, %v2574_v9 }
 0x680   : > { %v2551_v44 = vadd.f32 -0.28449672, %v2543_v17  ;;  %v3711_v45 = vpop.eup %3710 }
 0x681   : > { %v2637_v13 = vadd.f32 1.0, %v2629_v39  ;;  %v2622_v27 = vsub.f32 1.0, %v2614_v12 }
 0x682   : > { %v2559_v1 = vmul.f32 %v2551_v44, %v2502_v42 }
 0x683   : > { %2890 = vmatmul.f32.vlgmr.msra.gmra.mxu0 %v5455_v35  ;;  %v2645_v24 = vmul.f32 %v2637_v13, %v2333_v5  ;;  %v2630_v57 = vmul.f32 %v2622_v27, %v2358_v4  ;;  %v2359_v35 = vsel %vm2351_vm0, 1.0, %v4105_v0 }
 0x684   : > { %v2567_v40 = vadd.f32 0.2548296, %v2559_v1 }
 0x685   : > { %2824 = vmatmul.f32.gmra.mxu1 %v2645_v24  ;;  %v2638_v25 = vadd.f32 1.0, %v2630_v57 }
 0x686   : > { %v2575_v37 = vmul.f32 %v2567_v40, %v2502_v42 }
 0x687   : > { %v2646_v26 = vmul.f32 %v2638_v25, %v2334_v32 }
 0x688   : > { %v2615_v50 = vmul.f32 %v3711_v45, %v2575_v37 }
 0x689   : > { %2847 = vmatmul.f32.gmra.mxu2 %v2646_v26 }
 0x68a   : > { %v2623_v55 = vsub.f32 1.0, %v2615_v50 }
 0x68b   : > { %2893 = vmatmul.f32.gmra.mxu0 %v2644_v38 }
 0x68c   : > { %v2631_v60 = vmul.f32 %v2623_v55, %v2359_v35 }
 0x68d   : > { %2913 = vmatmul.f32.vlgmr.msra.gmra.mxu1 %v5506_v10  ;;  %v2778_v10 = vperm.slane %v2776_v7, 0 }
 0x68e   : > { %v2639_v14 = vadd.f32 1.0, %v2631_v60 }
 0x690   : > { %v2647_v33 = vmul.f32 %v2639_v14, %v2335_v34 }
 0x691   : > { %2936 = vmatmul.f32.vlgmr.msra.gmra.mxu2 %v5591_v62  ;;  %v2779_v62 = vperm.slane %v2776_v7, 1 }
 0x692   : > { %2870 = vmatmul.f32.gmra.mxu3 %v2647_v33 }
 0x695   : > { %2916 = vmatmul.f32.gmra.mxu1 %v2645_v24 }
 0x699   : > { %2939 = vmatmul.f32.gmra.mxu2 %v2646_v26 }
 0x69a   : > { %2959 = vmatmul.f32.vlgmr.msra.gmra.mxu3 %v2643_v19 }
 0x6a2   : > { %2962 = vmatmul.f32.gmra.mxu3 %v2647_v33 }
 0x6df   : > { %v2799_v21 = vpop.f32.mrf.mxu0 }
 0x6e0   : > { %v2800_v2 = vadd.f32 %v2799_v21, %v2778_v10 }
 0x6e6   : > { %v2822_v42 = vpop.f32.mrf.mxu1 }
 0x6e7   : > { %v2823_v15 = vadd.f32 %v2822_v42, %v2800_v2 }
 0x6f8   : > { %v2802_v43 = vpop.f32.mrf.mxu0 }
 0x6f9   : > { %v2845_v61 = vpop.f32.mrf.mxu2  ;;  %v2803_v46 = vadd.f32 %v2802_v43, %v2778_v10 }
 0x6fa   : > { %v2846_v38 = vadd.f32 %v2845_v61, %v2823_v15  ;;  %v2970_v61 = vld [vmem:[%s1017_s15] sm:$0x3]  ;;  %s5885_s15 = sld [smem:[#allocation28_spill]] }
 0x6fb   : > { %v3023_v7 = vperm.slane %v2970_v61, 0  ;;  %v3024_v10 = vperm.slane %v2970_v61, 1 }
 0x700   : > { %v2891_v59 = vpop.f32.mrf.mxu0  ;;  %p3492_p11 = scmp.ne.s32.totalorder %s5885_s15, 1 }
 0x701   : > { %v2892_v16 = vadd.f32 %v2891_v59, %v2779_v62  ;;  %s5886_s28 = sld [smem:[#allocation60_spill]] (!%p3492_p11) }
 0x702   : > { %v2825_v0 = vpop.f32.mrf.mxu1  ;;  %v2868_v29 = vpop.f32.mrf.mxu3 }
 0x703   : > { %v2869_v30 = vadd.f32 %v2868_v29, %v2846_v38  ;;  %v2826_v11 = vadd.f32 %v2825_v0, %v2803_v46  ;;  %v2971_v29 = vld [vmem:[%s1021_s16] sm:$0x3] }
 0x705   : > { %v2966_v6 = vadd.f32 %v2869_v30, %v5038_v48 }
 0x708   : > { %v2894_v22 = vpop.f32.mrf.mxu0 }
 0x709   : > { %v2895_v58 = vadd.f32 %v2894_v22, %v2779_v62 }
 0x70a   : > { %v2914_v31 = vpop.f32.mrf.mxu1 }
 0x70b   : > { %v2915_v18 = vadd.f32 %v2914_v31, %v2892_v16  ;;  %v3032_v31 = vperm.slane %v2971_v29, 0 }
 0x70c   : > { %v2848_v8 = vpop.f32.mrf.mxu2 }
 0x70d   : > { %v2849_v49 = vadd.f32 %v2848_v8, %v2826_v11 }
 0x712   : > { %v2917_v51 = vpop.f32.mrf.mxu1 }
 0x713   : > { %v2918_v9 = vadd.f32 %v2917_v51, %v2895_v58 }
 0x714   : > { %v2937_v28 = vpop.f32.mrf.mxu2 }
 0x715   : > { %v2871_v54 = vpop.f32.mrf.mxu3  ;;  %v2938_v56 = vadd.f32 %v2937_v28, %v2915_v18 }
 0x716   : > { %v2872_v63 = vadd.f32 %v2871_v54, %v2849_v49  ;;  %v3033_v54 = vperm.slane %v2971_v29, 1 }
 0x718   : > { %v2968_v44 = vadd.f32 %v2872_v63, %v5048_v52 }
 0x71c   : > { %v2940_v3 = vpop.f32.mrf.mxu2 }
 0x71d   : > { %v2960_v41 = vpop.f32.mrf.mxu3  ;;  %v2941_v17 = vadd.f32 %v2940_v3, %v2918_v9 }
 0x71e   : > { %v2961_v19 = vadd.f32 %v2960_v41, %v2938_v56 }
 0x720   : > { %v2967_v47 = vadd.f32 %v2961_v19, %v5040_v20 }
 0x722   : > { %v2972_v36 = vadd.f32 %v2967_v47, %v2966_v6 }
 0x724   : > { %2973 = vadd.xlane.f32.xlu0 %v2972_v36 }
 0x725   : > { %v2963_v39 = vpop.f32.mrf.mxu3 }
 0x726   : > { %v2964_v12 = vadd.f32 %v2963_v39, %v2941_v17 }
 0x728   : > { %v2969_v5 = vadd.f32 %v2964_v12, %v5050_v53 }
 0x72a   : > { %v2975_v13 = vadd.f32 %v2969_v5, %v2968_v44 }
 0x72c   : > { %2976 = vadd.xlane.f32.xlu1 %v2975_v13 }
 0x797   : > { %v2974_v27 = vpop.xlane.xlu0 %2973 }
 0x798   : > { %v2978_v48 = vmul.f32 %v2974_v27, %v4897_v23 }
 0x79a   : > { %v2980_v4 = vsub.f32 %v2966_v6, %v2978_v48  ;;  %v2981_v20 = vsub.f32 %v2967_v47, %v2978_v48 }
 0x79c   : > { %v2984_v1 = vmul.f32 %v2980_v4, %v2980_v4  ;;  %v2985_v24 = vmul.f32 %v2981_v20, %v2981_v20 }
 0x79e   : > { %v2988_v57 = vadd.f32 %v2985_v24, %v2984_v1 }
 0x79f   : > { %v2977_v40 = vpop.xlane.xlu1 %2976 }
 0x7a0   : > { %v2979_v32 = vmul.f32 %v2977_v40, %v4897_v23  ;;  %2989 = vadd.xlane.f32.xlu2 %v2988_v57 }
 0x7a2   : > { %v2982_v25 = vsub.f32 %v2968_v44, %v2979_v32  ;;  %v2983_v37 = vsub.f32 %v2969_v5, %v2979_v32 }
 0x7a4   : > { %v2986_v45 = vmul.f32 %v2982_v25, %v2982_v25  ;;  %v2987_v52 = vmul.f32 %v2983_v37, %v2983_v37 }
 0x7a6   : > { %v2991_v53 = vadd.f32 %v2987_v52, %v2986_v45 }
 0x7a8   : > { %2992 = vadd.xlane.f32.xlu0 %v2991_v53 }
 0x813   : > { %v2990_v26 = vpop.xlane.xlu2 %2989 }
 0x814   : > { %v2994_v50 = vmul.f32 %v2990_v26, %v4897_v23 }
 0x816   : > { %v2996_v55 = vadd.f32 1e-05, %v2994_v50 }
 0x818   : > { %3712 = vrsqrt.f32 %v2996_v55  ;;  %vm3004_vm2 = vweird.f32 %v2996_v55 }
 0x81b   : > { %v2993_v35 = vpop.xlane.xlu0 %2992 }
 0x81c   : > { %v2995_v60 = vmul.f32 %v2993_v35, %v4897_v23 }
 0x81e   : > { %v3713_v34 = vpop.eup %3712  ;;  %v2997_v14 = vadd.f32 1e-05, %v2995_v60 }
 0x81f   : > { %v2999_v33 = vmul.f32 %v3713_v34, %v2996_v55  ;;  %vm3005_vm1 = vweird.f32 %v3713_v34 }
 0x820   : > { %3714 = vrsqrt.f32 %v2997_v14  ;;  %vm3006_vm3 = vmor %vm3004_vm2, %vm3005_vm1  ;;  %vm3014_vm5 = vweird.f32 %v2997_v14 }
 0x821   : > { %v3000_v21 = vmul.f32 %v3713_v34, %v2999_v33 }
 0x823   : > { %v3001_v42 = vmul.f32 0.5, %v3000_v21 }
 0x825   : > { %v3002_v43 = vsub.f32 1.5, %v3001_v42 }
 0x826   : > { %v3715_v0 = vpop.eup %3714 }
 0x827   : > { %v3003_v23 = vmul.f32 %v3713_v34, %v3002_v43  ;;  %v3009_v8 = vmul.f32 %v3715_v0, %v2997_v14  ;;  %vm3015_vm4 = vweird.f32 %v3715_v0 }
 0x828   : > { %vm3016_vm6 = vmor %vm3014_vm5, %vm3015_vm4 }
 0x829   : > { %v3007_v59 = vsel %vm3006_vm3, %v3713_v34, %v3003_v23  ;;  %v3010_v62 = vmul.f32 %v3715_v0, %v3009_v8 }
 0x82a   : > { %v3018_v2 = vmul.f32 %v3007_v59, %v2980_v4  ;;  %v3019_v28 = vmul.f32 %v3007_v59, %v2981_v20 }
 0x82b   : > { %v3011_v15 = vmul.f32 0.5, %v3010_v62 }
 0x82c   : > { %v3027_v16 = vmul.f32 %v3023_v7, %v3018_v2  ;;  %v3028_v38 = vmul.f32 %v3024_v10, %v3019_v28 }
 0x82d   : > { %v3012_v18 = vsub.f32 1.5, %v3011_v15 }
 0x82e   : > { %v5663_v30 = vadd.f32 %v3032_v31, %v3027_v16  ;;  %v5665_v56 = vadd.f32 %v3033_v54, %v3028_v38 }
 0x82f   : > { %v3013_v22 = vmul.f32 %v3715_v0, %v3012_v18 }
 0x830   : > { %3040 = vst [vmem:[#allocation2 + $0x10] sm:$0xff] %v5663_v30 }
 0x831   : > { %3041 = vst [vmem:[#allocation2] sm:$0xff] %v5665_v56  ;;  %v3017_v41 = vsel %vm3016_vm6, %v3715_v0, %v3013_v22 }
 0x832   : > { %v3020_v46 = vmul.f32 %v3017_v41, %v2982_v25  ;;  %v3021_v19 = vmul.f32 %v3017_v41, %v2983_v37 }
 0x834   : > { %v3029_v51 = vmul.f32 %v3023_v7, %v3020_v46  ;;  %v3030_v11 = vmul.f32 %v3024_v10, %v3021_v19 }
 0x835   : > { %3047 = sbr.rel (%p3492_p11) target bundleno = 2269 (0x8dd), region = 136 }
 0x836   : > { %v3038_v58 = vadd.f32 %v3032_v31, %v3029_v51  ;;  %v3039_v6 = vadd.f32 %v3033_v54, %v3030_v11 }
 0x838   : > { %3042 = vst [vmem:[#allocation2 + $0x18] sm:$0xff] %v3038_v58 }
 0x839   : > { %3043 = vst [vmem:[#allocation2 + $0x8] sm:$0xff] %v3039_v6 }
 0x83a   : > { %v3063_v47 = vld [vmem:[#allocation15 + $0x78] sm:$0xff]  ;;  %v3062_v3 = vld [vmem:[#allocation15 + $0x70] sm:$0xff]  ;;  %v3061_v36 = vld [vmem:[#allocation15 + $0x68] sm:$0xff] }
 0x83b   : > { %v3079_v49 = vld [vmem:[#allocation15 + $0xf8] sm:$0xff]  ;;  %3081 = vmatpush.msra.mxu0 %v3063_v47  ;;  %v3078_v9 = vld [vmem:[#allocation15 + $0xf0] sm:$0xff]  ;;  %v3077_v63 = vld [vmem:[#allocation15 + $0xe8] sm:$0xff] }
 0x83c   : > { %3101 = vmatpush.msra.mxu1 %v3079_v49  ;;  %v3060_v17 = vld [vmem:[#allocation15 + $0x60] sm:$0xff]  ;;  %v3059_v12 = vld [vmem:[#allocation15 + $0x58] sm:$0xff]  ;;  %v3058_v5 = vld [vmem:[#allocation15 + $0x50] sm:$0xff] }
 0x83d   : > { %3082 = vmatpush.msra.mxu0 %v3062_v3  ;;  %v3076_v39 = vld [vmem:[#allocation15 + $0xe0] sm:$0xff]  ;;  %v3075_v44 = vld [vmem:[#allocation15 + $0xd8] sm:$0xff]  ;;  %v3074_v13 = vld [vmem:[#allocation15 + $0xd0] sm:$0xff] }
 0x83e   : > { %3102 = vmatpush.msra.mxu1 %v3078_v9  ;;  %v3057_v27 = vld [vmem:[#allocation15 + $0x48] sm:$0xff]  ;;  %v3056_v4 = vld [vmem:[#allocation15 + $0x40] sm:$0xff]  ;;  %v3055_v1 = vld [vmem:[#allocation15 + $0x38] sm:$0xff] }
 0x83f   : > { %3083 = vmatpush.msra.mxu0 %v3061_v36  ;;  %v3073_v48 = vld [vmem:[#allocation15 + $0xc8] sm:$0xff]  ;;  %v3072_v20 = vld [vmem:[#allocation15 + $0xc0] sm:$0xff]  ;;  %v3071_v24 = vld [vmem:[#allocation15 + $0xb8] sm:$0xff] }
 0x840   : > { %3103 = vmatpush.msra.mxu1 %v3077_v63  ;;  %v3054_v57 = vld [vmem:[#allocation15 + $0x30] sm:$0xff]  ;;  %v3053_v32 = vld [vmem:[#allocation15 + $0x28] sm:$0xff]  ;;  %v3052_v37 = vld [vmem:[#allocation15 + $0x20] sm:$0xff] }
 0x841   : > { %3084 = vmatpush.msra.mxu0 %v3060_v17  ;;  %v3070_v40 = vld [vmem:[#allocation15 + $0xb0] sm:$0xff]  ;;  %v3069_v25 = vld [vmem:[#allocation15 + $0xa8] sm:$0xff]  ;;  %v3068_v45 = vld [vmem:[#allocation15 + $0xa0] sm:$0xff] }
 0x842   : > { %3104 = vmatpush.msra.mxu1 %v3076_v39  ;;  %v3051_v52 = vld [vmem:[#allocation15 + $0x18] sm:$0xff]  ;;  %v3050_v26 = vld [vmem:[#allocation15 + $0x10] sm:$0xff]  ;;  %v3049_v55 = vld [vmem:[#allocation15 + $0x8] sm:$0xff] }
 0x843   : > { %3085 = vmatpush.msra.mxu0 %v3059_v12  ;;  %v3067_v53 = vld [vmem:[#allocation15 + $0x98] sm:$0xff]  ;;  %v3066_v50 = vld [vmem:[#allocation15 + $0x90] sm:$0xff]  ;;  %v3065_v35 = vld [vmem:[#allocation15 + $0x88] sm:$0xff] }
 0x844   : > { %3105 = vmatpush.msra.mxu1 %v3075_v44  ;;  %v3048_v60 = vld [vmem:[#allocation15] sm:$0xff] }
 0x845   : > { %3086 = vmatpush.msra.mxu0 %v3058_v5  ;;  %v3064_v34 = vld [vmem:[#allocation15 + $0x80] sm:$0xff] }
 0x846   : > { %3106 = vmatpush.msra.mxu1 %v3074_v13  ;;  %v3080_v14 = vld [vmem:[%s5886_s28] sm:$0x1] }
 0x847   : > { %3087 = vmatpush.msra.mxu0 %v3057_v27 }
 0x848   : > { %3107 = vmatpush.msra.mxu1 %v3073_v48 }
 0x849   : > { %3088 = vmatpush.msra.mxu0 %v3056_v4 }
 0x84a   : > { %3108 = vmatpush.msra.mxu1 %v3072_v20 }
 0x84b   : > { %3089 = vmatpush.msra.mxu0 %v3055_v1 }
 0x84c   : > { %3109 = vmatpush.msra.mxu1 %v3071_v24 }
 0x84d   : > { %3090 = vmatpush.msra.mxu0 %v3054_v57 }
 0x84e   : > { %3110 = vmatpush.msra.mxu1 %v3070_v40 }
 0x84f   : > { %3091 = vmatpush.msra.mxu0 %v3053_v32 }
 0x850   : > { %3111 = vmatpush.msra.mxu1 %v3069_v25 }
 0x851   : > { %3092 = vmatpush.msra.mxu0 %v3052_v37 }
 0x852   : > { %3112 = vmatpush.msra.mxu1 %v3068_v45 }
 0x853   : > { %3093 = vmatpush.msra.mxu0 %v3051_v52 }
 0x854   : > { %3113 = vmatpush.msra.mxu1 %v3067_v53 }
 0x855   : > { %3094 = vmatpush.msra.mxu0 %v3050_v26 }
 0x856   : > { %3114 = vmatpush.msra.mxu1 %v3066_v50 }
 0x857   : > { %3095 = vmatpush.msra.mxu0 %v3049_v55 }
 0x858   : > { %3115 = vmatpush.msra.mxu1 %v3065_v35 }
 0x859   : > { %3096 = vmatpush.msra.mxu0 %v3048_v60 }
 0x85a   : > { %3116 = vmatpush.msra.mxu1 %v3064_v34  ;;  %3097 = vmatmul.f32.vlgmr.msra.gmra.mxu0 %v5663_v30 }
 0x85b   : > { %3117 = vmatmul.f32.vlgmr.msra.gmra.mxu1 %v5665_v56 }
 0x8d7   : > { %v3098_v33 = vpop.f32.mrf.mxu0 }
 0x8d8   : > { %v3118_v21 = vpop.f32.mrf.mxu1  ;;  %v3099_v42 = vadd.f32 %v3098_v33, %v3080_v14 }
 0x8da   : > { %v3119_v61 = vadd.f32 %v3118_v21, %v3099_v42 }
 0x8dc   : > { %3121 = vst [vmem:[%s4511_s11] sm:$0x1] %v3119_v61 }
 0x8dd PF: > { %s5887_s26 = sld [smem:[#allocation29_spill]]  ;;  %s3133_s29 = sshll.u32 %s4511_s11, 4  ;;  %s3134_s29 = int_to_ptr.vmem [resolvable:$true] %s3133_s29 }
 0x8de   : > { %s5888_s0 = sld [smem:[#allocation61_spill]]  ;;  %s5891_s27 = sand.u32 1, %s4058_s30  }
 0x8df   : > { %s3123_s10 = scalar_lea.sflag [#allocation5], %s5891_s27 }
 0x8e4   : > { %s5889_s14 = smov %s5888_s0  ;;  %s3131_s25 = scalar_lea.hbm %s5888_s0, %s5887_s26 }
 0x8e5   : > { %s3135_s5 = sshll.u32 %s3131_s25, 4  ;;  %s3976_s23 = scalar_lea.hbm %s5889_s14, 2  ;;  %s3136_s5 = int_to_ptr.hbm [resolvable:$true] %s3135_s5 }
 0x8e6   : > { %s3970_s2 = sshra.s32 %s3136_s5, 4  ;;  %s3971_s2 = int_to_ptr.hbm [resolvable:$true] %s3970_s2 }
 0x8e7   : > { %s3972_s12 = scalar_lea.hbm %s3971_s2, 1  ;;  %p3977_p2 = scmp.lt.s32.totalorder %s3971_s2, %s5889_s14 }
 0x8e8   : > { %p3973_p13 = scmp.ne.s32.totalorder %s3971_s2, %s3972_s12  ;;  %p3978_p4 = scmp.lt.s32.totalorder %s3976_s23, %s3972_s12 }
 0x8ea   : > { %p3974_p0 = pnand %p3973_p13, %p4371_p3  ;;  %p3979_p6 = por %p3978_p4, %p3977_p2 }
 0x8ec   : > { %p3975_p1 = pneg %p3974_p0 }
 0x8ee   : > { %p3980_p7 = pnand %p3979_p6, %p3975_p1 }
 0x8f0   : > { %3983 = shalt.err (!%p3980_p7)
}
 0x8f1   : > { %3522 = dma.vmem_to_hbm [thread:$0]  (%p4371_p3), %s3134_s29, 16, %s3136_s5, %s3123_s10  }
 0x8f2 PF: > { %s5892_s11 = sld [smem:[#allocation32_spill]] }
 0x8f3   : > { %s5893_s24 = sld [smem:[#allocation24_spill]] }
 0x8f8   : > { %p3559_p9 = scmp.ge.s32.totalorder %s5892_s11, 2 }
 0x8f9   : > { %s3147_s8 = sand.u32 1, %s5893_s24  }
 0x8fa   : > { %p3551_p8 = pnand %p3559_p9, %p4376_p5  ;;  %s3148_s18 = scalar_lea.sflag [#allocation5], %s3147_s8 }
 0x8fc   : > { %p3552_p12 = pneg %p3551_p8 }
 0x8fe   : > { %4049 = dma.done.wait (%p3552_p12), %s3148_s18, 16  }
 0x8ff   : > { %4051 = vsyncadd (%p3552_p12), %s3148_s18, 4294967280  ;;  %s43_s3 = sadd.s32 1, %s5892_s11   ;;  %s5895_s21 = sld [smem:[#allocation25_spill]] }
 0x900   : > { %p40_p10 = scmp.ge.s32.totalorder %s43_s3, 6   ;;  %s5896_s20 = sld [smem:[#allocation37_spill]] }
 0x901   : > { %s5897_s7 = sld [smem:[#allocation26_spill]]  ;;  %s5904_s0 = smov %s4058_s30 }
 0x902   : > { %s5898_s1 = sld [smem:[#allocation27_spill]] }
 0x903   : > { %s5899_s22 = sld [smem:[#allocation35_spill]]  ;;  %42 = sbr.rel (!%p40_p10) target bundleno = 36 (0x24), region = 244 }
 0x904   : > { %s5900_s2 = sld [smem:[#allocation30_spill]] }
 0x905   : > { %s5901_s23 = sld [smem:[#allocation31_spill]]  ;;  %s5905_s30 = smov %s5895_s21 }
 0x906   : > { %s5902_s24 = sld [smem:[#allocation33_spill]] }
 0x907   : > { %s5903_s25 = sld [smem:[#allocation34_spill]]  ;;  %s5906_s21 = smov %s5897_s7 }
 0x908   :  { %3153 = vsyncpa [#allocation4], 1 }
 0x909   :  { %3155 = vsyncpa [#allocation4 + $0x1], 1 }
 0x90a   :  { %3156 = vsyncpa [#allocation7], 1 }
 0x90b   :  { %3158 = vsyncpa [#allocation7 + $0x1], 1 }
 0x90c   :  { %3159 = vsyncpa [#allocation10], 1 }
 0x90d   :  { %3161 = vsyncpa [#allocation10 + $0x1], 1 }
 0x90e   :  { %3162 = vsyncpa [#allocation13], 1 }
 0x90f   :  { %3164 = vsyncpa [#allocation13 + $0x1], 1 }
 0x910   :  { %3165 = vsyncpa [#allocation16], 1 }
 0x911   :  { %3166 = vsyncpa [#allocation5], 1 }
 0x912   :  { %3168 = vsyncpa [#allocation5 + $0x1], 1 }

</bundles_post_ra>
